<compile_context>
chip_gen: v5e
topology: v5e:2x2
jax: 0.10.0
libtpu: 0.0.40
codegen_flags: <defaults>
</compile_context>

<pallas_src>
import functools

import jax
import jax.numpy as jnp
from jax.experimental import pallas as pl
from jax.experimental.pallas import tpu as pltpu


def _mod(idx, m):
    """idx % m, using a bitwise AND when m is a power of two (m is a Python int)."""
    if m & (m - 1) == 0:
        return idx & (m - 1)
    return idx % m


def _inv_res_kernel(x_ref, w1_ref, b1_ref, wd_ref, b2_ref, w3_ref, b3_ref, o_ref,
                    *, H, W, use_res):
    """(cin, L) -> (oup, L) slab; L = (#images folded onto lanes) * H * W.

    x_ref : (cin, L)      f32 input, channels on sublanes, flat spatial on lanes
    w1_ref: (hidden, cin) bf16 1x1 expand weight, BN1 scale pre-folded
    wd_ref: (hidden, 9)   f32 depthwise taps (row-major kh,kw), BN2 scale pre-folded
    w3_ref: (oup, hidden) bf16 1x1 project weight, BN3 scale pre-folded
    b*_ref: (C, 1)        f32 folded BatchNorm biases
    """
    HW = H * W
    L = x_ref.shape[1]

    # ---- 1x1 expand conv (scale folded into weight) + bias + ReLU6 ----
    y1 = jnp.dot(w1_ref[...], x_ref[...].astype(jnp.bfloat16),
                 preferred_element_type=jnp.float32)          # (hidden, L) f32
    y1 = jnp.clip(y1 + b1_ref[...], 0.0, 6.0)

    # ---- 3x3 depthwise conv (stride 1, zero padding 1): rolls + hoisted masks ----
    # Narrow (1, L) iota -> per-image local flat position. The four base boundary
    # conditions are hoisted once as (1, L) f32 {0,1} masks; applying them is a
    # sublane-broadcast multiply. Masks keyed on the LOCAL position also zero any
    # roll wrap across image boundaries when several images share the lane axis.
    pos = jax.lax.broadcasted_iota(jnp.int32, (1, L), 1)
    local = _mod(pos, HW)                                     # position within image
    col = _mod(local, W)
    not_top = (local >= W).astype(jnp.float32)                # h-1 >= 0
    not_bot = (local < (H - 1) * W).astype(jnp.float32)       # h+1 <= H-1
    not_lft = (col > 0).astype(jnp.float32)                   # w-1 >= 0
    not_rgt = (col < W - 1).astype(jnp.float32)               # w+1 <= W-1

    def edge_mask(di, dj):
        m = None
        if di == -1:
            m = not_top
        elif di == 1:
            m = not_bot
        if dj == -1:
            m = not_lft if m is None else m * not_lft
        elif dj == 1:
            m = not_rgt if m is None else m * not_rgt
        return m                                              # (1, L) f32

    wd = wd_ref[...]                                          # (hidden, 9), hoisted

    # Running accumulator: center tap first, then 8 neighbor taps added in turn.
    acc = y1 * wd[:, 4:5]                                     # (hidden, L) f32
    taps = [(di, dj) for di in (-1, 0, 1) for dj in (-1, 0, 1)]
    for t, (di, dj) in enumerate(taps):
        if di == 0 and dj == 0:
            continue
        shift = (-(di * W + dj)) % L                          # non-negative rotation
        shifted = pltpu.roll(y1, shift=shift, axis=1)         # XLU slot
        acc = acc + (shifted * edge_mask(di, dj)) * wd[:, t:t + 1]

    y2 = jnp.clip(acc + b2_ref[...], 0.0, 6.0)                # BN2 bias + ReLU6

    # ---- 1x1 project conv (scale folded into weight) + bias (linear) ----
    y3 = jnp.dot(w3_ref[...], y2.astype(jnp.bfloat16),
                 preferred_element_type=jnp.float32)          # (oup, L) f32
    y3 = y3 + b3_ref[...]

    if use_res:
        y3 = y3 + x_ref[...]                                  # residual connection
    o_ref[...] = y3.astype(o_ref.dtype)


def inverted_residual(x, params, *, stride=1, use_res_connect=True):
    """x: (N, C, H, W) float32 (PyTorch NCHW).  Returns (N, oup, H, W)."""
    assert stride == 1
    N, cin, H, W = x.shape
    w1, s1, b1, wd, s2, b2, w3, s3, b3 = params
    hidden, oup = w1.shape[0], w3.shape[0]
    HW = H * W

    # ---- host-side param prep: fold BN scales into the conv weights ----
    w1b = (w1 * s1[:, None]).astype(jnp.bfloat16)                      # (hidden, cin)
    wdf = (wd * s2[:, None, None]).reshape(hidden, 9).astype(jnp.float32)
    w3b = (w3 * s3[:, None]).astype(jnp.bfloat16)                      # (oup, hidden)
    b1c = b1.reshape(-1, 1).astype(jnp.float32)
    b2c = b2.reshape(-1, 1).astype(jnp.float32)
    b3c = b3.reshape(-1, 1).astype(jnp.float32)

    kernel = functools.partial(_inv_res_kernel, H=H, W=W, use_res=use_res_connect)

    # ---- chip-aware launch strategy ----
    kind = jax.devices()[0].device_kind.lower()
    two_tensorcores = "v7" in kind            # v7x: 2 TensorCores per chip

    if two_tensorcores and N > 1:
        # Keep batch as a "parallel" grid axis so the images shard across the 2 TCs.
        x2 = x.reshape(N, cin, HW)

        def rep(shape):
            return pl.BlockSpec(shape, lambda n: (0,) * len(shape))

        out = pl.pallas_call(
            kernel,
            out_shape=jax.ShapeDtypeStruct((N, oup, HW), x.dtype),
            grid_spec=pltpu.PrefetchScalarGridSpec(
                num_scalar_prefetch=0,
                grid=(N,),
                in_specs=[
                    pl.BlockSpec((None, cin, HW), lambda n: (n, 0, 0)),
                    rep((hidden, cin)), rep((hidden, 1)),
                    rep((hidden, 9)), rep((hidden, 1)),
                    rep((oup, hidden)), rep((oup, 1)),
                ],
                out_specs=pl.BlockSpec((None, oup, HW), lambda n: (n, 0, 0)),
            ),
            compiler_params=pltpu.CompilerParams(
                dimension_semantics=("parallel",)),
        )(x2, w1b, b1c, wdf, b2c, w3b, b3c)
        return out.reshape(N, oup, H, W)

    # Single-TensorCore chips (v5e/v6e/other): fold the batch onto the lane axis and
    # run a single kernel invocation on lane-dense (C, N*H*W) slabs.
    x2 = jnp.transpose(x, (1, 0, 2, 3)).reshape(cin, N * HW)
    out = pl.pallas_call(
        kernel,
        out_shape=jax.ShapeDtypeStruct((oup, N * HW), x.dtype),
    )(x2, w1b, b1c, wdf, b2c, w3b, b3c)
    return jnp.transpose(out.reshape(oup, N, H, W), (1, 0, 2, 3))


def ref_forward(x_nchw, params, use_res_connect):
    """Pure-JAX f32 reference (eval-mode BatchNorm folded to scale/bias)."""
    w1, s1, b1, wd, s2, b2, w3, s3, b3 = params
    hidden = w1.shape[0]
    x = jnp.transpose(x_nchw, (0, 2, 3, 1))                   # NHWC
    y1 = jnp.clip(jnp.einsum('nhwc,oc->nhwo', x, w1) * s1 + b1, 0.0, 6.0)
    dw = jnp.transpose(wd, (1, 2, 0))                         # (kh, kw, C)
    y2 = jax.lax.conv_general_dilated(
        y1, dw[:, :, None, :], window_strides=(1, 1), padding='SAME',
        dimension_numbers=('NHWC', 'HWIO', 'NHWC'),
        feature_group_count=hidden)
    y2 = jnp.clip(y2 * s2 + b2, 0.0, 6.0)
    y3 = jnp.einsum('nhwc,oc->nhwo', y2, w3) * s3 + b3
    out = x + y3 if use_res_connect else y3
    return jnp.transpose(out, (0, 3, 1, 2))                   # back to NCHW


if __name__ == "__main__":
    # Module config: InvertedResidual(inp=16, oup=16, stride=1, expand_ratio=4)
    inp, oup, stride, expand_ratio = 16, 16, 1, 4
    hidden = round(inp * expand_ratio)                        # 64
    use_res = (stride == 1 and inp == oup)
    N, H, W = 2, 16, 16
    eps = 1e-5  # PyTorch BatchNorm2d default

    key = jax.random.PRNGKey(0)
    ks = jax.random.split(key, 7)
    x = jax.random.normal(ks[0], (N, inp, H, W), jnp.float32)      # NCHW

    # Conv weights in (near-)PyTorch layouts:
    # Conv2d(inp, hidden, 1) weight (hidden, inp, 1, 1) -> (hidden, inp)
    w1 = 0.1 * jax.random.normal(ks[1], (hidden, inp), jnp.float32)
    # depthwise Conv2d(hidden, hidden, 3, groups=hidden) weight (hidden, 1, 3, 3)
    # -> (hidden, 3, 3)
    wd = 0.1 * jax.random.normal(ks[2], (hidden, 3, 3), jnp.float32)
    # Conv2d(hidden, oup, 1) weight (oup, hidden, 1, 1) -> (oup, hidden)
    w3 = 0.1 * jax.random.normal(ks[3], (oup, hidden), jnp.float32)

    def bn_fold(k, c):
        kk = jax.random.split(k, 4)
        gamma = 1.0 + 0.1 * jax.random.normal(kk[0], (c,), jnp.float32)
        beta = 0.1 * jax.random.normal(kk[1], (c,), jnp.float32)
        mean = 0.1 * jax.random.normal(kk[2], (c,), jnp.float32)
        var = jnp.abs(jax.random.normal(kk[3], (c,), jnp.float32)) + 0.5
        scale = gamma / jnp.sqrt(var + eps)
        bias = beta - mean * scale
        return scale, bias

    s1, b1 = bn_fold(ks[4], hidden)
    s2, b2 = bn_fold(ks[5], hidden)
    s3, b3 = bn_fold(ks[6], oup)

    params = (w1, s1, b1, wd, s2, b2, w3, s3, b3)

    out = inverted_residual(x, params, stride=stride, use_res_connect=use_res)
    out = jax.block_until_ready(out)

    ref = ref_forward(x, params, use_res)
    assert out.shape == (N, oup, H, W)
    # Tolerance accounts for bf16 MXU operands (BN scales folded pre-cast) in the
    # two 1x1 convs; the depthwise stage and all accumulation stay f32.
    max_err = float(jnp.max(jnp.abs(out - ref)))
    assert jnp.allclose(out, ref, rtol=3e-2, atol=3e-2), max_err
    print("KERNEL_OK")
</pallas_src>

<mosaic_0001>
module attributes {stable_mosaic.version = 11 : i64} {
  func.func @_inv_res_kernel(%arg0: memref<16x512xf32, #tpu.memory_space<vmem>>, %arg1: memref<64x16xbf16, #tpu.memory_space<vmem>>, %arg2: memref<64x1xf32, #tpu.memory_space<vmem>>, %arg3: memref<64x9xf32, #tpu.memory_space<vmem>>, %arg4: memref<64x1xf32, #tpu.memory_space<vmem>>, %arg5: memref<16x64xbf16, #tpu.memory_space<vmem>>, %arg6: memref<16x1xf32, #tpu.memory_space<vmem>>, %arg7: memref<16x512xf32, #tpu.memory_space<vmem>>) attributes {dimension_semantics = [], scalar_prefetch = 0 : i64, scratch_operands = 0 : i64, tpu.core_type = #tpu.core_type<tc>} {
    %c0 = arith.constant 0 : index
    %c0_0 = arith.constant 0 : index
    %0 = vector.load %arg1[%c0, %c0_0] : memref<64x16xbf16, #tpu.memory_space<vmem>>, vector<64x16xbf16>
    %c0_1 = arith.constant 0 : index
    %c0_2 = arith.constant 0 : index
    %1 = vector.load %arg0[%c0_1, %c0_2] : memref<16x512xf32, #tpu.memory_space<vmem>>, vector<16x512xf32>
    %2 = arith.truncf %1 : vector<16x512xf32> to vector<16x512xbf16>
    %cst = arith.constant dense<0.000000e+00> : vector<64x512xf32>
    %3 = tpu.matmul %0, %2, %cst {dimension_numbers = #tpu.dot_dimension_numbers<[1], [0], [0], [1], [0, 0, 1, 1], [], []>} : vector<64x16xbf16>, vector<16x512xbf16>, vector<64x512xf32> -> vector<64x512xf32>
    %c0_3 = arith.constant 0 : index
    %c0_4 = arith.constant 0 : index
    %4 = vector.load %arg2[%c0_3, %c0_4] : memref<64x1xf32, #tpu.memory_space<vmem>>, vector<64x1xf32>
    %5 = vector.broadcast %4 : vector<64x1xf32> to vector<64x512xf32>
    %6 = arith.addf %3, %5 : vector<64x512xf32>
    %cst_5 = arith.constant 0.000000e+00 : f32
    %cst_6 = arith.constant 6.000000e+00 : f32
    %7 = vector.broadcast %cst_5 : f32 to vector<64x512xf32>
    %8 = arith.maximumf %7, %6 : vector<64x512xf32>
    %9 = vector.broadcast %cst_6 : f32 to vector<64x512xf32>
    %10 = arith.minimumf %9, %8 : vector<64x512xf32>
    %11 = tpu.iota {dimensions = array<i32: 1>} : vector<1x512xi32>
    %c255_i32 = arith.constant 255 : i32
    %12 = vector.broadcast %c255_i32 : i32 to vector<1x512xi32>
    %13 = arith.andi %11, %12 : vector<1x512xi32>
    %c15_i32 = arith.constant 15 : i32
    %14 = vector.broadcast %c15_i32 : i32 to vector<1x512xi32>
    %15 = arith.andi %13, %14 : vector<1x512xi32>
    %c16_i32 = arith.constant 16 : i32
    %16 = vector.broadcast %c16_i32 : i32 to vector<1x512xi32>
    %17 = arith.cmpi sge, %13, %16 : vector<1x512xi32>
    %18 = arith.extui %17 : vector<1x512xi1> to vector<1x512xi32>
    %19 = arith.sitofp %18 : vector<1x512xi32> to vector<1x512xf32>
    %c240_i32 = arith.constant 240 : i32
    %20 = vector.broadcast %c240_i32 : i32 to vector<1x512xi32>
    %21 = arith.cmpi slt, %13, %20 : vector<1x512xi32>
    %22 = arith.extui %21 : vector<1x512xi1> to vector<1x512xi32>
    %23 = arith.sitofp %22 : vector<1x512xi32> to vector<1x512xf32>
    %c0_i32 = arith.constant 0 : i32
    %24 = vector.broadcast %c0_i32 : i32 to vector<1x512xi32>
    %25 = arith.cmpi sgt, %15, %24 : vector<1x512xi32>
    %26 = arith.extui %25 : vector<1x512xi1> to vector<1x512xi32>
    %27 = arith.sitofp %26 : vector<1x512xi32> to vector<1x512xf32>
    %c15_i32_7 = arith.constant 15 : i32
    %28 = vector.broadcast %c15_i32_7 : i32 to vector<1x512xi32>
    %29 = arith.cmpi slt, %15, %28 : vector<1x512xi32>
    %30 = arith.extui %29 : vector<1x512xi1> to vector<1x512xi32>
    %31 = arith.sitofp %30 : vector<1x512xi32> to vector<1x512xf32>
    %c0_8 = arith.constant 0 : index
    %c0_9 = arith.constant 0 : index
    %32 = vector.load %arg3[%c0_8, %c0_9] : memref<64x9xf32, #tpu.memory_space<vmem>>, vector<64x9xf32>
    %33 = vector.extract_strided_slice %32 {offsets = [0, 4], sizes = [64, 1], strides = [1, 1]} : vector<64x9xf32> to vector<64x1xf32>
    %34 = vector.broadcast %33 : vector<64x1xf32> to vector<64x512xf32>
    %35 = arith.mulf %10, %34 : vector<64x512xf32>
    %c17_i32 = arith.constant 17 : i32
    %36 = tpu.dynamic_rotate %10 by %c17_i32 dim 1 : vector<64x512xf32>, i32 -> vector<64x512xf32>
    %37 = arith.mulf %19, %27 : vector<1x512xf32>
    %38 = vector.broadcast %37 : vector<1x512xf32> to vector<64x512xf32>
    %39 = arith.mulf %36, %38 : vector<64x512xf32>
    %40 = vector.extract_strided_slice %32 {offsets = [0, 0], sizes = [64, 1], strides = [1, 1]} : vector<64x9xf32> to vector<64x1xf32>
    %41 = vector.broadcast %40 : vector<64x1xf32> to vector<64x512xf32>
    %42 = arith.mulf %39, %41 : vector<64x512xf32>
    %43 = arith.addf %35, %42 : vector<64x512xf32>
    %c16_i32_10 = arith.constant 16 : i32
    %44 = tpu.dynamic_rotate %10 by %c16_i32_10 dim 1 : vector<64x512xf32>, i32 -> vector<64x512xf32>
    %45 = vector.broadcast %19 : vector<1x512xf32> to vector<64x512xf32>
    %46 = arith.mulf %44, %45 : vector<64x512xf32>
    %47 = vector.extract_strided_slice %32 {offsets = [0, 1], sizes = [64, 1], strides = [1, 1]} : vector<64x9xf32> to vector<64x1xf32>
    %48 = vector.broadcast %47 : vector<64x1xf32> to vector<64x512xf32>
    %49 = arith.mulf %46, %48 : vector<64x512xf32>
    %50 = arith.addf %43, %49 : vector<64x512xf32>
    %c15_i32_11 = arith.constant 15 : i32
    %51 = tpu.dynamic_rotate %10 by %c15_i32_11 dim 1 : vector<64x512xf32>, i32 -> vector<64x512xf32>
    %52 = arith.mulf %19, %31 : vector<1x512xf32>
    %53 = vector.broadcast %52 : vector<1x512xf32> to vector<64x512xf32>
    %54 = arith.mulf %51, %53 : vector<64x512xf32>
    %55 = vector.extract_strided_slice %32 {offsets = [0, 2], sizes = [64, 1], strides = [1, 1]} : vector<64x9xf32> to vector<64x1xf32>
    %56 = vector.broadcast %55 : vector<64x1xf32> to vector<64x512xf32>
    %57 = arith.mulf %54, %56 : vector<64x512xf32>
    %58 = arith.addf %50, %57 : vector<64x512xf32>
    %c1_i32 = arith.constant 1 : i32
    %59 = tpu.dynamic_rotate %10 by %c1_i32 dim 1 : vector<64x512xf32>, i32 -> vector<64x512xf32>
    %60 = vector.broadcast %27 : vector<1x512xf32> to vector<64x512xf32>
    %61 = arith.mulf %59, %60 : vector<64x512xf32>
    %62 = vector.extract_strided_slice %32 {offsets = [0, 3], sizes = [64, 1], strides = [1, 1]} : vector<64x9xf32> to vector<64x1xf32>
    %63 = vector.broadcast %62 : vector<64x1xf32> to vector<64x512xf32>
    %64 = arith.mulf %61, %63 : vector<64x512xf32>
    %65 = arith.addf %58, %64 : vector<64x512xf32>
    %c511_i32 = arith.constant 511 : i32
    %66 = tpu.dynamic_rotate %10 by %c511_i32 dim 1 : vector<64x512xf32>, i32 -> vector<64x512xf32>
    %67 = vector.broadcast %31 : vector<1x512xf32> to vector<64x512xf32>
    %68 = arith.mulf %66, %67 : vector<64x512xf32>
    %69 = vector.extract_strided_slice %32 {offsets = [0, 5], sizes = [64, 1], strides = [1, 1]} : vector<64x9xf32> to vector<64x1xf32>
    %70 = vector.broadcast %69 : vector<64x1xf32> to vector<64x512xf32>
    %71 = arith.mulf %68, %70 : vector<64x512xf32>
    %72 = arith.addf %65, %71 : vector<64x512xf32>
    %c497_i32 = arith.constant 497 : i32
    %73 = tpu.dynamic_rotate %10 by %c497_i32 dim 1 : vector<64x512xf32>, i32 -> vector<64x512xf32>
    %74 = arith.mulf %23, %27 : vector<1x512xf32>
    %75 = vector.broadcast %74 : vector<1x512xf32> to vector<64x512xf32>
    %76 = arith.mulf %73, %75 : vector<64x512xf32>
    %77 = vector.extract_strided_slice %32 {offsets = [0, 6], sizes = [64, 1], strides = [1, 1]} : vector<64x9xf32> to vector<64x1xf32>
    %78 = vector.broadcast %77 : vector<64x1xf32> to vector<64x512xf32>
    %79 = arith.mulf %76, %78 : vector<64x512xf32>
    %80 = arith.addf %72, %79 : vector<64x512xf32>
    %c496_i32 = arith.constant 496 : i32
    %81 = tpu.dynamic_rotate %10 by %c496_i32 dim 1 : vector<64x512xf32>, i32 -> vector<64x512xf32>
    %82 = vector.broadcast %23 : vector<1x512xf32> to vector<64x512xf32>
    %83 = arith.mulf %81, %82 : vector<64x512xf32>
    %84 = vector.extract_strided_slice %32 {offsets = [0, 7], sizes = [64, 1], strides = [1, 1]} : vector<64x9xf32> to vector<64x1xf32>
    %85 = vector.broadcast %84 : vector<64x1xf32> to vector<64x512xf32>
    %86 = arith.mulf %83, %85 : vector<64x512xf32>
    %87 = arith.addf %80, %86 : vector<64x512xf32>
    %c495_i32 = arith.constant 495 : i32
    %88 = tpu.dynamic_rotate %10 by %c495_i32 dim 1 : vector<64x512xf32>, i32 -> vector<64x512xf32>
    %89 = arith.mulf %23, %31 : vector<1x512xf32>
    %90 = vector.broadcast %89 : vector<1x512xf32> to vector<64x512xf32>
    %91 = arith.mulf %88, %90 : vector<64x512xf32>
    %92 = vector.extract_strided_slice %32 {offsets = [0, 8], sizes = [64, 1], strides = [1, 1]} : vector<64x9xf32> to vector<64x1xf32>
    %93 = vector.broadcast %92 : vector<64x1xf32> to vector<64x512xf32>
    %94 = arith.mulf %91, %93 : vector<64x512xf32>
    %95 = arith.addf %87, %94 : vector<64x512xf32>
    %c0_12 = arith.constant 0 : index
    %c0_13 = arith.constant 0 : index
    %96 = vector.load %arg4[%c0_12, %c0_13] : memref<64x1xf32, #tpu.memory_space<vmem>>, vector<64x1xf32>
    %97 = vector.broadcast %96 : vector<64x1xf32> to vector<64x512xf32>
    %98 = arith.addf %95, %97 : vector<64x512xf32>
    %cst_14 = arith.constant 0.000000e+00 : f32
    %cst_15 = arith.constant 6.000000e+00 : f32
    %99 = vector.broadcast %cst_14 : f32 to vector<64x512xf32>
    %100 = arith.maximumf %99, %98 : vector<64x512xf32>
    %101 = vector.broadcast %cst_15 : f32 to vector<64x512xf32>
    %102 = arith.minimumf %101, %100 : vector<64x512xf32>
    %c0_16 = arith.constant 0 : index
    %c0_17 = arith.constant 0 : index
    %103 = vector.load %arg5[%c0_16, %c0_17] : memref<16x64xbf16, #tpu.memory_space<vmem>>, vector<16x64xbf16>
    %104 = arith.truncf %102 : vector<64x512xf32> to vector<64x512xbf16>
    %cst_18 = arith.constant dense<0.000000e+00> : vector<16x512xf32>
    %105 = tpu.matmul %103, %104, %cst_18 {dimension_numbers = #tpu.dot_dimension_numbers<[1], [0], [0], [1], [0, 0, 1, 1], [], []>} : vector<16x64xbf16>, vector<64x512xbf16>, vector<16x512xf32> -> vector<16x512xf32>
    %c0_19 = arith.constant 0 : index
    %c0_20 = arith.constant 0 : index
    %106 = vector.load %arg6[%c0_19, %c0_20] : memref<16x1xf32, #tpu.memory_space<vmem>>, vector<16x1xf32>
    %107 = vector.broadcast %106 : vector<16x1xf32> to vector<16x512xf32>
    %108 = arith.addf %105, %107 : vector<16x512xf32>
    %c0_21 = arith.constant 0 : index
    %c0_22 = arith.constant 0 : index
    %109 = vector.load %arg0[%c0_21, %c0_22] : memref<16x512xf32, #tpu.memory_space<vmem>>, vector<16x512xf32>
    %110 = arith.addf %108, %109 : vector<16x512xf32>
    %c0_23 = arith.constant 0 : index
    %c0_24 = arith.constant 0 : index
    %111 = vector.load %arg7[%c0_23, %c0_24] : memref<16x512xf32, #tpu.memory_space<vmem>>, vector<16x512xf32>
    tpu.vector_store %arg7[%c0_23, %c0_24], %110 {strides = array<i32>} : memref<16x512xf32, #tpu.memory_space<vmem>>, vector<16x512xf32>,
    return
  }
}

</mosaic_0001>

<bundles_post_ra>
// kernel: tpu_custom_call.1
= control target key start
LH: loop header
LB: loop body
LE: loop exit
PB: predicated region body
PF: predicated region fallthrough
CT: control target
= control target key end

     0   :  { %v6601_v3 = vmov 0   ;;  %vm116_vm0 = vcmask 130048   ;;  %s6593_s0 = inlined_call_operand.vmem [shape: f32[16,512], index: 0, kind: input, shape index: {}]   ;;  %s6594_s1 = inlined_call_operand.vmem [shape: bf16[64,16], index: 1, kind: input, shape index: {}]   ;;  %s6595_s2 = inlined_call_operand.vmem [shape: f32[64,1], index: 2, kind: input, shape index: {}]   ;;  %s6596_s3 = inlined_call_operand.vmem [shape: f32[64,9], index: 3, kind: input, shape index: {}]   ;;  %s6597_s4 = inlined_call_operand.vmem [shape: f32[64,1], index: 4, kind: input, shape index: {}]   ;;  %s6598_s5 = inlined_call_operand.vmem [shape: bf16[16,64], index: 5, kind: input, shape index: {}]   ;;  %s6599_s6 = inlined_call_operand.vmem [shape: f32[16,1], index: 6, kind: input, shape index: {}]   ;;  %s6600_s7 = inlined_call_operand.hbm [shape: f32[16,512], index: 7, kind: output, shape index: {}]  }
   0x1   :  { %v48_v0 = vld [vmem:[%s6595_s2] sm:$0xff]  ;;  %2617 = vset.pattern.permute.xlu0 %v6601_v3  ;;  %v37_v5 = vld [vmem:[%s6593_s0 + $0x8] sm:$0xff]  ;;  %v38_v7 = vld [vmem:[%s6593_s0 + $0x10] sm:$0xff]  ;;  %2619 = vset.pattern.permute.xlu2 %v6601_v3 }
   0x2   :  { %v36_v1 = vld [vmem:[%s6593_s0] sm:$0xff]  ;;  %v41_v6 = vld [vmem:[%s6593_s0 + $0x28] sm:$0xff]  ;;  %58 = vperm.xlu0 %2617, %v48_v0   ;;  %v42_v9 = vld [vmem:[%s6593_s0 + $0x30] sm:$0xff]  ;;  %2618 = vset.pattern.permute.xlu1 %v6601_v3 }
   0x3   :  { %v40_v2 = vld [vmem:[%s6593_s0 + $0x20] sm:$0xff]  ;;  %v45_v8 = vpack.c.bf16 %v41_v6, %v37_v5  ;;  %v39_v10 = vld [vmem:[%s6593_s0 + $0x18] sm:$0xff]  ;;  %v46_v12 = vpack.c.bf16 %v42_v9, %v38_v7  ;;  %v50_v16 = vld [vmem:[%s6595_s2 + $0x10] sm:$0xff] }
   0x4   :  { %v44_v4 = vpack.c.bf16 %v40_v2, %v36_v1  ;;  %v43_v11 = vld [vmem:[%s6593_s0 + $0x38] sm:$0xff]  ;;  %v2591_v14 = vld [vmem:[%s6594_s1] sm:$0xff] }
   0x5   :  { %v47_v13 = vpack.c.bf16 %v43_v11, %v39_v10  ;;  %165 = vmatpush.bf16.msra.mxu1 %v45_v8  ;;  %v52_v15 = vld [vmem:[%s6595_s2 + $0x20] sm:$0xff]  ;;  %194 = vmatpush.bf16.msra.mxu2 %v46_v12 }
   0x6   :  { %136 = vmatpush.bf16.msra.mxu0 %v44_v4  ;;  %78 = vperm.xlu2 %2619, %v52_v15  }
   0x7   :  { %223 = vmatpush.bf16.msra.mxu3 %v47_v13 }
   0x9   :  { %2555 = vmatmul.msk.bf16.vlgmr.msra.gmra.mxu0 %vm116_vm0, %v2591_v14 }
   0xa   :  { %12 = vsyncpa [#allocation3], 0  ;;  %2559 = vmatmul.msk.bf16.vlgmr.msra.gmra.mxu1 %vm116_vm0, %v2591_v14  ;;  %v49_v17 = vld [vmem:[%s6595_s2 + $0x8] sm:$0xff]  ;;  %68 = vperm.xlu1 %2618, %v50_v16   ;;  %v51_v19 = vld [vmem:[%s6595_s2 + $0x18] sm:$0xff]  ;;  %v2704_v23 = vmov 4   ;;  %s2706_s10 = smov 16  }
   0xb   :  { %2563 = vmatmul.msk.bf16.vlgmr.msra.gmra.mxu2 %vm116_vm0, %v2591_v14  ;;  %2567 = vmatmul.msk.bf16.vlgmr.msra.gmra.mxu3 %vm116_vm0, %v2591_v14  ;;  %v53_v18 = vld [vmem:[%s6595_s2 + $0x28] sm:$0xff]  ;;  %v54_v20 = vld [vmem:[%s6595_s2 + $0x30] sm:$0xff]  ;;  %v55_v22 = vld [vmem:[%s6595_s2 + $0x38] sm:$0xff]  ;;  %s2708_s11 = smov 15   ;;  %s2710_s12 = smov 1  }
   0xc   :  { %63 = vperm.xlu0 %2617, %v49_v17   ;;  %v2592_v21 = vld [vmem:[%s6594_s1 + $0x8] sm:$0xff]  ;;  %v2829_v24 = vld [vmem:[%s6596_s3] sm:$0xff]  ;;  %v2844_v26 = vld [vmem:[%s6596_s3 + $0x10] sm:$0xff]  ;;  %s2712_s13 = smov 127   ;;  %s2714_s2 = smov 113  }
   0xd   :  { %v2837_v25 = vld [vmem:[%s6596_s3 + $0x8] sm:$0xff]  ;;  %v2849_v27 = vld [vmem:[%s6596_s3 + $0x18] sm:$0xff]  ;;  %v2855_v28 = vld [vmem:[%s6596_s3 + $0x30] sm:$0xff]  ;;  %s2717_s30 = smov 112   ;;  %s2721_s27 = smov [#allocation2]  }
   0xe   :  { %83 = vperm.xlu2 %2619, %v53_v18   ;;  %v2593_v29 = vld [vmem:[%s6594_s1 + $0x10] sm:$0xff]  ;;  %v2866_v30 = vld [vmem:[%s6596_s3 + $0x20] sm:$0xff]  ;;  %v2871_v31 = vld [vmem:[%s6596_s3 + $0x28] sm:$0xff]  ;;  %s2525_s28 = sshll.u32 %s2721_s27, 4  ;;  %s2527_s8 = sshll.u32 %s6600_s7, 4  ;;  %s2526_s28 = int_to_ptr.vmem [resolvable:$true] %s2525_s28  ;;  %s2528_s8 = int_to_ptr.hbm [resolvable:$true] %s2527_s8 }
   0xf   :  { %v2881_v32 = vld [vmem:[%s6596_s3 + $0x38] sm:$0xff]  ;;  %s2723_s14 = smov 32  }
  0x10   :  { %v2594_v33 = vld [vmem:[%s6594_s1 + $0x18] sm:$0xff]  ;;  %s2705_s1 = smov 17  }
  0x12   :  { %73 = vperm.xlu1 %2618, %v51_v19  }
  0x14   :  { %88 = vperm.xlu0 %2617, %v54_v20  }
  0x16   :  { %2620 = vset.pattern.permute.xlu2 %v2704_v23 }
  0x17   :  { %380 = vperm.xlu2 %2620, %v2829_v24  }
  0x19   :  { %2556 = vmatmul.msk.bf16.gmra.mxu0 %vm116_vm0, %v2592_v21 }
  0x1a   :  { %2560 = vmatmul.msk.bf16.gmra.mxu1 %vm116_vm0, %v2592_v21  ;;  %93 = vperm.xlu1 %2618, %v55_v22  }
  0x1b   :  { %2564 = vmatmul.msk.bf16.gmra.mxu2 %vm116_vm0, %v2592_v21  ;;  %2568 = vmatmul.msk.bf16.gmra.mxu3 %vm116_vm0, %v2592_v21 }
  0x1c   :  { %2621 = vset.pattern.permute.xlu0 %v2704_v23 }
  0x1d   :  { %385 = vperm.xlu0 %2621, %v2837_v25  }
  0x1f   :  { %395 = vperm.xlu2 %2620, %v2849_v27  }
  0x22   :  { %2622 = vset.pattern.permute.xlu1 %v2704_v23 }
  0x23   :  { %390 = vperm.xlu1 %2622, %v2844_v26  }
  0x25   :  { %410 = vperm.xlu0 %2621, %v2855_v28  }
  0x27   :  { %405 = vperm.xlu2 %2620, %v2871_v31  }
  0x29   :  { %2557 = vmatmul.msk.bf16.gmra.mxu0 %vm116_vm0, %v2593_v29 }
  0x2a   :  { %2561 = vmatmul.msk.bf16.gmra.mxu1 %vm116_vm0, %v2593_v29 }
  0x2b   :  { %2565 = vmatmul.msk.bf16.gmra.mxu2 %vm116_vm0, %v2593_v29  ;;  %2569 = vmatmul.msk.bf16.gmra.mxu3 %vm116_vm0, %v2593_v29 }
  0x2c   :  { %400 = vperm.xlu1 %2622, %v2866_v30  }
  0x2f   :  { %2624 = vset.pattern.permute.xlu2 %v6601_v3 }
  0x30   :  { %588 = vperm.xlu2 %2624, %v2837_v25  }
  0x34   :  { %415 = vperm.xlu1 %2622, %v2881_v32  }
  0x38   :  { %600 = vperm.xlu2 %2624, %v2866_v30  }
  0x39   :  { %2558 = vmatmul.msk.bf16.gmra.mxu0 %vm116_vm0, %v2594_v33 }
  0x3a   :  { %2562 = vmatmul.msk.bf16.gmra.mxu1 %vm116_vm0, %v2594_v33 }
  0x3b   :  { %2566 = vmatmul.msk.bf16.gmra.mxu2 %vm116_vm0, %v2594_v33  ;;  %2570 = vmatmul.msk.bf16.gmra.mxu3 %vm116_vm0, %v2594_v33 }
  0x3c   :  { %2623 = vset.pattern.permute.xlu1 %v6601_v3 }
  0x3d   :  { %584 = vperm.xlu1 %2623, %v2829_v24  }
  0x40   :  { %608 = vperm.xlu2 %2624, %v2855_v28  }
  0x45   :  { %596 = vperm.xlu1 %2623, %v2849_v27  }
  0x4d   :  { %604 = vperm.xlu1 %2623, %v2871_v31  }
  0x60   :  { %v2923_v0 = vpop.permute.xlu2 %78 }
  0x68   :  { %v2941_v10 = vpop.permute.xlu2 %83 }
  0x71   :  { %v2951_v18 = vpop.permute.xlu2 %380 }
  0x74   :  { %v59_v34 = vpop.permute.xlu0 %58 }
  0x79   :  { %v2963_v33 = vpop.permute.xlu2 %395 }
  0x7c   :  { %v69_v4 = vpop.permute.xlu1 %68 }
  0x7e   :  { %v64_v51 = vpop.permute.xlu0 %63 }
  0x84   :  { %v74_v23 = vpop.permute.xlu1 %73 }
  0x86   :  { %v138_v35 = vpop.f32.mrf.mxu0 }
  0x87   :  { %v139_v36 = vadd.f32 %v138_v35, %v59_v34  ;;  %v167_v37 = vpop.f32.mrf.mxu1 }
  0x88   :  { %v168_v38 = vadd.f32 %v167_v37, %v59_v34 }
  0x89   :  { %v245_v39 = vmax.f32 %v139_v36, 0.0 }
  0x8a   :  { %v246_v40 = vmax.f32 %v168_v38, 0.0 }
  0x8b   :  { %v2899_v41 = vmin.f32 %v245_v39, 6.0 }
  0x8c   :  { %v2901_v42 = vmin.f32 %v246_v40, 6.0 }
  0x8d   :  { %6937 = vst [vmem:[#allocation5_spill] sm:$0xff] %v2899_v41  ;;  %450 = vrot.lane.b32.xlu2 %v2899_v41, %s2705_s1 }
  0x8e   :  { %6938 = vst [vmem:[#allocation6_spill] sm:$0xff] %v2901_v42  ;;  %v196_v43 = vpop.f32.mrf.mxu2  ;;  %v225_v44 = vpop.f32.mrf.mxu3  ;;  %695 = vrot.lane.b32.xlu0 %v2901_v42, %s2706_s10  ;;  %466 = vrot.lane.b32.xlu1 %v2901_v42, %s2705_s1 }
  0x8f   :  { %v197_v45 = vadd.f32 %v196_v43, %v59_v34  ;;  %v226_v46 = vadd.f32 %v225_v44, %v59_v34  ;;  %v140_v49 = vpop.f32.mrf.mxu0  ;;  %v169_v50 = vpop.f32.mrf.mxu1 }
  0x90   :  { %v141_v54 = vadd.f32 %v140_v49, %v64_v51  ;;  %v170_v55 = vadd.f32 %v169_v50, %v64_v51  ;;  %v2973_v43 = vpop.permute.xlu1 %93  ;;  %v2975_v44 = vpop.permute.xlu2 %405 }
  0x91   :  { %v247_v47 = vmax.f32 %v197_v45, 0.0  ;;  %v248_v48 = vmax.f32 %v226_v46, 0.0 }
  0x92   :  { %v249_v56 = vmax.f32 %v141_v54, 0.0  ;;  %v250_v57 = vmax.f32 %v170_v55, 0.0 }
  0x93   :  { %v2909_v52 = vmin.f32 %v248_v48, 6.0  ;;  %v2911_v53 = vmin.f32 %v247_v47, 6.0 }
  0x94   :  { %v2919_v60 = vmin.f32 %v249_v56, 6.0  ;;  %v2921_v61 = vmin.f32 %v250_v57, 6.0 }
  0x95   :  { %6939 = vst [vmem:[#allocation7_spill] sm:$0xff] %v2909_v52  ;;  %498 = vrot.lane.b32.xlu2 %v2909_v52, %s2705_s1 }
  0x96   :  { %6940 = vst [vmem:[#allocation8_spill] sm:$0xff] %v2911_v53  ;;  %482 = vrot.lane.b32.xlu0 %v2911_v53, %s2705_s1  ;;  %679 = vrot.lane.b32.xlu1 %v2899_v41, %s2706_s10  ;;  %v198_v58 = vpop.f32.mrf.mxu2  ;;  %v227_v59 = vpop.f32.mrf.mxu3 }
  0x97   :  { %6941 = vst [vmem:[#allocation9_spill] sm:$0xff] %v2919_v60  ;;  %v199_v62 = vadd.f32 %v198_v58, %v64_v51  ;;  %v228_v63 = vadd.f32 %v227_v59, %v64_v51  ;;  %v143_v5 = vpop.f32.mrf.mxu0  ;;  %v172_v12 = vpop.f32.mrf.mxu1 }
  0x98   :  { %6942 = vst [vmem:[#allocation10_spill] sm:$0xff] %v2921_v61  ;;  %v144_v6 = vadd.f32 %v143_v5, %v69_v4  ;;  %v173_v13 = vadd.f32 %v172_v12, %v69_v4  ;;  %v2987_v55 = vpop.permute.xlu2 %588  ;;  %v2989_v57 = vpop.permute.xlu1 %390 }
  0x99   :  { %v251_v1 = vmax.f32 %v199_v62, 0.0  ;;  %v252_v2 = vmax.f32 %v228_v63, 0.0  ;;  %6951 = vst [vmem:[#allocation19_spill] sm:$0xff] %v2987_v55 }
  0x9a   :  { %v253_v9 = vmax.f32 %v144_v6, 0.0  ;;  %v254_v16 = vmax.f32 %v173_v13, 0.0  ;;  %6952 = vst [vmem:[#allocation20_spill] sm:$0xff] %v2989_v57 }
  0x9b   :  { %v2931_v7 = vmin.f32 %v251_v1, 6.0  ;;  %v2933_v8 = vmin.f32 %v252_v2, 6.0 }
  0x9c   :  { %v2943_v11 = vmin.f32 %v253_v9, 6.0  ;;  %v2953_v20 = vmin.f32 %v254_v16, 6.0 }
  0x9d   :  { %711 = vrot.lane.b32.xlu2 %v2911_v53, %s2706_s10  ;;  %6943 = vst [vmem:[#allocation11_spill] sm:$0xff] %v2931_v7 }
  0x9e   :  { %452 = vrot.lane.b32.xlu0 %v2919_v60, %s2705_s1  ;;  %697 = vrot.lane.b32.xlu1 %v2921_v61, %s2706_s10  ;;  %6944 = vst [vmem:[#allocation12_spill] sm:$0xff] %v2933_v8  ;;  %v230_v14 = vpop.f32.mrf.mxu3  ;;  %v201_v19 = vpop.f32.mrf.mxu2 }
  0x9f   :  { %6945 = vst [vmem:[#allocation13_spill] sm:$0xff] %v2943_v11  ;;  %v231_v15 = vadd.f32 %v230_v14, %v69_v4  ;;  %v202_v21 = vadd.f32 %v201_v19, %v69_v4  ;;  %v145_v34 = vpop.f32.mrf.mxu0  ;;  %v174_v37 = vpop.f32.mrf.mxu1 }
  0xa0   :  { %6946 = vst [vmem:[#allocation14_spill] sm:$0xff] %v2953_v20  ;;  %v146_v36 = vadd.f32 %v145_v34, %v74_v23  ;;  %v175_v38 = vadd.f32 %v174_v37, %v74_v23  ;;  %v3003_v6 = vpop.permute.xlu1 %400  ;;  %v3007_v13 = vpop.permute.xlu2 %600 }
  0xa1   :  { %v256_v17 = vmax.f32 %v231_v15, 0.0  ;;  %v255_v29 = vmax.f32 %v202_v21, 0.0  ;;  %6956 = vst [vmem:[#allocation24_spill] sm:$0xff] %v3007_v13  ;;  %v2707_v13 = vmov 1  }
  0xa2   :  { %v257_v39 = vmax.f32 %v146_v36, 0.0  ;;  %v258_v40 = vmax.f32 %v175_v38, 0.0  ;;  %2626 = vset.pattern.permute.xlu1 %v2707_v13  ;;  %2625 = vset.pattern.permute.xlu0 %v2707_v13 }
  0xa3   :  { %v2955_v22 = vmin.f32 %v256_v17, 6.0  ;;  %v2965_v35 = vmin.f32 %v255_v29, 6.0  ;;  %2627 = vset.pattern.permute.xlu2 %v2707_v13 }
  0xa4   :  { %v2977_v46 = vmin.f32 %v257_v39, 6.0  ;;  %v2979_v49 = vmin.f32 %v258_v40, 6.0 }
  0xa5   :  { %468 = vrot.lane.b32.xlu2 %v2921_v61, %s2705_s1  ;;  %6947 = vst [vmem:[#allocation15_spill] sm:$0xff] %v2955_v22 }
  0xa6   :  { %500 = vrot.lane.b32.xlu0 %v2933_v8, %s2705_s1  ;;  %484 = vrot.lane.b32.xlu1 %v2931_v7, %s2705_s1  ;;  %6948 = vst [vmem:[#allocation16_spill] sm:$0xff] %v2965_v35  ;;  %v232_v45 = vpop.f32.mrf.mxu3  ;;  %v203_v47 = vpop.f32.mrf.mxu2 }
  0xa7   :  { %6949 = vst [vmem:[#allocation17_spill] sm:$0xff] %v2977_v46  ;;  %v233_v48 = vadd.f32 %v232_v45, %v74_v23  ;;  %v204_v50 = vadd.f32 %v203_v47, %v74_v23  ;;  %v177_v56 = vpop.f32.mrf.mxu1  ;;  %v148_v59 = vpop.f32.mrf.mxu0 }
  0xa8   :  { %6950 = vst [vmem:[#allocation18_spill] sm:$0xff] %v2979_v49  ;;  %v178_v62 = vadd.f32 %v177_v56, %v2923_v0  ;;  %v149_v1 = vadd.f32 %v148_v59, %v2923_v0  ;;  %v3025_v37 = vpop.permute.xlu1 %415  ;;  %v3029_v38 = vpop.permute.xlu2 %608 }
  0xa9   :  { %v260_v51 = vmax.f32 %v233_v48, 0.0  ;;  %v259_v54 = vmax.f32 %v204_v50, 0.0  ;;  %6960 = vst [vmem:[#allocation28_spill] sm:$0xff] %v3025_v37  ;;  %v89_v59 = vpop.permute.xlu0 %88 }
  0xaa   :  { %v262_v2 = vmax.f32 %v178_v62, 0.0  ;;  %v261_v4 = vmax.f32 %v149_v1, 0.0  ;;  %6961 = vst [vmem:[#allocation29_spill] sm:$0xff] %v3029_v38 }
  0xab   :  { %v2991_v58 = vmin.f32 %v260_v51, 6.0  ;;  %v2994_v63 = vmin.f32 %v259_v54, 6.0 }
  0xac   :  { %v3005_v9 = vmin.f32 %v262_v2, 6.0  ;;  %v3009_v14 = vmin.f32 %v261_v4, 6.0 }
  0xad   :  { %681 = vrot.lane.b32.xlu2 %v2919_v60, %s2706_s10  ;;  %6953 = vst [vmem:[#allocation21_spill] sm:$0xff] %v2991_v58 }
  0xae   :  { %713 = vrot.lane.b32.xlu0 %v2931_v7, %s2706_s10  ;;  %454 = vrot.lane.b32.xlu1 %v2943_v11, %s2705_s1  ;;  %6954 = vst [vmem:[#allocation22_spill] sm:$0xff] %v2994_v63  ;;  %v206_v5 = vpop.f32.mrf.mxu2  ;;  %v235_v12 = vpop.f32.mrf.mxu3 }
  0xaf   :  { %6955 = vst [vmem:[#allocation23_spill] sm:$0xff] %v3005_v9  ;;  %v207_v15 = vadd.f32 %v206_v5, %v2923_v0  ;;  %v236_v16 = vadd.f32 %v235_v12, %v2923_v0  ;;  %v179_v21 = vpop.f32.mrf.mxu1  ;;  %v150_v23 = vpop.f32.mrf.mxu0 }
  0xb0   :  { %6957 = vst [vmem:[#allocation25_spill] sm:$0xff] %v3009_v14  ;;  %v180_v29 = vadd.f32 %v179_v21, %v2941_v10  ;;  %v151_v0 = vadd.f32 %v150_v23, %v2941_v10  ;;  %v3041_v56 = vpop.permute.xlu1 %584 }
  0xb1   :  { %v263_v17 = vmax.f32 %v207_v15, 0.0  ;;  %v264_v19 = vmax.f32 %v236_v16, 0.0 }
  0xb2   :  { %v266_v39 = vmax.f32 %v180_v29, 0.0  ;;  %v265_v40 = vmax.f32 %v151_v0, 0.0 }
  0xb3   :  { %v3020_v34 = vmin.f32 %v263_v17, 6.0  ;;  %v3022_v36 = vmin.f32 %v264_v19, 6.0  ;;  %v3063_v19 = vpop.permute.xlu0 %385 }
  0xb4   :  { %v3035_v48 = vmin.f32 %v266_v39, 6.0  ;;  %v3038_v51 = vmin.f32 %v265_v40, 6.0 }
  0xb5   :  { %699 = vrot.lane.b32.xlu2 %v2953_v20, %s2706_s10  ;;  %6958 = vst [vmem:[#allocation26_spill] sm:$0xff] %v3020_v34 }
  0xb6   :  { %470 = vrot.lane.b32.xlu0 %v2953_v20, %s2705_s1  ;;  %502 = vrot.lane.b32.xlu1 %v2955_v22, %s2705_s1  ;;  %6959 = vst [vmem:[#allocation27_spill] sm:$0xff] %v3022_v36  ;;  %v208_v45 = vpop.f32.mrf.mxu2  ;;  %v237_v47 = vpop.f32.mrf.mxu3 }
  0xb7   :  { %6962 = vst [vmem:[#allocation30_spill] sm:$0xff] %v3035_v48  ;;  %v209_v50 = vadd.f32 %v208_v45, %v2941_v10  ;;  %v238_v54 = vadd.f32 %v237_v47, %v2941_v10  ;;  %v153_v4 = vpop.f32.mrf.mxu0  ;;  %v182_v5 = vpop.f32.mrf.mxu1 }
  0xb8   :  { %6963 = vst [vmem:[#allocation31_spill] sm:$0xff] %v3038_v51  ;;  %v154_v10 = vadd.f32 %v153_v4, %v89_v59  ;;  %v183_v16 = vadd.f32 %v182_v5, %v89_v59  ;;  %v3057_v17 = vpop.permute.xlu1 %596 }
  0xb9   :  { %v267_v62 = vmax.f32 %v209_v50, 0.0  ;;  %v268_v2 = vmax.f32 %v238_v54, 0.0  ;;  %6966 = vst [vmem:[#allocation34_spill] sm:$0xff] %v3057_v17 }
  0xba   :  { %v269_v21 = vmax.f32 %v154_v10, 0.0  ;;  %v270_v29 = vmax.f32 %v183_v16, 0.0 }
  0xbb   :  { %v3051_v12 = vmin.f32 %v267_v62, 6.0  ;;  %v3053_v15 = vmin.f32 %v268_v2, 6.0  ;;  %v3077_v54 = vpop.permute.xlu0 %410 }
  0xbc   :  { %v3067_v40 = vmin.f32 %v269_v21, 6.0  ;;  %v3069_v47 = vmin.f32 %v270_v29, 6.0 }
  0xbd   :  { %486 = vrot.lane.b32.xlu2 %v2965_v35, %s2705_s1  ;;  %6964 = vst [vmem:[#allocation32_spill] sm:$0xff] %v3051_v12 }
  0xbe   :  { %683 = vrot.lane.b32.xlu0 %v2943_v11, %s2706_s10  ;;  %715 = vrot.lane.b32.xlu1 %v2965_v35, %s2706_s10  ;;  %6965 = vst [vmem:[#allocation33_spill] sm:$0xff] %v3053_v15  ;;  %v240_v0 = vpop.f32.mrf.mxu3  ;;  %v211_v39 = vpop.f32.mrf.mxu2 }
  0xbf   :  { %6967 = vst [vmem:[#allocation35_spill] sm:$0xff] %v3067_v40  ;;  %v241_v45 = vadd.f32 %v240_v0, %v89_v59  ;;  %v212_v50 = vadd.f32 %v211_v39, %v89_v59  ;;  %v184_v5 = vpop.f32.mrf.mxu1  ;;  %v155_v16 = vpop.f32.mrf.mxu0 }
  0xc0   :  { %6968 = vst [vmem:[#allocation36_spill] sm:$0xff] %v3069_v47  ;;  %v3081_v10 = vpop.permute.xlu1 %604  ;;  %v185_v21 = vadd.f32 %v184_v5, %v2973_v43  ;;  %v156_v0 = vadd.f32 %v155_v16, %v2973_v43 }
  0xc1   :  { %v272_v62 = vmax.f32 %v241_v45, 0.0  ;;  %v271_v4 = vmax.f32 %v212_v50, 0.0  ;;  %6970 = vst [vmem:[#allocation38_spill] sm:$0xff] %v3081_v10 }
  0xc2   :  { %v274_v39 = vmax.f32 %v185_v21, 0.0  ;;  %v273_v50 = vmax.f32 %v156_v0, 0.0 }
  0xc3   :  { %v3083_v59 = vmin.f32 %v272_v62, 6.0  ;;  %v3086_v29 = vmin.f32 %v271_v4, 6.0 }
  0xc4   :  { %v3101_v3 = vmin.f32 %v274_v39, 6.0  ;;  %v3103_v16 = vmin.f32 %v273_v50, 6.0 }
  0xc5   :  { %456 = vrot.lane.b32.xlu2 %v2977_v46, %s2705_s1  ;;  %6971 = vst [vmem:[#allocation39_spill] sm:$0xff] %v3083_v59 }
  0xc6   :  { %701 = vrot.lane.b32.xlu0 %v2979_v49, %s2706_s10  ;;  %472 = vrot.lane.b32.xlu1 %v2979_v49, %s2705_s1  ;;  %6972 = vst [vmem:[#allocation40_spill] sm:$0xff] %v3086_v29  ;;  %v213_v4 = vpop.f32.mrf.mxu2  ;;  %v242_v10 = vpop.f32.mrf.mxu3 }
  0xc7   :  { %6973 = vst [vmem:[#allocation41_spill] sm:$0xff] %v3101_v3  ;;  %v214_v37 = vadd.f32 %v213_v4, %v2973_v43 }
  0xc8   :  { %6974 = vst [vmem:[#allocation42_spill] sm:$0xff] %v3103_v16 }
  0xc9   :  { %v275_v0 = vmax.f32 %v214_v37, 0.0 }
  0xcb   :  { %v3118_v50 = vmin.f32 %v275_v0, 6.0  ;;  %v243_v0 = vadd.f32 %v242_v10, %v2973_v43 }
  0xcd   :  { %504 = vrot.lane.b32.xlu2 %v2991_v58, %s2705_s1  ;;  %6976 = vst [vmem:[#allocation44_spill] sm:$0xff] %v3118_v50 }
  0xce   :  { %488 = vrot.lane.b32.xlu0 %v2994_v63, %s2705_s1  ;;  %685 = vrot.lane.b32.xlu1 %v2977_v46, %s2706_s10 }
  0xd5   :  { %474 = vrot.lane.b32.xlu2 %v3005_v9, %s2705_s1 }
  0xd6   :  { %458 = vrot.lane.b32.xlu0 %v3009_v14, %s2705_s1  ;;  %703 = vrot.lane.b32.xlu1 %v3005_v9, %s2706_s10 }
  0xdd   :  { %687 = vrot.lane.b32.xlu2 %v3009_v14, %s2706_s10 }
  0xde   :  { %506 = vrot.lane.b32.xlu0 %v3022_v36, %s2705_s1  ;;  %490 = vrot.lane.b32.xlu1 %v3020_v34, %s2705_s1 }
  0xe5   :  { %705 = vrot.lane.b32.xlu2 %v3035_v48, %s2706_s10 }
  0xe6   :  { %476 = vrot.lane.b32.xlu0 %v3035_v48, %s2705_s1  ;;  %460 = vrot.lane.b32.xlu1 %v3038_v51, %s2705_s1 }
  0xe7   :  { %v3049_v1 = vpop.permute.xlu2 %450 }
  0xed   :  { %492 = vrot.lane.b32.xlu2 %v3051_v12, %s2705_s1 }
  0xee   :  { %689 = vrot.lane.b32.xlu0 %v3038_v51, %s2706_s10  ;;  %508 = vrot.lane.b32.xlu1 %v3053_v15, %s2705_s1 }
  0xef   :  { %v3065_v23 = vpop.permute.xlu2 %498 }
  0xf5   :  { %462 = vrot.lane.b32.xlu2 %v3067_v40, %s2705_s1 }
  0xf6   :  { %707 = vrot.lane.b32.xlu0 %v3069_v47, %s2706_s10  ;;  %478 = vrot.lane.b32.xlu1 %v3069_v47, %s2705_s1 }
  0xf7   :  { %v3079_v2 = vpop.permute.xlu2 %711 }
  0xf8   :  { %6969 = vst [vmem:[#allocation37_spill] sm:$0xff] %v3079_v2 }
  0xfd   :  { %510 = vrot.lane.b32.xlu2 %v3083_v59, %s2705_s1 }
  0xfe   :  { %494 = vrot.lane.b32.xlu0 %v3086_v29, %s2705_s1  ;;  %691 = vrot.lane.b32.xlu1 %v3067_v40, %s2706_s10 }
  0xff   :  { %v3095_v45 = vpop.permute.xlu2 %468 }
 0x100   :  { %v3097_v62 = vpop.permute.xlu0 %695  ;;  %v3099_v5 = vpop.permute.xlu1 %466 }
 0x105   :  { %480 = vrot.lane.b32.xlu2 %v3101_v3, %s2705_s1 }
 0x106   :  { %464 = vrot.lane.b32.xlu0 %v3103_v16, %s2705_s1  ;;  %709 = vrot.lane.b32.xlu1 %v3101_v3, %s2706_s10 }
 0x107   :  { %v3112_v21 = vpop.permute.xlu2 %681 }
 0x108   :  { %6975 = vst [vmem:[#allocation43_spill] sm:$0xff] %v3112_v21  ;;  %v3114_v57 = vpop.permute.xlu0 %482  ;;  %v3116_v39 = vpop.permute.xlu1 %679  ;;  %v276_v21 = vmax.f32 %v243_v0, 0.0 }
 0x10a   :  { %v3145_v55 = vmin.f32 %v276_v21, 6.0 }
 0x10c   :  { %6982 = vst [vmem:[#allocation50_spill] sm:$0xff] %v3145_v55 }
 0x10d   :  { %693 = vrot.lane.b32.xlu2 %v3103_v16, %s2706_s10 }
 0x10e   :  { %719 = vrot.lane.b32.xlu0 %v3020_v34, %s2706_s10  ;;  %496 = vrot.lane.b32.xlu1 %v3118_v50, %s2705_s1 }
 0x10f   :  { %v3126_v4 = vpop.permute.xlu2 %699 }
 0x110   :  { %6977 = vst [vmem:[#allocation45_spill] sm:$0xff] %v3126_v4  ;;  %v3128_v38 = vpop.permute.xlu0 %452  ;;  %v3130_v37 = vpop.permute.xlu1 %697 }
 0x111   :  { %6978 = vst [vmem:[#allocation46_spill] sm:$0xff] %v3130_v37 }
 0x115   :  { %717 = vrot.lane.b32.xlu2 %v2994_v63, %s2706_s10 }
 0x116   :  { %731 = vrot.lane.b32.xlu0 %v2955_v22, %s2706_s10  ;;  %721 = vrot.lane.b32.xlu1 %v3051_v12, %s2706_s10 }
 0x117   :  { %v3139_v4 = vpop.permute.xlu2 %486 }
 0x118   :  { %6979 = vst [vmem:[#allocation47_spill] sm:$0xff] %v3139_v4  ;;  %v3141_v17 = vpop.permute.xlu0 %500  ;;  %v3143_v37 = vpop.permute.xlu1 %484 }
 0x119   :  { %6980 = vst [vmem:[#allocation48_spill] sm:$0xff] %v3141_v17 }
 0x11a   :  { %6981 = vst [vmem:[#allocation49_spill] sm:$0xff] %v3143_v37 }
 0x11d   :  { %723 = vrot.lane.b32.xlu2 %v3086_v29, %s2706_s10 }
 0x11e   :  { %512 = vrot.lane.b32.xlu0 %v3145_v55, %s2705_s1  ;;  %727 = vrot.lane.b32.xlu1 %v2909_v52, %s2706_s10  ;;  %s2719_s1 = smov 111  }
 0x11f   :  { %v3153_v43 = vpop.permute.xlu2 %456 }
 0x120   :  { %6983 = vst [vmem:[#allocation51_spill] sm:$0xff] %v3153_v43  ;;  %v3155_v13 = vpop.permute.xlu0 %713  ;;  %v3157_v10 = vpop.permute.xlu1 %454 }
 0x121   :  { %6984 = vst [vmem:[#allocation52_spill] sm:$0xff] %v3155_v13 }
 0x122   :  { %6985 = vst [vmem:[#allocation53_spill] sm:$0xff] %v3157_v10 }
 0x125   :  { %729 = vrot.lane.b32.xlu2 %v2933_v8, %s2706_s10 }
 0x126   :  { %725 = vrot.lane.b32.xlu0 %v3118_v50, %s2706_s10  ;;  %733 = vrot.lane.b32.xlu1 %v2991_v58, %s2706_s10 }
 0x127   :  { %v3165_v21 = vpop.permute.xlu2 %504 }
 0x128   :  { %6986 = vst [vmem:[#allocation54_spill] sm:$0xff] %v3165_v21  ;;  %v3167_v0 = vpop.permute.xlu0 %470  ;;  %v3169_v4 = vpop.permute.xlu1 %502 }
 0x129   :  { %6987 = vst [vmem:[#allocation55_spill] sm:$0xff] %v3167_v0 }
 0x12a   :  { %6988 = vst [vmem:[#allocation56_spill] sm:$0xff] %v3169_v4 }
 0x12d   :  { %735 = vrot.lane.b32.xlu2 %v3022_v36, %s2706_s10 }
 0x12e   :  { %737 = vrot.lane.b32.xlu0 %v3053_v15, %s2706_s10  ;;  %739 = vrot.lane.b32.xlu1 %v3083_v59, %s2706_s10 }
 0x12f   :  { %v3177_v10 = vpop.permute.xlu2 %474 }
 0x130   :  { %6989 = vst [vmem:[#allocation57_spill] sm:$0xff] %v3177_v10  ;;  %v3179_v13 = vpop.permute.xlu0 %683  ;;  %v3181_v43 = vpop.permute.xlu1 %715 }
 0x131   :  { %6990 = vst [vmem:[#allocation58_spill] sm:$0xff] %v3179_v13 }
 0x132   :  { %6991 = vst [vmem:[#allocation59_spill] sm:$0xff] %v3181_v43 }
 0x135   :  { %741 = vrot.lane.b32.xlu2 %v3145_v55, %s2706_s10 }
 0x136   :  { %809 = vperm.xlu0 %2625, %v2829_v24   ;;  %813 = vperm.xlu1 %2626, %v2837_v25  }
 0x137   :  { %v3187_v4 = vpop.permute.xlu2 %687 }
 0x138   :  { %6992 = vst [vmem:[#allocation60_spill] sm:$0xff] %v3187_v4  ;;  %v3189_v0 = vpop.permute.xlu0 %701  ;;  %v3191_v21 = vpop.permute.xlu1 %472 }
 0x139   :  { %6993 = vst [vmem:[#allocation61_spill] sm:$0xff] %v3189_v0 }
 0x13a   :  { %6994 = vst [vmem:[#allocation62_spill] sm:$0xff] %v3191_v21 }
 0x13d   :  { %817 = vperm.xlu2 %2627, %v2844_v26  }
 0x13e   :  { %829 = vperm.xlu0 %2625, %v2871_v31   ;;  %821 = vperm.xlu1 %2626, %v2849_v27  }
 0x13f   :  { %v3196_v13 = vpop.permute.xlu2 %705 }
 0x140   :  { %6995 = vst [vmem:[#allocation63_spill] sm:$0xff] %v3196_v13  ;;  %v3198_v43 = vpop.permute.xlu0 %488  ;;  %v3200_v10 = vpop.permute.xlu1 %685 }
 0x141   :  { %6996 = vst [vmem:[#allocation64_spill] sm:$0xff] %v3198_v43 }
 0x142   :  { %6997 = vst [vmem:[#allocation65_spill] sm:$0xff] %v3200_v10 }
 0x145   :  { %825 = vperm.xlu2 %2627, %v2866_v30  }
 0x146   :  { %904 = vrot.lane.b32.xlu0 %v2899_v41, %s2708_s11  ;;  %833 = vperm.xlu1 %2626, %v2855_v28  }
 0x147   :  { %v3206_v4 = vpop.permute.xlu2 %492 }
 0x148   :  { %6998 = vst [vmem:[#allocation66_spill] sm:$0xff] %v3206_v4  ;;  %v3208_v0 = vpop.permute.xlu0 %458  ;;  %v3210_v21 = vpop.permute.xlu1 %703 }
 0x149   :  { %6999 = vst [vmem:[#allocation67_spill] sm:$0xff] %v3208_v0 }
 0x14a   :  { %7000 = vst [vmem:[#allocation68_spill] sm:$0xff] %v3210_v21 }
 0x14d   :  { %837 = vperm.xlu2 %2627, %v2881_v32  }
 0x14e   :  { %910 = vrot.lane.b32.xlu0 %v2977_v46, %s2708_s11  ;;  %906 = vrot.lane.b32.xlu1 %v2919_v60, %s2708_s11 }
 0x14f   :  { %v3217_v13 = vpop.permute.xlu2 %462 }
 0x150   :  { %7001 = vst [vmem:[#allocation69_spill] sm:$0xff] %v3217_v13  ;;  %v3219_v10 = vpop.permute.xlu0 %506  ;;  %v3221_v43 = vpop.permute.xlu1 %490 }
 0x151   :  { %7002 = vst [vmem:[#allocation70_spill] sm:$0xff] %v3219_v10 }
 0x152   :  { %7003 = vst [vmem:[#allocation71_spill] sm:$0xff] %v3221_v43 }
 0x155   :  { %908 = vrot.lane.b32.xlu2 %v2943_v11, %s2708_s11 }
 0x156   :  { %916 = vrot.lane.b32.xlu0 %v3067_v40, %s2708_s11  ;;  %912 = vrot.lane.b32.xlu1 %v3009_v14, %s2708_s11 }
 0x157   :  { %v3229_v21 = vpop.permute.xlu2 %510 }
 0x158   :  { %7004 = vst [vmem:[#allocation72_spill] sm:$0xff] %v3229_v21  ;;  %v3231_v4 = vpop.permute.xlu0 %476  ;;  %v3233_v0 = vpop.permute.xlu1 %460 }
 0x159   :  { %7005 = vst [vmem:[#allocation73_spill] sm:$0xff] %v3231_v4 }
 0x15a   :  { %7006 = vst [vmem:[#allocation74_spill] sm:$0xff] %v3233_v0 }
 0x15d   :  { %914 = vrot.lane.b32.xlu2 %v3038_v51, %s2708_s11 }
 0x15e   :  { %922 = vrot.lane.b32.xlu0 %v2921_v61, %s2708_s11  ;;  %918 = vrot.lane.b32.xlu1 %v3103_v16, %s2708_s11 }
 0x15f   :  { %v3241_v13 = vpop.permute.xlu2 %480 }
 0x160   :  { %7007 = vst [vmem:[#allocation75_spill] sm:$0xff] %v3241_v13  ;;  %v3243_v43 = vpop.permute.xlu0 %689  ;;  %v3245_v10 = vpop.permute.xlu1 %508 }
 0x161   :  { %7008 = vst [vmem:[#allocation76_spill] sm:$0xff] %v3243_v43 }
 0x162   :  { %7009 = vst [vmem:[#allocation77_spill] sm:$0xff] %v3245_v10 }
 0x165   :  { %920 = vrot.lane.b32.xlu2 %v2901_v42, %s2708_s11 }
 0x166   :  { %928 = vrot.lane.b32.xlu0 %v3005_v9, %s2708_s11  ;;  %924 = vrot.lane.b32.xlu1 %v2953_v20, %s2708_s11 }
 0x167   :  { %v3253_v0 = vpop.permute.xlu2 %693 }
 0x168   :  { %7010 = vst [vmem:[#allocation78_spill] sm:$0xff] %v3253_v0  ;;  %v3255_v4 = vpop.permute.xlu0 %707  ;;  %v3257_v21 = vpop.permute.xlu1 %478 }
 0x169   :  { %7011 = vst [vmem:[#allocation79_spill] sm:$0xff] %v3255_v4 }
 0x16a   :  { %7012 = vst [vmem:[#allocation80_spill] sm:$0xff] %v3257_v21 }
 0x16d   :  { %926 = vrot.lane.b32.xlu2 %v2979_v49, %s2708_s11 }
 0x16e   :  { %934 = vrot.lane.b32.xlu0 %v3101_v3, %s2708_s11  ;;  %930 = vrot.lane.b32.xlu1 %v3035_v48, %s2708_s11 }
 0x16f   :  { %v3265_v13 = vpop.permute.xlu2 %717 }
 0x170   :  { %7013 = vst [vmem:[#allocation81_spill] sm:$0xff] %v3265_v13  ;;  %v3267_v43 = vpop.permute.xlu0 %494  ;;  %v3269_v10 = vpop.permute.xlu1 %691  ;;  %v2709_v13 = vmov 2  }
 0x171   :  { %7014 = vst [vmem:[#allocation82_spill] sm:$0xff] %v3267_v43  ;;  %2629 = vset.pattern.permute.xlu0 %v2709_v13  ;;  %2630 = vset.pattern.permute.xlu1 %v2709_v13 }
 0x172   :  { %7015 = vst [vmem:[#allocation83_spill] sm:$0xff] %v3269_v10  ;;  %2628 = vset.pattern.permute.xlu2 %v2709_v13 }
 0x175   :  { %932 = vrot.lane.b32.xlu2 %v3069_v47, %s2708_s11 }
 0x176   :  { %940 = vrot.lane.b32.xlu0 %v2965_v35, %s2708_s11  ;;  %936 = vrot.lane.b32.xlu1 %v2911_v53, %s2708_s11 }
 0x177   :  { %v3277_v0 = vpop.permute.xlu2 %723 }
 0x178   :  { %7016 = vst [vmem:[#allocation84_spill] sm:$0xff] %v3277_v0  ;;  %v3279_v4 = vpop.permute.xlu0 %464  ;;  %v3281_v21 = vpop.permute.xlu1 %709 }
 0x179   :  { %7017 = vst [vmem:[#allocation85_spill] sm:$0xff] %v3279_v4 }
 0x17a   :  { %7018 = vst [vmem:[#allocation86_spill] sm:$0xff] %v3281_v21 }
 0x17d   :  { %938 = vrot.lane.b32.xlu2 %v2931_v7, %s2708_s11 }
 0x17e   :  { %946 = vrot.lane.b32.xlu0 %v3051_v12, %s2708_s11  ;;  %942 = vrot.lane.b32.xlu1 %v2994_v63, %s2708_s11 }
 0x17f   :  { %v3289_v10 = vpop.permute.xlu2 %729 }
 0x180   :  { %7019 = vst [vmem:[#allocation87_spill] sm:$0xff] %v3289_v10  ;;  %v3291_v0 = vpop.permute.xlu0 %719  ;;  %v3293_v4 = vpop.permute.xlu1 %496 }
 0x181   :  { %7020 = vst [vmem:[#allocation88_spill] sm:$0xff] %v3291_v0 }
 0x182   :  { %7021 = vst [vmem:[#allocation89_spill] sm:$0xff] %v3293_v4 }
 0x185   :  { %944 = vrot.lane.b32.xlu2 %v3020_v34, %s2708_s11 }
 0x186   :  { %952 = vrot.lane.b32.xlu0 %v2909_v52, %s2708_s11  ;;  %948 = vrot.lane.b32.xlu1 %v3086_v29, %s2708_s11 }
 0x187   :  { %v3301_v13 = vpop.permute.xlu2 %735 }
 0x188   :  { %7022 = vst [vmem:[#allocation90_spill] sm:$0xff] %v3301_v13  ;;  %v3303_v21 = vpop.permute.xlu0 %731  ;;  %v3305_v43 = vpop.permute.xlu1 %721 }
 0x189   :  { %7023 = vst [vmem:[#allocation91_spill] sm:$0xff] %v3303_v21 }
 0x18a   :  { %7024 = vst [vmem:[#allocation92_spill] sm:$0xff] %v3305_v43 }
 0x18d   :  { %950 = vrot.lane.b32.xlu2 %v3118_v50, %s2708_s11 }
 0x18e   :  { %958 = vrot.lane.b32.xlu0 %v2991_v58, %s2708_s11  ;;  %954 = vrot.lane.b32.xlu1 %v2933_v8, %s2708_s11 }
 0x18f   :  { %v3313_v4 = vpop.permute.xlu2 %741 }
 0x190   :  { %7025 = vst [vmem:[#allocation93_spill] sm:$0xff] %v3313_v4  ;;  %v3315_v0 = vpop.permute.xlu0 %512  ;;  %v3317_v10 = vpop.permute.xlu1 %727 }
 0x191   :  { %7026 = vst [vmem:[#allocation94_spill] sm:$0xff] %v3315_v0 }
 0x192   :  { %7027 = vst [vmem:[#allocation95_spill] sm:$0xff] %v3317_v10 }
 0x195   :  { %956 = vrot.lane.b32.xlu2 %v2955_v22, %s2708_s11 }
 0x196   :  { %964 = vrot.lane.b32.xlu0 %v3083_v59, %s2708_s11  ;;  %960 = vrot.lane.b32.xlu1 %v3022_v36, %s2708_s11 }
 0x197   :  { %v3325_v21 = vpop.permute.xlu2 %817 }
 0x198   :  { %7028 = vst [vmem:[#allocation96_spill] sm:$0xff] %v3325_v21  ;;  %v3327_v13 = vpop.permute.xlu0 %725  ;;  %v3329_v43 = vpop.permute.xlu1 %733 }
 0x199   :  { %7029 = vst [vmem:[#allocation97_spill] sm:$0xff] %v3327_v13 }
 0x19a   :  { %7030 = vst [vmem:[#allocation98_spill] sm:$0xff] %v3329_v43 }
 0x19d   :  { %962 = vrot.lane.b32.xlu2 %v3053_v15, %s2708_s11 }
 0x19e   :  { %1042 = vperm.xlu0 %2629, %v2837_v25   ;;  %966 = vrot.lane.b32.xlu1 %v3145_v55, %s2708_s11 }
 0x19f   :  { %v3336_v4 = vpop.permute.xlu2 %825 }
 0x1a0   :  { %7031 = vst [vmem:[#allocation99_spill] sm:$0xff] %v3336_v4  ;;  %v3338_v0 = vpop.permute.xlu0 %737  ;;  %v3340_v37 = vpop.permute.xlu1 %739 }
 0x1a1   :  { %7032 = vst [vmem:[#allocation100_spill] sm:$0xff] %v3338_v0 }
 0x1a2   :  { %7033 = vst [vmem:[#allocation101_spill] sm:$0xff] %v3340_v37 }
 0x1a5   :  { %1038 = vperm.xlu2 %2628, %v2829_v24  }
 0x1a6   :  { %1062 = vperm.xlu0 %2629, %v2855_v28   ;;  %1046 = vperm.xlu1 %2630, %v2844_v26  }
 0x1a7   :  { %v3345_v21 = vpop.permute.xlu2 %837 }
 0x1a8   :  { %7034 = vst [vmem:[#allocation102_spill] sm:$0xff] %v3345_v21  ;;  %v3347_v13 = vpop.permute.xlu0 %809  ;;  %v3349_v43 = vpop.permute.xlu1 %813 }
 0x1a9   :  { %7035 = vst [vmem:[#allocation103_spill] sm:$0xff] %v3347_v13 }
 0x1aa   :  { %7036 = vst [vmem:[#allocation104_spill] sm:$0xff] %v3349_v43 }
 0x1ad   :  { %1050 = vperm.xlu2 %2628, %v2849_v27  }
 0x1ae   :  { %1135 = vrot.lane.b32.xlu0 %v2919_v60, %s2710_s12  ;;  %1054 = vperm.xlu1 %2630, %v2866_v30  }
 0x1af   :  { %v3355_v37 = vpop.permute.xlu2 %908 }
 0x1b0   :  { %7037 = vst [vmem:[#allocation105_spill] sm:$0xff] %v3355_v37  ;;  %v3357_v4 = vpop.permute.xlu0 %829  ;;  %v3359_v0 = vpop.permute.xlu1 %821 }
 0x1b1   :  { %7038 = vst [vmem:[#allocation106_spill] sm:$0xff] %v3357_v4 }
 0x1b2   :  { %7039 = vst [vmem:[#allocation107_spill] sm:$0xff] %v3359_v0 }
 0x1b5   :  { %1058 = vperm.xlu2 %2628, %v2871_v31  }
 0x1b6   :  { %1141 = vrot.lane.b32.xlu0 %v3009_v14, %s2710_s12  ;;  %1066 = vperm.xlu1 %2630, %v2881_v32  }
 0x1b7   :  { %v3365_v21 = vpop.permute.xlu2 %914 }
 0x1b8   :  { %7040 = vst [vmem:[#allocation108_spill] sm:$0xff] %v3365_v21  ;;  %v3367_v43 = vpop.permute.xlu0 %904  ;;  %v3369_v17 = vpop.permute.xlu1 %833 }
 0x1b9   :  { %7041 = vst [vmem:[#allocation109_spill] sm:$0xff] %v3367_v43 }
 0x1ba   :  { %7042 = vst [vmem:[#allocation110_spill] sm:$0xff] %v3369_v17 }
 0x1bd   :  { %1133 = vrot.lane.b32.xlu2 %v2899_v41, %s2710_s12 }
 0x1be   :  { %1147 = vrot.lane.b32.xlu0 %v3103_v16, %s2710_s12  ;;  %1137 = vrot.lane.b32.xlu1 %v2943_v11, %s2710_s12 }
 0x1bf   :  { %v3377_v37 = vpop.permute.xlu2 %920 }
 0x1c0   :  { %7043 = vst [vmem:[#allocation111_spill] sm:$0xff] %v3377_v37  ;;  %v3379_v0 = vpop.permute.xlu0 %910  ;;  %v3381_v4 = vpop.permute.xlu1 %906 }
 0x1c1   :  { %7044 = vst [vmem:[#allocation112_spill] sm:$0xff] %v3379_v0 }
 0x1c2   :  { %7045 = vst [vmem:[#allocation113_spill] sm:$0xff] %v3381_v4 }
 0x1c5   :  { %1139 = vrot.lane.b32.xlu2 %v2977_v46, %s2710_s12 }
 0x1c6   :  { %1153 = vrot.lane.b32.xlu0 %v2953_v20, %s2710_s12  ;;  %1143 = vrot.lane.b32.xlu1 %v3038_v51, %s2710_s12 }
 0x1c7   :  { %v3389_v21 = vpop.permute.xlu2 %926 }
 0x1c8   :  { %7046 = vst [vmem:[#allocation114_spill] sm:$0xff] %v3389_v21  ;;  %v3391_v17 = vpop.permute.xlu0 %916  ;;  %v3393_v13 = vpop.permute.xlu1 %912 }
 0x1c9   :  { %7047 = vst [vmem:[#allocation115_spill] sm:$0xff] %v3391_v17 }
 0x1ca   :  { %7048 = vst [vmem:[#allocation116_spill] sm:$0xff] %v3393_v13 }
 0x1cd   :  { %1145 = vrot.lane.b32.xlu2 %v3067_v40, %s2710_s12 }
 0x1ce   :  { %1159 = vrot.lane.b32.xlu0 %v3035_v48, %s2710_s12  ;;  %1149 = vrot.lane.b32.xlu1 %v2901_v42, %s2710_s12 }
 0x1cf   :  { %v3401_v0 = vpop.permute.xlu2 %932 }
 0x1d0   :  { %7049 = vst [vmem:[#allocation117_spill] sm:$0xff] %v3401_v0  ;;  %v3403_v4 = vpop.permute.xlu0 %922  ;;  %v3405_v37 = vpop.permute.xlu1 %918 }
 0x1d1   :  { %7050 = vst [vmem:[#allocation118_spill] sm:$0xff] %v3403_v4 }
 0x1d2   :  { %7051 = vst [vmem:[#allocation119_spill] sm:$0xff] %v3405_v37 }
 0x1d5   :  { %1151 = vrot.lane.b32.xlu2 %v2921_v61, %s2710_s12 }
 0x1d6   :  { %1165 = vrot.lane.b32.xlu0 %v2911_v53, %s2710_s12  ;;  %1155 = vrot.lane.b32.xlu1 %v2979_v49, %s2710_s12 }
 0x1d7   :  { %v3413_v13 = vpop.permute.xlu2 %938 }
 0x1d8   :  { %7052 = vst [vmem:[#allocation120_spill] sm:$0xff] %v3413_v13  ;;  %v3415_v17 = vpop.permute.xlu0 %928  ;;  %v3417_v21 = vpop.permute.xlu1 %924  ;;  %v2711_v13 = vmov 3  }
 0x1d9   :  { %7053 = vst [vmem:[#allocation121_spill] sm:$0xff] %v3415_v17  ;;  %2633 = vset.pattern.permute.xlu0 %v2711_v13  ;;  %2631 = vset.pattern.permute.xlu1 %v2711_v13 }
 0x1da   :  { %7054 = vst [vmem:[#allocation122_spill] sm:$0xff] %v3417_v21  ;;  %2632 = vset.pattern.permute.xlu2 %v2711_v13 }
 0x1dd   :  { %1157 = vrot.lane.b32.xlu2 %v3005_v9, %s2710_s12 }
 0x1de   :  { %1171 = vrot.lane.b32.xlu0 %v2994_v63, %s2710_s12  ;;  %1161 = vrot.lane.b32.xlu1 %v3069_v47, %s2710_s12 }
 0x1df   :  { %v3425_v37 = vpop.permute.xlu2 %944 }
 0x1e0   :  { %7055 = vst [vmem:[#allocation123_spill] sm:$0xff] %v3425_v37  ;;  %v3427_v0 = vpop.permute.xlu0 %934  ;;  %v3429_v4 = vpop.permute.xlu1 %930 }
 0x1e1   :  { %7056 = vst [vmem:[#allocation124_spill] sm:$0xff] %v3427_v0 }
 0x1e2   :  { %7057 = vst [vmem:[#allocation125_spill] sm:$0xff] %v3429_v4 }
 0x1e5   :  { %1163 = vrot.lane.b32.xlu2 %v3101_v3, %s2710_s12 }
 0x1e6   :  { %1177 = vrot.lane.b32.xlu0 %v3086_v29, %s2710_s12  ;;  %1167 = vrot.lane.b32.xlu1 %v2931_v7, %s2710_s12 }
 0x1e7   :  { %v3437_v21 = vpop.permute.xlu2 %950 }
 0x1e8   :  { %7058 = vst [vmem:[#allocation126_spill] sm:$0xff] %v3437_v21  ;;  %v3439_v37 = vpop.permute.xlu0 %940  ;;  %v3441_v0 = vpop.permute.xlu1 %936 }
 0x1e9   :  { %7059 = vst [vmem:[#allocation127_spill] sm:$0xff] %v3439_v37 }
 0x1ea   :  { %7060 = vst [vmem:[#allocation128_spill] sm:$0xff] %v3441_v0 }
 0x1ed   :  { %1169 = vrot.lane.b32.xlu2 %v2965_v35, %s2710_s12 }
 0x1ee   :  { %1183 = vrot.lane.b32.xlu0 %v2933_v8, %s2710_s12  ;;  %1173 = vrot.lane.b32.xlu1 %v3020_v34, %s2710_s12 }
 0x1ef   :  { %v3449_v17 = vpop.permute.xlu2 %956 }
 0x1f0   :  { %7061 = vst [vmem:[#allocation129_spill] sm:$0xff] %v3449_v17  ;;  %v3451_v4 = vpop.permute.xlu0 %946  ;;  %v3453_v43 = vpop.permute.xlu1 %942 }
 0x1f1   :  { %7062 = vst [vmem:[#allocation130_spill] sm:$0xff] %v3451_v4 }
 0x1f2   :  { %7063 = vst [vmem:[#allocation131_spill] sm:$0xff] %v3453_v43 }
 0x1f5   :  { %1175 = vrot.lane.b32.xlu2 %v3051_v12, %s2710_s12 }
 0x1f6   :  { %1189 = vrot.lane.b32.xlu0 %v3022_v36, %s2710_s12  ;;  %1179 = vrot.lane.b32.xlu1 %v3118_v50, %s2710_s12 }
 0x1f7   :  { %v3461_v13 = vpop.permute.xlu2 %962 }
 0x1f8   :  { %7064 = vst [vmem:[#allocation132_spill] sm:$0xff] %v3461_v13  ;;  %v3463_v21 = vpop.permute.xlu0 %952  ;;  %v3465_v37 = vpop.permute.xlu1 %948 }
 0x1f9   :  { %7065 = vst [vmem:[#allocation133_spill] sm:$0xff] %v3463_v21 }
 0x1fa   :  { %7066 = vst [vmem:[#allocation134_spill] sm:$0xff] %v3465_v37 }
 0x1fd   :  { %1181 = vrot.lane.b32.xlu2 %v2909_v52, %s2710_s12 }
 0x1fe   :  { %1195 = vrot.lane.b32.xlu0 %v3145_v55, %s2710_s12  ;;  %1185 = vrot.lane.b32.xlu1 %v2955_v22, %s2710_s12 }
 0x1ff   :  { %v3473_v17 = vpop.permute.xlu2 %1038 }
 0x200   :  { %v3475_v43 = vpop.permute.xlu0 %958  ;;  %v3477_v4 = vpop.permute.xlu1 %954 }
 0x201   :  { %7067 = vst [vmem:[#allocation135_spill] sm:$0xff] %v3475_v43 }
 0x202   :  { %7068 = vst [vmem:[#allocation136_spill] sm:$0xff] %v3477_v4 }
 0x205   :  { %1187 = vrot.lane.b32.xlu2 %v2991_v58, %s2710_s12 }
 0x206   :  { %1271 = vperm.xlu0 %2633, %v2844_v26   ;;  %1191 = vrot.lane.b32.xlu1 %v3053_v15, %s2710_s12 }
 0x207   :  { %v3484_v37 = vpop.permute.xlu2 %1050 }
 0x208   :  { %7069 = vst [vmem:[#allocation137_spill] sm:$0xff] %v3484_v37  ;;  %v3486_v13 = vpop.permute.xlu0 %964  ;;  %v3488_v0 = vpop.permute.xlu1 %960 }
 0x209   :  { %7070 = vst [vmem:[#allocation138_spill] sm:$0xff] %v3486_v13 }
 0x20a   :  { %7071 = vst [vmem:[#allocation139_spill] sm:$0xff] %v3488_v0 }
 0x20d   :  { %1193 = vrot.lane.b32.xlu2 %v3083_v59, %s2710_s12 }
 0x20e   :  { %1291 = vperm.xlu0 %2633, %v2881_v32   ;;  %1263 = vperm.xlu1 %2631, %v2829_v24  }
 0x20f   :  { %v3494_v43 = vpop.permute.xlu2 %1058 }
 0x210   :  { %7072 = vst [vmem:[#allocation140_spill] sm:$0xff] %v3494_v43  ;;  %v3496_v4 = vpop.permute.xlu0 %1042  ;;  %v3498_v26 = vpop.permute.xlu1 %966 }
 0x211   :  { %7073 = vst [vmem:[#allocation141_spill] sm:$0xff] %v3496_v4 }
 0x212   :  { %7074 = vst [vmem:[#allocation142_spill] sm:$0xff] %v3498_v26 }
 0x215   :  { %1267 = vperm.xlu2 %2632, %v2837_v25  }
 0x216   :  { %1362 = vrot.lane.b32.xlu0 %v2943_v11, %s2712_s13  ;;  %1275 = vperm.xlu1 %2631, %v2849_v27  }
 0x217   :  { %v3504_v0 = vpop.permute.xlu2 %1133 }
 0x218   :  { %7075 = vst [vmem:[#allocation143_spill] sm:$0xff] %v3504_v0  ;;  %v3506_v37 = vpop.permute.xlu0 %1062  ;;  %v3508_v32 = vpop.permute.xlu1 %1046 }
 0x219   :  { %7076 = vst [vmem:[#allocation144_spill] sm:$0xff] %v3506_v37 }
 0x21a   :  { %7077 = vst [vmem:[#allocation145_spill] sm:$0xff] %v3508_v32 }
 0x21d   :  { %1279 = vperm.xlu2 %2632, %v2866_v30  }
 0x21e   :  { %1368 = vrot.lane.b32.xlu0 %v3038_v51, %s2712_s13  ;;  %1283 = vperm.xlu1 %2631, %v2871_v31  }
 0x21f   :  { %v3514_v24 = vpop.permute.xlu2 %1139 }
 0x220   :  { %7078 = vst [vmem:[#allocation146_spill] sm:$0xff] %v3514_v24  ;;  %v3516_v25 = vpop.permute.xlu0 %1135  ;;  %v3518_v26 = vpop.permute.xlu1 %1054 }
 0x221   :  { %7079 = vst [vmem:[#allocation147_spill] sm:$0xff] %v3516_v25 }
 0x222   :  { %7080 = vst [vmem:[#allocation148_spill] sm:$0xff] %v3518_v26 }
 0x225   :  { %1287 = vperm.xlu2 %2632, %v2855_v28  }
 0x226   :  { %1374 = vrot.lane.b32.xlu0 %v2901_v42, %s2712_s13  ;;  %1358 = vrot.lane.b32.xlu1 %v2899_v41, %s2712_s13 }
 0x227   :  { %v3525_v27 = vpop.permute.xlu2 %1145 }
 0x228   :  { %7081 = vst [vmem:[#allocation149_spill] sm:$0xff] %v3525_v27  ;;  %v3527_v30 = vpop.permute.xlu0 %1141  ;;  %v3529_v32 = vpop.permute.xlu1 %1066 }
 0x229   :  { %7082 = vst [vmem:[#allocation150_spill] sm:$0xff] %v3527_v30 }
 0x22a   :  { %7083 = vst [vmem:[#allocation151_spill] sm:$0xff] %v3529_v32 }
 0x22d   :  { %1360 = vrot.lane.b32.xlu2 %v2919_v60, %s2712_s13 }
 0x22e   :  { %1380 = vrot.lane.b32.xlu0 %v2979_v49, %s2712_s13  ;;  %1364 = vrot.lane.b32.xlu1 %v2977_v46, %s2712_s13 }
 0x22f   :  { %v3537_v28 = vpop.permute.xlu2 %1151 }
 0x230   :  { %7084 = vst [vmem:[#allocation152_spill] sm:$0xff] %v3537_v28  ;;  %v3539_v31 = vpop.permute.xlu0 %1147  ;;  %v3541_v26 = vpop.permute.xlu1 %1137 }
 0x231   :  { %7085 = vst [vmem:[#allocation153_spill] sm:$0xff] %v3539_v31 }
 0x232   :  { %7086 = vst [vmem:[#allocation154_spill] sm:$0xff] %v3541_v26 }
 0x235   :  { %1366 = vrot.lane.b32.xlu2 %v3009_v14, %s2712_s13 }
 0x236   :  { %1386 = vrot.lane.b32.xlu0 %v3069_v47, %s2712_s13  ;;  %1370 = vrot.lane.b32.xlu1 %v3067_v40, %s2712_s13 }
 0x237   :  { %v3549_v32 = vpop.permute.xlu2 %1157 }
 0x238   :  { %7087 = vst [vmem:[#allocation155_spill] sm:$0xff] %v3549_v32  ;;  %v3551_v30 = vpop.permute.xlu0 %1153  ;;  %v3553_v27 = vpop.permute.xlu1 %1143  ;;  %v2713_v32 = vmov 5  }
 0x239   :  { %7088 = vst [vmem:[#allocation156_spill] sm:$0xff] %v3551_v30  ;;  %2634 = vset.pattern.permute.xlu0 %v2713_v32  ;;  %2635 = vset.pattern.permute.xlu1 %v2713_v32 }
 0x23a   :  { %7089 = vst [vmem:[#allocation157_spill] sm:$0xff] %v3553_v27  ;;  %2636 = vset.pattern.permute.xlu2 %v2713_v32 }
 0x23d   :  { %1372 = vrot.lane.b32.xlu2 %v3103_v16, %s2712_s13 }
 0x23e   :  { %1392 = vrot.lane.b32.xlu0 %v2931_v7, %s2712_s13  ;;  %1376 = vrot.lane.b32.xlu1 %v2921_v61, %s2712_s13 }
 0x23f   :  { %v3561_v31 = vpop.permute.xlu2 %1163 }
 0x240   :  { %7090 = vst [vmem:[#allocation158_spill] sm:$0xff] %v3561_v31  ;;  %v3563_v26 = vpop.permute.xlu0 %1159  ;;  %v3565_v24 = vpop.permute.xlu1 %1149 }
 0x241   :  { %7091 = vst [vmem:[#allocation159_spill] sm:$0xff] %v3563_v26 }
 0x242   :  { %7092 = vst [vmem:[#allocation160_spill] sm:$0xff] %v3565_v24 }
 0x245   :  { %1378 = vrot.lane.b32.xlu2 %v2953_v20, %s2712_s13 }
 0x246   :  { %1398 = vrot.lane.b32.xlu0 %v3020_v34, %s2712_s13  ;;  %1382 = vrot.lane.b32.xlu1 %v3005_v9, %s2712_s13 }
 0x247   :  { %v3573_v30 = vpop.permute.xlu2 %1169 }
 0x248   :  { %7093 = vst [vmem:[#allocation161_spill] sm:$0xff] %v3573_v30  ;;  %v3575_v31 = vpop.permute.xlu0 %1165  ;;  %v3577_v27 = vpop.permute.xlu1 %1155 }
 0x249   :  { %7094 = vst [vmem:[#allocation162_spill] sm:$0xff] %v3575_v31 }
 0x24a   :  { %7095 = vst [vmem:[#allocation163_spill] sm:$0xff] %v3577_v27 }
 0x24d   :  { %1384 = vrot.lane.b32.xlu2 %v3035_v48, %s2712_s13 }
 0x24e   :  { %1404 = vrot.lane.b32.xlu0 %v3118_v50, %s2712_s13  ;;  %1388 = vrot.lane.b32.xlu1 %v3101_v3, %s2712_s13  ;;  %v3836_v50 = vmul.f32 %v3063_v19, %v2919_v60 }
 0x24f   :  { %v3585_v32 = vpop.permute.xlu2 %1175 }
 0x250   :  { %7096 = vst [vmem:[#allocation164_spill] sm:$0xff] %v3585_v32  ;;  %v3587_v26 = vpop.permute.xlu0 %1171  ;;  %v3589_v37 = vpop.permute.xlu1 %1161 }
 0x251   :  { %7097 = vst [vmem:[#allocation165_spill] sm:$0xff] %v3587_v26 }
 0x252   :  { %7098 = vst [vmem:[#allocation166_spill] sm:$0xff] %v3589_v37 }
 0x255   :  { %1390 = vrot.lane.b32.xlu2 %v2911_v53, %s2712_s13 }
 0x256   :  { %1410 = vrot.lane.b32.xlu0 %v2955_v22, %s2712_s13  ;;  %1394 = vrot.lane.b32.xlu1 %v2965_v35, %s2712_s13 }
 0x257   :  { %v3597_v30 = vpop.permute.xlu2 %1181 }
 0x258   :  { %7099 = vst [vmem:[#allocation167_spill] sm:$0xff] %v3597_v30  ;;  %v3599_v27 = vpop.permute.xlu0 %1177  ;;  %v3601_v43 = vpop.permute.xlu1 %1167 }
 0x259   :  { %7100 = vst [vmem:[#allocation168_spill] sm:$0xff] %v3599_v27  ;;  %v3620_v27 = vld [vmem:[%s6596_s3] sm:$0xff] }
 0x25a   :  { %7101 = vst [vmem:[#allocation169_spill] sm:$0xff] %v3601_v43 }
 0x25b   :  { %7105 = vst [vmem:[#allocation173_spill] sm:$0xff] %v3620_v27 }
 0x25d   :  { %1396 = vrot.lane.b32.xlu2 %v2994_v63, %s2712_s13 }
 0x25e   :  { %1416 = vrot.lane.b32.xlu0 %v3053_v15, %s2712_s13  ;;  %1400 = vrot.lane.b32.xlu1 %v3051_v12, %s2712_s13 }
 0x25f   :  { %v3609_v32 = vpop.permute.xlu2 %1187 }
 0x260   :  { %7102 = vst [vmem:[#allocation170_spill] sm:$0xff] %v3609_v32  ;;  %v3611_v37 = vpop.permute.xlu0 %1183  ;;  %v3613_v26 = vpop.permute.xlu1 %1173 }
 0x261   :  { %7103 = vst [vmem:[#allocation171_spill] sm:$0xff] %v3611_v37 }
 0x262   :  { %7104 = vst [vmem:[#allocation172_spill] sm:$0xff] %v3613_v26  ;;  %v3636_v26 = vld [vmem:[%s6596_s3 + $0x28] sm:$0xff] }
 0x263   :  { %7109 = vst [vmem:[#allocation177_spill] sm:$0xff] %v3636_v26 }
 0x265   :  { %1402 = vrot.lane.b32.xlu2 %v3086_v29, %s2712_s13 }
 0x266   :  { %1488 = vperm.xlu0 %2634, %v3620_v27   ;;  %1406 = vrot.lane.b32.xlu1 %v2909_v52, %s2712_s13 }
 0x267   :  { %v3625_v13 = vpop.permute.xlu2 %1193 }
 0x268   :  { %7106 = vst [vmem:[#allocation174_spill] sm:$0xff] %v3625_v13  ;;  %v3627_v32 = vpop.permute.xlu0 %1189  ;;  %v3629_v4 = vpop.permute.xlu1 %1179 }
 0x269   :  { %7107 = vst [vmem:[#allocation175_spill] sm:$0xff] %v3627_v32 }
 0x26a   :  { %7108 = vst [vmem:[#allocation176_spill] sm:$0xff] %v3629_v4 }
 0x26d   :  { %1408 = vrot.lane.b32.xlu2 %v2933_v8, %s2712_s13 }
 0x26e   :  { %1508 = vperm.xlu0 %2634, %v3636_v26   ;;  %1412 = vrot.lane.b32.xlu1 %v2991_v58, %s2712_s13 }
 0x26f   :  { %v3641_v27 = vpop.permute.xlu2 %1267 }
 0x270   :  { %7110 = vst [vmem:[#allocation178_spill] sm:$0xff] %v3641_v27  ;;  %v3643_v13 = vpop.permute.xlu0 %1195  ;;  %v3645_v32 = vpop.permute.xlu1 %1185  ;;  %v3686_v27 = vld [vmem:[%s6596_s3 + $0x18] sm:$0xff] }
 0x271   :  { %7111 = vst [vmem:[#allocation179_spill] sm:$0xff] %v3643_v13 }
 0x272   :  { %7112 = vst [vmem:[#allocation180_spill] sm:$0xff] %v3645_v32  ;;  %v3666_v32 = vld [vmem:[%s6596_s3 + $0x8] sm:$0xff] }
 0x273   :  { %7120 = vst [vmem:[#allocation188_spill] sm:$0xff] %v3686_v27 }
 0x275   :  { %1414 = vrot.lane.b32.xlu2 %v3022_v36, %s2712_s13 }
 0x276   :  { %1583 = vrot.lane.b32.xlu0 %v2899_v41, %s2714_s2  ;;  %1418 = vrot.lane.b32.xlu1 %v3083_v59, %s2712_s13 }
 0x277   :  { %v3653_v4 = vpop.permute.xlu2 %1279 }
 0x278   :  { %7113 = vst [vmem:[#allocation181_spill] sm:$0xff] %v3653_v4  ;;  %v3655_v26 = vpop.permute.xlu0 %1271  ;;  %v3657_v37 = vpop.permute.xlu1 %1191 }
 0x279   :  { %7114 = vst [vmem:[#allocation182_spill] sm:$0xff] %v3655_v26 }
 0x27a   :  { %7115 = vst [vmem:[#allocation183_spill] sm:$0xff] %v3657_v37  ;;  %v3678_v37 = vld [vmem:[%s6596_s3 + $0x10] sm:$0xff] }
 0x27b   :  { %7119 = vst [vmem:[#allocation187_spill] sm:$0xff] %v3678_v37 }
 0x27d   :  { %1420 = vrot.lane.b32.xlu2 %v3145_v55, %s2712_s13  ;;  %s2722_s13 = smov 512  }
 0x27e   :  { %1589 = vrot.lane.b32.xlu0 %v2977_v46, %s2714_s2  ;;  %1492 = vperm.xlu1 %2635, %v3666_v32  }
 0x27f   :  { %v3669_v13 = vpop.permute.xlu2 %1287 }
 0x280   :  { %7116 = vst [vmem:[#allocation184_spill] sm:$0xff] %v3669_v13  ;;  %v3671_v4 = vpop.permute.xlu0 %1291  ;;  %v3673_v26 = vpop.permute.xlu1 %1263 }
 0x281   :  { %7117 = vst [vmem:[#allocation185_spill] sm:$0xff] %v3671_v4 }
 0x282   :  { %7118 = vst [vmem:[#allocation186_spill] sm:$0xff] %v3673_v26 }
 0x285   :  { %1496 = vperm.xlu2 %2636, %v3678_v37   ;;  %v3698_v37 = vld [vmem:[%s6596_s3 + $0x20] sm:$0xff] }
 0x286   :  { %1595 = vrot.lane.b32.xlu0 %v3067_v40, %s2714_s2  ;;  %1500 = vperm.xlu1 %2635, %v3686_v27   ;;  %7124 = vst [vmem:[#allocation192_spill] sm:$0xff] %v3698_v37  ;;  %v3706_v27 = vld [vmem:[%s6596_s3 + $0x30] sm:$0xff] }
 0x287   :  { %v3689_v4 = vpop.permute.xlu2 %1360  ;;  %7125 = vst [vmem:[#allocation193_spill] sm:$0xff] %v3706_v27 }
 0x288   :  { %7121 = vst [vmem:[#allocation189_spill] sm:$0xff] %v3689_v4  ;;  %v3691_v13 = vpop.permute.xlu0 %1362  ;;  %v3693_v25 = vpop.permute.xlu1 %1275 }
 0x289   :  { %7122 = vst [vmem:[#allocation190_spill] sm:$0xff] %v3691_v13 }
 0x28a   :  { %7123 = vst [vmem:[#allocation191_spill] sm:$0xff] %v3693_v25 }
 0x28d   :  { %1504 = vperm.xlu2 %2636, %v3698_v37   ;;  %v3718_v37 = vld [vmem:[%s6596_s3 + $0x38] sm:$0xff] }
 0x28e   :  { %1601 = vrot.lane.b32.xlu0 %v2921_v61, %s2714_s2  ;;  %1512 = vperm.xlu1 %2635, %v3706_v27   ;;  %7129 = vst [vmem:[#allocation197_spill] sm:$0xff] %v3718_v37  ;;  %v3809_v27 = vmul.f32 %v2951_v18, %v2899_v41  ;;  %v3828_v41 = vmul.f32 %v2951_v18, %v2911_v53 }
 0x28f   :  { %v3709_v4 = vpop.permute.xlu2 %1366 }
 0x290   :  { %7126 = vst [vmem:[#allocation194_spill] sm:$0xff] %v3709_v4  ;;  %v3711_v25 = vpop.permute.xlu0 %1368  ;;  %v3713_v28 = vpop.permute.xlu1 %1283 }
 0x291   :  { %7127 = vst [vmem:[#allocation195_spill] sm:$0xff] %v3711_v25 }
 0x292   :  { %7128 = vst [vmem:[#allocation196_spill] sm:$0xff] %v3713_v28 }
 0x295   :  { %1516 = vperm.xlu2 %2636, %v3718_v37  }
 0x296   :  { %1607 = vrot.lane.b32.xlu0 %v3005_v9, %s2714_s2  ;;  %1585 = vrot.lane.b32.xlu1 %v2919_v60, %s2714_s2 }
 0x297   :  { %v3725_v43 = vpop.permute.xlu2 %1372 }
 0x298   :  { %7130 = vst [vmem:[#allocation198_spill] sm:$0xff] %v3725_v43  ;;  %v3727_v55 = vpop.permute.xlu0 %1374  ;;  %v3729_v4 = vpop.permute.xlu1 %1358 }
 0x299   :  { %7131 = vst [vmem:[#allocation199_spill] sm:$0xff] %v3727_v55  ;;  %v6794_v55 = vmov 0.0  }
 0x29a   :  { %7132 = vst [vmem:[#allocation200_spill] sm:$0xff] %v3729_v4 }
 0x29d   :  { %1587 = vrot.lane.b32.xlu2 %v2943_v11, %s2714_s2 }
 0x29e   :  { %1613 = vrot.lane.b32.xlu0 %v3101_v3, %s2714_s2  ;;  %1591 = vrot.lane.b32.xlu1 %v3009_v14, %s2714_s2 }
 0x29f   :  { %v3737_v28 = vpop.permute.xlu2 %1378 }
 0x2a0   :  { %7133 = vst [vmem:[#allocation201_spill] sm:$0xff] %v3737_v28  ;;  %v3739_v37 = vpop.permute.xlu0 %1380  ;;  %v3741_v22 = vpop.permute.xlu1 %1364  ;;  %v2715_v28 = vmov 6  }
 0x2a1   :  { %7134 = vst [vmem:[#allocation202_spill] sm:$0xff] %v3739_v37  ;;  %2638 = vset.pattern.permute.xlu0 %v2715_v28  ;;  %2639 = vset.pattern.permute.xlu1 %v2715_v28 }
 0x2a2   :  { %7135 = vst [vmem:[#allocation203_spill] sm:$0xff] %v3741_v22  ;;  %2637 = vset.pattern.permute.xlu2 %v2715_v28  ;;  %v309_v22 = vlaneseq }
 0x2a5   :  { %1593 = vrot.lane.b32.xlu2 %v3038_v51, %s2714_s2 }
 0x2a6   :  { %1619 = vrot.lane.b32.xlu0 %v2965_v35, %s2714_s2  ;;  %1597 = vrot.lane.b32.xlu1 %v3103_v16, %s2714_s2  ;;  %v3767_v35 = vand.u32 127, %v309_v22 }
 0x2a7   :  { %v3749_v11 = vpop.permute.xlu2 %1384 }
 0x2a8   :  { %7136 = vst [vmem:[#allocation204_spill] sm:$0xff] %v3749_v11  ;;  %v3751_v3 = vpop.permute.xlu0 %1386  ;;  %v3753_v43 = vpop.permute.xlu1 %1370  ;;  %v314_v28 = vand.u32 255, %v3767_v35  ;;  %v312_v16 = vadd.s32 256, %v3767_v35  ;;  %vm514_vm3 = vcmp.lt.s32.totalorder %v3767_v35, 17  ;;  %vm743_vm9 = vcmp.lt.s32.totalorder %v3767_v35, 16 }
 0x2a9   :  { %7137 = vst [vmem:[#allocation205_spill] sm:$0xff] %v3751_v3  ;;  %vm968_vm11 = vcmp.lt.s32.totalorder %v3767_v35, 15  ;;  %vm1197_vm12 = vcmp.lt.s32.totalorder %v3767_v35, 1  ;;  %vm1422_vm13 = vcmp.lt.s32.totalorder %v3767_v35, 127  ;;  %vm1647_vm0 = vcmp.lt.s32.totalorder %v3767_v35, 113 }
 0x2aa   :  { %7138 = vst [vmem:[#allocation206_spill] sm:$0xff] %v3753_v43  ;;  %v3777_v43 = vadd.s32 128, %v3767_v35  ;;  %v316_v13 = vand.u32 255, %v312_v16  ;;  %vm322_vm1 = vcmp.ge.s32.totalorder %v314_v28, 16 }
 0x2ac   :  { %7142 = vst [vmem:[#allocation210_spill] sm:$0xff] %v3777_v43  ;;  %v6787_v25 = vand.u32 255, %v3777_v43  ;;  %vm3865_vm6 = vcmp.ge.s32.totalorder %v316_v13, 16 }
 0x2ad   :  { %1599 = vrot.lane.b32.xlu2 %v2901_v42, %s2714_s2 }
 0x2ae   :  { %1625 = vrot.lane.b32.xlu0 %v3051_v12, %s2714_s2  ;;  %1603 = vrot.lane.b32.xlu1 %v2953_v20, %s2714_s2  ;;  %v3803_v16 = vand.u32 15, %v6787_v25  ;;  %v3821_v25 = vsel %vm322_vm1, 1.0, %v6794_v55 }
 0x2af   :  { %v3761_v37 = vpop.permute.xlu2 %1390  ;;  %7148 = vst [vmem:[#allocation216_spill] sm:$0xff] %v3821_v25 }
 0x2b0   :  { %7139 = vst [vmem:[#allocation207_spill] sm:$0xff] %v3761_v37  ;;  %v3763_v11 = vpop.permute.xlu0 %1392  ;;  %v3765_v3 = vpop.permute.xlu1 %1376  ;;  %v3790_v37 = vadd.s32 384, %v3767_v35  ;;  %vm347_vm5 = vcmp.gt.s32.totalorder %v3803_v16, 0  ;;  %vm359_vm15 = vcmp.lt.s32.totalorder %v3803_v16, 15  ;;  %v7224_v16 = vld [vmem:[#allocation87_spill] sm:$0xff] }
 0x2b1   :  { %7140 = vst [vmem:[#allocation208_spill] sm:$0xff] %v3763_v11 }
 0x2b2   :  { %7141 = vst [vmem:[#allocation209_spill] sm:$0xff] %v3765_v3  ;;  %v3786_v3 = vand.u32 15, %v314_v28  ;;  %v3813_v28 = vmul.f32 %v2951_v18, %v2901_v42  ;;  %v3832_v42 = vmul.f32 %v2951_v18, %v2909_v52  ;;  %v3851_v18 = vmul.f32 %v3063_v19, %v2931_v7 }
 0x2b3   :  { %7145 = vst [vmem:[#allocation213_spill] sm:$0xff] %v3790_v37 }
 0x2b4   :  { %vm346_vm2 = vcmp.gt.s32.totalorder %v3786_v3, 0  ;;  %vm358_vm8 = vcmp.lt.s32.totalorder %v3786_v3, 15 }
 0x2b5   :  { %1605 = vrot.lane.b32.xlu2 %v2979_v49, %s2714_s2  ;;  %v3824_v43 = vsel %vm346_vm2, 1.0, %v6794_v55  ;;  %v3846_v55 = vmul.f32 %v2963_v33, %v2977_v46  ;;  %v3944_v46 = vmul.f32 %v2975_v44, %v3051_v12  ;;  %v3962_v12 = vmul.f32 %v2975_v44, %v3053_v15 }
 0x2b6   :  { %1631 = vrot.lane.b32.xlu0 %v2909_v52, %s2714_s2  ;;  %1609 = vrot.lane.b32.xlu1 %v3035_v48, %s2714_s2  ;;  %7149 = vst [vmem:[#allocation217_spill] sm:$0xff] %v3824_v43  ;;  %v3855_v52 = vmul.f32 %v3063_v19, %v2933_v8 }
 0x2b7   :  { %v3779_v20 = vpop.permute.xlu2 %1396  ;;  %7150 = vst [vmem:[#allocation218_spill] sm:$0xff] %v3846_v55 }
 0x2b8   :  { %7143 = vst [vmem:[#allocation211_spill] sm:$0xff] %v3779_v20  ;;  %v3782_v22 = vpop.permute.xlu0 %1398  ;;  %v3784_v11 = vpop.permute.xlu1 %1382  ;;  %v3795_v20 = vand.u32 15, %v316_v13  ;;  %v539_v13 = vsel %vm514_vm3, %v3065_v23, %v3049_v1 }
 0x2b9   :  { %7144 = vst [vmem:[#allocation212_spill] sm:$0xff] %v3784_v11 }
 0x2ba   :  { %vm348_vm4 = vcmp.gt.s32.totalorder %v3795_v20, 0  ;;  %7151 = vst [vmem:[#allocation219_spill] sm:$0xff] %v3855_v52  ;;  %vm360_vm10 = vcmp.lt.s32.totalorder %v3795_v20, 15  ;;  %v768_v20 = vsel %vm743_vm9, %v3317_v10, %v3116_v39 }
 0x2bb   :  { %7171 = vst [vmem:[#allocation235_spill] sm:$0xff] %v3944_v46  ;;  %v4051_v46 = vsel %vm743_vm9, %v3116_v39, %v3097_v62 }
 0x2bc   :  { %7174 = vst [vmem:[#allocation238_spill] sm:$0xff] %v3962_v12 }
 0x2bd   :  { %1611 = vrot.lane.b32.xlu2 %v3069_v47, %s2714_s2  ;;  %7187 = vst [vmem:[#allocation247_spill] sm:$0xff] %v4051_v46 }
 0x2be   :  { %1637 = vrot.lane.b32.xlu0 %v2991_v58, %s2714_s2  ;;  %1615 = vrot.lane.b32.xlu1 %v2911_v53, %s2714_s2  ;;  %v3863_v53 = vmul.f32 %v3824_v43, %v3821_v25 }
 0x2bf   :  { %v3805_v11 = vpop.permute.xlu2 %1402 }
 0x2c0   :  { %7146 = vst [vmem:[#allocation214_spill] sm:$0xff] %v3805_v11  ;;  %v3816_v26 = vpop.permute.xlu0 %1404  ;;  %v3818_v4 = vpop.permute.xlu1 %1388  ;;  %v3840_v11 = vmul.f32 %v3063_v19, %v2921_v61  ;;  %v3859_v61 = vmul.f32 %v2963_v33, %v2979_v49  ;;  %v3875_v19 = vmul.f32 %v2963_v33, %v2994_v63  ;;  %v3879_v49 = vmul.f32 %v2963_v33, %v2991_v58 }
 0x2c1   :  { %7147 = vst [vmem:[#allocation215_spill] sm:$0xff] %v3818_v4  ;;  %v7156_v4 = vand.u32 255, %v3790_v37  ;;  %v3896_v37 = vmul.f32 %v3003_v6, %v3005_v9  ;;  %v531_v58 = vsel %vm514_vm3, %v3049_v1, %v3099_v5  ;;  %v3915_v9 = vmul.f32 %v3003_v6, %v3022_v36 }
 0x2c2   :  { %7152 = vst [vmem:[#allocation220_spill] sm:$0xff] %v3859_v61  ;;  %v7158_v61 = vmov 0.0  }
 0x2c3   :  { %7153 = vst [vmem:[#allocation221_spill] sm:$0xff] %v3863_v53  ;;  %v3871_v55 = vand.u32 15, %v7156_v4  ;;  %v3886_v52 = vsel %vm348_vm4, 1.0, %v7158_v61  ;;  %v3892_v4 = vmul.f32 %v3003_v6, %v3009_v14  ;;  %v3899_v33 = vsel %vm347_vm5, 1.0, %v7158_v61 }
 0x2c4   :  { %7157 = vst [vmem:[#allocation222_spill] sm:$0xff] %v3879_v49  ;;  %v3924_v1 = vsel %vm3865_vm6, 1.0, %v7158_v61  ;;  %v7194_v49 = vld [vmem:[#allocation44_spill] sm:$0xff]  ;;  %vm1876_vm4 = vcmp.lt.s32.totalorder %v3767_v35, 112  ;;  %vm2101_vm5 = vcmp.lt.s32.totalorder %v3767_v35, 111 }
 0x2c5   :  { %7159 = vst [vmem:[#allocation223_spill] sm:$0xff] %v3886_v52  ;;  %1617 = vrot.lane.b32.xlu2 %v2931_v7, %s2714_s2  ;;  %v3911_v7 = vmul.f32 %v3003_v6, %v3020_v34  ;;  %vm349_vm7 = vcmp.gt.s32.totalorder %v3871_v55, 0  ;;  %v3936_v6 = vmul.f32 %v3886_v52, %v3924_v1  ;;  %vm361_vm14 = vcmp.lt.s32.totalorder %v3871_v55, 15 }
 0x2c6   :  { %7160 = vst [vmem:[#allocation224_spill] sm:$0xff] %v3892_v4  ;;  %1643 = vrot.lane.b32.xlu0 %v3083_v59, %s2714_s2  ;;  %1621 = vrot.lane.b32.xlu1 %v2994_v63, %s2714_s2  ;;  %v3919_v4 = vmul.f32 %v2975_v44, %v3038_v51  ;;  %v3930_v63 = vmul.f32 %v2975_v44, %v3035_v48  ;;  %v3967_v3 = vsel %vm349_vm7, 1.0, %v7158_v61 }
 0x2c7   :  { %7161 = vst [vmem:[#allocation225_spill] sm:$0xff] %v3896_v37  ;;  %v3926_v37 = vpop.permute.xlu2 %1408  ;;  %v552_v48 = vmul.f32 %v3899_v33, %v531_v58  ;;  %v515_v58 = vsel %vm514_vm3, %v3114_v57, %v3065_v23 }
 0x2c8   :  { %7162 = vst [vmem:[#allocation226_spill] sm:$0xff] %v3899_v33  ;;  %v3938_v51 = vpop.permute.xlu0 %1410 }
 0x2c9   :  { %7163 = vst [vmem:[#allocation227_spill] sm:$0xff] %v3911_v7  ;;  %v551_v7 = vmul.f32 %v3863_v53, %v539_v13  ;;  %v523_v13 = vsel %vm514_vm3, %v3099_v5, %v3114_v57  ;;  %v3975_v5 = vmul.f32 %v3077_v54, %v3086_v29  ;;  %v752_v57 = vsel %vm743_vm9, %v3097_v62, %v3079_v2 }
 0x2ca   :  { %7164 = vst [vmem:[#allocation228_spill] sm:$0xff] %v3915_v9  ;;  %v3958_v9 = vmul.f32 %v3077_v54, %v3069_v47  ;;  %v3978_v47 = vsel %vm358_vm8, 1.0, %v7158_v61  ;;  %v616_v23 = vmul.f32 %v3041_v56, %v552_v48  ;;  %v532_v2 = vsel %vm514_vm3, %v3128_v38, %v3095_v45  ;;  %v7180_v48 = vld [vmem:[#allocation109_spill] sm:$0xff] }
 0x2cb   :  { %7165 = vst [vmem:[#allocation229_spill] sm:$0xff] %v3919_v4  ;;  %v3940_v4 = vpop.permute.xlu1 %1394  ;;  %v615_v44 = vmul.f32 %v3041_v56, %v551_v7  ;;  %v3999_v7 = vsel %vm360_vm10, 1.0, %v7158_v61 }
 0x2cc   :  { %7166 = vst [vmem:[#allocation230_spill] sm:$0xff] %v3924_v1 }
 0x2cd   :  { %7167 = vst [vmem:[#allocation231_spill] sm:$0xff] %v3926_v37  ;;  %1623 = vrot.lane.b32.xlu2 %v3020_v34, %s2714_s2  ;;  %v647_v10 = vadd.f32 %v615_v44, %v3809_v27  ;;  %v7184_v44 = vld [vmem:[#allocation128_spill] sm:$0xff] }
 0x2ce   :  { %7168 = vst [vmem:[#allocation232_spill] sm:$0xff] %v3930_v63  ;;  %v3954_v63 = vmul.f32 %v3077_v54, %v3067_v40  ;;  %v553_v40 = vmul.f32 %v3936_v6, %v523_v13  ;;  %v554_v13 = vmul.f32 %v3967_v3, %v515_v58  ;;  %1721 = vperm.xlu0 %2638, %v3666_v32  }
 0x2cf   :  { %7169 = vst [vmem:[#allocation233_spill] sm:$0xff] %v3936_v6  ;;  %1627 = vrot.lane.b32.xlu1 %v3086_v29, %s2714_s2  ;;  %v4016_v58 = vmul.f32 %v3978_v47, %v3821_v25  ;;  %v4020_v34 = vpop.permute.xlu2 %1414  ;;  %v1222_v32 = vsel %vm1197_vm12, %v3597_v30, %v3504_v0  ;;  %v778_v0 = vmul.f32 %v3924_v1, %v752_v57 }
 0x2d0   :  { %7170 = vst [vmem:[#allocation234_spill] sm:$0xff] %v3940_v4  ;;  %v1230_v57 = vmul.f32 %v3824_v43, %v1222_v32  ;;  %v7193_v32 = vld [vmem:[#allocation186_spill] sm:$0xff] }
 0x2d1   :  { %7172 = vst [vmem:[#allocation236_spill] sm:$0xff] %v3954_v63  ;;  %v4045_v63 = vadd.f32 %v616_v23, %v3813_v28  ;;  %v1206_v28 = vsel %vm1197_vm12, %v3565_v24, %v3575_v31  ;;  %v7189_v23 = vld [vmem:[#allocation48_spill] sm:$0xff] }
 0x2d2   :  { %7173 = vst [vmem:[#allocation237_spill] sm:$0xff] %v3958_v9  ;;  %v7183_v9 = vld [vmem:[#allocation103_spill] sm:$0xff]  ;;  %v540_v62 = vsel %vm514_vm3, %v7189_v23, %v3128_v38  ;;  %v1294_v46 = vmul.f32 %v7193_v32, %v1230_v57  ;;  %v7195_v38 = vld [vmem:[#allocation49_spill] sm:$0xff]  ;;  %v7198_v57 = vld [vmem:[#allocation54_spill] sm:$0xff] }
 0x2d3   :  { %7175 = vst [vmem:[#allocation239_spill] sm:$0xff] %v3967_v3  ;;  %v4028_v29 = vpop.permute.xlu1 %1400  ;;  %v842_v39 = vmul.f32 %v7183_v9, %v778_v0 }
 0x2d4   :  { %7176 = vst [vmem:[#allocation240_spill] sm:$0xff] %v3975_v5  ;;  %v3993_v5 = vmul.f32 %v3077_v54, %v3083_v59  ;;  %v993_v54 = vsel %vm968_vm11, %v3463_v21, %v7180_v48  ;;  %v776_v59 = vmul.f32 %v3821_v25, %v768_v20  ;;  %v617_v21 = vmul.f32 %v3041_v56, %v553_v40  ;;  %v1417_v20 = vpop.permute.xlu0 %1416  ;;  %v7185_v40 = vld [vmem:[#allocation111_spill] sm:$0xff] }
 0x2d5   :  { %7177 = vst [vmem:[#allocation241_spill] sm:$0xff] %v3978_v47  ;;  %v4034_v48 = vsel %vm1422_vm13, %v3782_v22, %v4020_v34  ;;  %v977_v12 = vsel %vm968_vm11, %v7185_v40, %v7184_v44  ;;  %v1005_v30 = vmul.f32 %v4016_v58, %v993_v54  ;;  %v7190_v40 = vld [vmem:[#allocation199_spill] sm:$0xff]  ;;  %1629 = vrot.lane.b32.xlu2 %v7194_v49, %s2714_s2 }
 0x2d6   :  { %7178 = vst [vmem:[#allocation242_spill] sm:$0xff] %v3993_v5  ;;  %v556_v5 = vmul.f32 %v3899_v33, %v532_v2  ;;  %v840_v27 = vmul.f32 %v7183_v9, %v776_v59  ;;  %v4055_v2 = vmul.f32 %v3999_v7, %v3924_v1  ;;  %v618_v59 = vmul.f32 %v3041_v56, %v554_v13  ;;  %v7191_v56 = vld [vmem:[#allocation200_spill] sm:$0xff] }
 0x2d7   :  { %7179 = vst [vmem:[#allocation243_spill] sm:$0xff] %v3999_v7  ;;  %v1069_v44 = vmul.f32 %v3473_v17, %v1005_v30  ;;  %v1439_v30 = vsel %vm1422_vm13, %v7191_v56, %v7190_v40  ;;  %v649_v13 = vadd.f32 %v617_v21, %v3828_v41  ;;  %v1232_v9 = vmul.f32 %v3886_v52, %v1206_v28  ;;  %v7196_v40 = vld [vmem:[#allocation193_spill] sm:$0xff] }
 0x2d8   :  { %7181 = vst [vmem:[#allocation244_spill] sm:$0xff] %v4016_v58  ;;  %v1007_v54 = vmul.f32 %v4055_v2, %v977_v12  ;;  %v872_v24 = vadd.f32 %v840_v27, %v647_v10  ;;  %v524_v12 = vsel %vm514_vm3, %v3095_v45, %v7195_v38  ;;  %1741 = vperm.xlu0 %2638, %v7196_v40   ;;  %v4094_v45 = vpop.permute.xlu2 %1420  ;;  %v7197_v27 = vld [vmem:[#allocation51_spill] sm:$0xff] }
 0x2d9   :  { %7182 = vst [vmem:[#allocation245_spill] sm:$0xff] %v4028_v29  ;;  %1633 = vrot.lane.b32.xlu1 %v2933_v8, %s2714_s2  ;;  %v555_v41 = vmul.f32 %v3863_v53, %v540_v62  ;;  %v516_v10 = vsel %vm514_vm3, %v7195_v38, %v7189_v23  ;;  %v542_v40 = vsel %vm514_vm3, %v7198_v57, %v7197_v27  ;;  %v7201_v38 = vld [vmem:[#allocation207_spill] sm:$0xff]  ;;  %v7202_v8 = vld [vmem:[#allocation190_spill] sm:$0xff] }
 0x2da   :  { %7186 = vst [vmem:[#allocation246_spill] sm:$0xff] %v4045_v63  ;;  %v7192_v63 = vld [vmem:[#allocation19_spill] sm:$0xff]  ;;  %v1071_v0 = vmul.f32 %v3473_v17, %v1007_v54  ;;  %v1101_v21 = vadd.f32 %v1069_v44, %v872_v24  ;;  %v874_v28 = vadd.f32 %v842_v39, %v649_v13  ;;  %v1296_v54 = vmul.f32 %v7193_v32, %v1232_v9 }
 0x2db   :  { %7188 = vst [vmem:[#allocation248_spill] sm:$0xff] %v4055_v2  ;;  %v620_v31 = vmul.f32 %v7192_v63, %v556_v5  ;;  %v1455_v5 = vmul.f32 %v3978_v47, %v1439_v30  ;;  %v4103_v62 = vpop.permute.xlu1 %1406  ;;  %v4109_v24 = vsel %vm1422_vm13, %v3816_v26, %v4094_v45  ;;  %v557_v44 = vmul.f32 %v3936_v6, %v524_v12 }
 0x2dc   :  { %v4101_v49 = vpop.permute.xlu0 %1488  ;;  %7200 = vst [vmem:[#allocation19_spill] sm:$0xff] %v4103_v62  ;;  %v1326_v23 = vadd.f32 %v1294_v46, %v1101_v21  ;;  %v1423_v9 = vsel %vm1422_vm13, %v7201_v38, %v4103_v62  ;;  %v558_v39 = vmul.f32 %v3967_v3, %v516_v10  ;;  %v1103_v13 = vadd.f32 %v1071_v0, %v874_v28  ;;  %v7204_v10 = vld [vmem:[#allocation195_spill] sm:$0xff] }
 0x2dd   :  { %7199 = vst [vmem:[#allocation48_spill] sm:$0xff] %v4101_v49  ;;  %v1519_v30 = vmul.f32 %v4101_v49, %v1455_v5  ;;  %v1457_v56 = vmul.f32 %v3999_v7, %v1423_v9  ;;  %v563_v32 = vmul.f32 %v3863_v53, %v542_v40  ;;  %v1449_v46 = vsel %vm1422_vm13, %v3938_v51, %v7202_v8  ;;  %v7205_v8 = vld [vmem:[#allocation62_spill] sm:$0xff] }
 0x2de   :  { %v1425_v12 = vsel %vm1422_vm13, %v3940_v4, %v3938_v51  ;;  %v1452_v55 = vsel %vm1422_vm13, %v1417_v20, %v7204_v10  ;;  %v1428_v0 = vsel %vm1422_vm13, %v4028_v29, %v1417_v20  ;;  %v1328_v5 = vadd.f32 %v1296_v54, %v1103_v13  ;;  %v7212_v4 = vld [vmem:[#allocation34_spill] sm:$0xff]  ;;  %v7240_v10 = vld [vmem:[#allocation104_spill] sm:$0xff] }
 0x2df   :  { %v4129_v21 = vadd.f32 %v1519_v30, %v1326_v23  ;;  %v1521_v40 = vmul.f32 %v4101_v49, %v1457_v56  ;;  %v619_v28 = vmul.f32 %v7192_v63, %v555_v41  ;;  %v621_v9 = vmul.f32 %v7192_v63, %v557_v44  ;;  %v7207_v30 = vld [vmem:[#allocation15_spill] sm:$0xff] }
 0x2e0   :  { %v534_v51 = vsel %vm514_vm3, %v7197_v27, %v7205_v8  ;;  %v4145_v23 = vsel %vm361_vm14, 1.0, %v7158_v61  ;;  %1635 = vrot.lane.b32.xlu2 %v7207_v30, %s2714_s2  ;;  %v1465_v54 = vmul.f32 %v3999_v7, %v1425_v12  ;;  %1814 = vrot.lane.b32.xlu0 %v2919_v60, %s2717_s30  ;;  %v4158_v41 = vadd.f32 %v618_v59, %v3832_v42  ;;  %v7210_v12 = vld [vmem:[#allocation52_spill] sm:$0xff]  ;;  %v7217_v59 = vld [vmem:[#allocation43_spill] sm:$0xff] }
 0x2e1   :  { %7203 = vst [vmem:[#allocation49_spill] sm:$0xff] %v4129_v21  ;;  %v1466_v20 = vmul.f32 %v4145_v23, %v1449_v46  ;;  %v4151_v56 = vadd.f32 %v1521_v40, %v1328_v5  ;;  %1639 = vrot.lane.b32.xlu1 %v3022_v36, %s2714_s2  ;;  %v622_v27 = vmul.f32 %v7192_v63, %v558_v39  ;;  %v4163_v46 = vpop.permute.xlu2 %1496  ;;  %v7211_v5 = vld [vmem:[#allocation46_spill] sm:$0xff]  ;;  %v7236_v30 = vld [vmem:[#allocation171_spill] sm:$0xff] }
 0x2e2   :  { %7206 = vst [vmem:[#allocation193_spill] sm:$0xff] %v4145_v23  ;;  %v1478_v44 = vmul.f32 %v4145_v23, %v1452_v55  ;;  %v1477_v13 = vmul.f32 %v3999_v7, %v1428_v0  ;;  %v753_v40 = vsel %vm743_vm9, %v7211_v5, %v7210_v12  ;;  %v627_v60 = vmul.f32 %v7212_v4, %v563_v32 }
 0x2e3   :  { %7208 = vst [vmem:[#allocation51_spill] sm:$0xff] %v4151_v56  ;;  %v4172_v21 = vpop.permute.xlu1 %1412  ;;  %v4175_v42 = vmul.f32 %v4163_v46, %v1465_v54  ;;  %v4178_v63 = vmul.f32 %v4163_v46, %v1466_v20  ;;  %v4184_v39 = vsel %vm743_vm9, %v7217_v59, %v7211_v5  ;;  %v564_v55 = vmul.f32 %v3899_v33, %v534_v51 }
 0x2e4   :  { %7209 = vst [vmem:[#allocation54_spill] sm:$0xff] %v4163_v46  ;;  %v4170_v56 = vpop.permute.xlu0 %1508  ;;  %v4194_v54 = vadd.f32 %v620_v31, %v3840_v11  ;;  %v651_v20 = vadd.f32 %v619_v28, %v3836_v50  ;;  %v782_v51 = vmul.f32 %v3924_v1, %v753_v40  ;;  %v7222_v46 = vld [vmem:[#allocation194_spill] sm:$0xff]  ;;  %v7225_v28 = vld [vmem:[#allocation120_spill] sm:$0xff]  ;;  %v7227_v40 = vld [vmem:[#allocation113_spill] sm:$0xff] }
 0x2e5   :  { %7213 = vst [vmem:[#allocation62_spill] sm:$0xff] %v4170_v56  ;;  %v4188_v32 = vmul.f32 %v4170_v56, %v1477_v13  ;;  %v4191_v0 = vmul.f32 %v4170_v56, %v1478_v44  ;;  %v7221_v13 = vld [vmem:[#allocation212_spill] sm:$0xff]  ;;  %v1451_v11 = vsel %vm1422_vm13, %v4020_v34, %v7222_v46  ;;  %v7223_v50 = vld [vmem:[#allocation218_spill] sm:$0xff]  ;;  %v4227_v34 = vmul.f32 %v7212_v4, %v564_v55  ;;  %v7232_v56 = vld [vmem:[#allocation169_spill] sm:$0xff] }
 0x2e6   :  { %7214 = vst [vmem:[#allocation52_spill] sm:$0xff] %v4172_v21  ;;  %v1435_v44 = vsel %vm1422_vm13, %v7221_v13, %v3782_v22  ;;  %v4212_v31 = vadd.f32 %v627_v60, %v7223_v50  ;;  %v7228_v22 = vld [vmem:[#allocation136_spill] sm:$0xff]  ;;  %v4238_v46 = vsel %vm359_vm15, 1.0, %v7158_v61  ;;  %v1473_v55 = vmul.f32 %v3999_v7, %v4034_v48 }
 0x2e7   :  { %7215 = vst [vmem:[#allocation46_spill] sm:$0xff] %v4175_v42  ;;  %v7220_v42 = vld [vmem:[#allocation219_spill] sm:$0xff]  ;;  %v7229_v60 = vld [vmem:[#allocation64_spill] sm:$0xff]  ;;  %v1472_v13 = vmul.f32 %v4238_v46, %v1435_v44 }
 0x2e8   :  { %7216 = vst [vmem:[#allocation34_spill] sm:$0xff] %v4178_v63  ;;  %v653_v63 = vadd.f32 %v621_v9, %v3851_v18  ;;  %v4200_v5 = vadd.f32 %v622_v27, %v7220_v42  ;;  %v769_v18 = vsel %vm743_vm9, %v7224_v16, %v7217_v59  ;;  %v7226_v9 = vld [vmem:[#allocation118_spill] sm:$0xff]  ;;  %v994_v42 = vsel %vm968_vm11, %v7228_v22, %v7227_v40 }
 0x2e9   :  { %7218 = vst [vmem:[#allocation43_spill] sm:$0xff] %v4188_v32  ;;  %v978_v27 = vsel %vm968_vm11, %v7226_v9, %v7225_v28  ;;  %v518_v50 = vsel %vm514_vm3, %v7229_v60, %v7198_v57  ;;  %v526_v59 = vsel %vm514_vm3, %v7205_v8, %v7229_v60  ;;  %1641 = vrot.lane.b32.xlu2 %v3053_v15, %s2714_s2  ;;  %v7231_v57 = vld [vmem:[#allocation50_spill] sm:$0xff]  ;;  %v7233_v15 = vld [vmem:[#allocation152_spill] sm:$0xff]  ;;  %v4257_v48 = vpop.permute.xlu2 %1504 }
 0x2ea   :  { %7219 = vst [vmem:[#allocation249_spill] sm:$0xff] %v4191_v0  ;;  %v1474_v0 = vmul.f32 %v4145_v23, %v1451_v11  ;;  %1820 = vrot.lane.b32.xlu0 %v3009_v14, %s2717_s30  ;;  %1645 = vrot.lane.b32.xlu1 %v7231_v57, %s2714_s2  ;;  %v780_v8 = vmul.f32 %v3821_v25, %v769_v18  ;;  %v7235_v11 = vld [vmem:[#allocation147_spill] sm:$0xff] }
 0x2eb   :  { %7230 = vst [vmem:[#allocation219_spill] sm:$0xff] %v4238_v46  ;;  %v1011_v60 = vmul.f32 %v4055_v2, %v978_v27  ;;  %v1009_v32 = vmul.f32 %v4016_v58, %v994_v42  ;;  %v1207_v44 = vsel %vm1197_vm12, %v7233_v15, %v7232_v56  ;;  %v1223_v14 = vsel %vm1197_vm12, %v7236_v30, %v7235_v11  ;;  %v4265_v49 = vpop.permute.xlu1 %1418  ;;  %v7241_v56 = vld [vmem:[#allocation57_spill] sm:$0xff]  ;;  %v7242_v30 = vld [vmem:[#allocation67_spill] sm:$0xff]  ;;  %v7315_v2 = vld [vmem:[#allocation98_spill] sm:$0xff] }
 0x2ec   :  { %7234 = vst [vmem:[#allocation218_spill] sm:$0xff] %v4257_v48  ;;  %v4263_v21 = vpop.permute.xlu0 %1583  ;;  %v4268_v18 = vmul.f32 %v4257_v48, %v1472_v13  ;;  %v4271_v27 = vmul.f32 %v4257_v48, %v1473_v55  ;;  %v4274_v42 = vmul.f32 %v4257_v48, %v1474_v0  ;;  %v565_v29 = vmul.f32 %v3936_v6, %v526_v59  ;;  %v7244_v0 = vld [vmem:[#allocation141_spill] sm:$0xff]  ;;  %v7246_v48 = vld [vmem:[#allocation198_spill] sm:$0xff] }
 0x2ed   :  { %v566_v38 = vmul.f32 %v3967_v3, %v518_v50  ;;  %v844_v62 = vmul.f32 %v7240_v10, %v780_v8  ;;  %v846_v57 = vmul.f32 %v7240_v10, %v782_v51  ;;  %v535_v13 = vsel %vm514_vm3, %v7242_v30, %v7241_v56  ;;  %v7245_v51 = vld [vmem:[#allocation215_spill] sm:$0xff]  ;;  %v7252_v15 = vld [vmem:[#allocation173_spill] sm:$0xff] }
 0x2ee   :  { %7237 = vst [vmem:[#allocation87_spill] sm:$0xff] %v4268_v18  ;;  %v7243_v18 = vld [vmem:[#allocation70_spill] sm:$0xff]  ;;  %v1075_v59 = vmul.f32 %v7244_v0, %v1011_v60  ;;  %v1236_v50 = vmul.f32 %v3886_v52, %v1207_v44  ;;  %v1234_v8 = vmul.f32 %v3824_v43, %v1223_v14  ;;  %v1454_v36 = vsel %vm1422_vm13, %v4094_v45, %v7246_v48  ;;  %v7248_v60 = vld [vmem:[#allocation209_spill] sm:$0xff] }
 0x2ef   :  { %7238 = vst [vmem:[#allocation120_spill] sm:$0xff] %v4271_v27  ;;  %v543_v55 = vsel %vm514_vm3, %v7243_v18, %v7242_v30  ;;  %v1438_v27 = vsel %vm1422_vm13, %v7245_v51, %v3816_v26  ;;  %v7247_v30 = vld [vmem:[#allocation71_spill] sm:$0xff]  ;;  %v7249_v44 = vld [vmem:[#allocation189_spill] sm:$0xff]  ;;  %v7250_v51 = vld [vmem:[#allocation208_spill] sm:$0xff]  ;;  %v876_v48 = vadd.f32 %v844_v62, %v651_v20  ;;  %v878_v43 = vadd.f32 %v846_v57, %v653_v63 }
 0x2f0   :  { %7239 = vst [vmem:[#allocation118_spill] sm:$0xff] %v4274_v42  ;;  %v1073_v42 = vmul.f32 %v7244_v0, %v1009_v32  ;;  %v519_v32 = vsel %vm514_vm3, %v7247_v30, %v7243_v18  ;;  %v527_v14 = vsel %vm514_vm3, %v7241_v56, %v7247_v30  ;;  %v1440_v26 = vsel %vm1422_vm13, %v7249_v44, %v7248_v60  ;;  %v7251_v52 = vld [vmem:[#allocation178_spill] sm:$0xff]  ;;  %v7254_v0 = vld [vmem:[#allocation187_spill] sm:$0xff] }
 0x2f1   :  { %v1424_v45 = vsel %vm1422_vm13, %v7250_v51, %v3926_v37  ;;  %v1298_v11 = vmul.f32 %v7251_v52, %v1234_v8  ;;  %v1300_v18 = vmul.f32 %v7251_v52, %v1236_v50  ;;  %1717 = vperm.xlu2 %2637, %v7252_v15   ;;  %v1484_v56 = vmul.f32 %v4238_v46, %v1438_v27  ;;  %v7253_v60 = vld [vmem:[#allocation42_spill] sm:$0xff]  ;;  %v4328_v50 = vpop.permute.xlu2 %1516  ;;  %v7256_v15 = vld [vmem:[#allocation69_spill] sm:$0xff]  ;;  %v7257_v27 = vld [vmem:[#allocation72_spill] sm:$0xff] }
 0x2f2   :  { %v1485_v30 = vmul.f32 %v3999_v7, %v4109_v24  ;;  %v1486_v44 = vmul.f32 %v4145_v23, %v1454_v36  ;;  %1826 = vrot.lane.b32.xlu0 %v7253_v60, %s2717_s30  ;;  %1725 = vperm.xlu1 %2639, %v7254_v0   ;;  %v1105_v62 = vadd.f32 %v1073_v42, %v876_v48  ;;  %v7263_v51 = vld [vmem:[#allocation73_spill] sm:$0xff] }
 0x2f3   :  { %v1107_v63 = vadd.f32 %v1075_v59, %v878_v43  ;;  %v1459_v20 = vmul.f32 %v3978_v47, %v1440_v26  ;;  %v1461_v57 = vmul.f32 %v3999_v7, %v1424_v45  ;;  %7255 = vst [vmem:[#allocation113_spill] sm:$0xff] %v4328_v50  ;;  %v545_v24 = vsel %vm514_vm3, %v7257_v27, %v7256_v15  ;;  %v4336_v36 = vpop.permute.xlu1 %1492  ;;  %v7262_v47 = vld [vmem:[#allocation66_spill] sm:$0xff] }
 0x2f4   :  { %v4334_v8 = vpop.permute.xlu0 %1589  ;;  %7258 = vst [vmem:[#allocation136_spill] sm:$0xff] %v4336_v36  ;;  %v4339_v60 = vmul.f32 %v4328_v50, %v1484_v56  ;;  %v4342_v43 = vmul.f32 %v4328_v50, %v1485_v30  ;;  %v4345_v48 = vmul.f32 %v4328_v50, %v1486_v44  ;;  %v1330_v42 = vadd.f32 %v1298_v11, %v1105_v62  ;;  %v7264_v30 = vld [vmem:[#allocation74_spill] sm:$0xff] }
 0x2f5   :  { %v1332_v0 = vadd.f32 %v1300_v18, %v1107_v63  ;;  %v1523_v59 = vmul.f32 %v4336_v36, %v1459_v20  ;;  %v1525_v26 = vmul.f32 %v4336_v36, %v1461_v57  ;;  %v568_v45 = vmul.f32 %v3899_v33, %v535_v13  ;;  %v7265_v18 = vld [vmem:[#allocation77_spill] sm:$0xff]  ;;  %v7268_v63 = vld [vmem:[#allocation220_spill] sm:$0xff]  ;;  %v7279_v50 = vld [vmem:[#allocation38_spill] sm:$0xff] }
 0x2f6   :  { %7259 = vst [vmem:[#allocation64_spill] sm:$0xff] %v4339_v60  ;;  %v567_v37 = vmul.f32 %v3863_v53, %v543_v55  ;;  %v528_v56 = vsel %vm514_vm3, %v7263_v51, %v7262_v47  ;;  %v536_v44 = vsel %vm514_vm3, %v7264_v30, %v7263_v51  ;;  %v569_v11 = vmul.f32 %v3936_v6, %v527_v14  ;;  %v7284_v36 = vld [vmem:[#allocation225_spill] sm:$0xff] }
 0x2f7   :  { %7260 = vst [vmem:[#allocation104_spill] sm:$0xff] %v4342_v43  ;;  %v544_v62 = vsel %vm514_vm3, %v7265_v18, %v7264_v30  ;;  %v4364_v13 = vadd.f32 %v1523_v59, %v1330_v42  ;;  %v4366_v55 = vadd.f32 %v1525_v26, %v1332_v0  ;;  %v4370_v20 = vadd.f32 %v4227_v34, %v7268_v63  ;;  %v7269_v0 = vld [vmem:[#allocation80_spill] sm:$0xff]  ;;  %v7273_v30 = vld [vmem:[#allocation14_spill] sm:$0xff] }
 0x2f8   :  { %7261 = vst [vmem:[#allocation57_spill] sm:$0xff] %v4345_v48  ;;  %v629_v57 = vmul.f32 %v7212_v4, %v565_v29  ;;  %v570_v48 = vmul.f32 %v3967_v3, %v519_v32  ;;  %v575_v51 = vmul.f32 %v3863_v53, %v545_v24  ;;  %v573_v14 = vmul.f32 %v3936_v6, %v528_v56  ;;  %v7270_v59 = vld [vmem:[#allocation188_spill] sm:$0xff]  ;;  %v7271_v32 = vld [vmem:[#allocation61_spill] sm:$0xff] }
 0x2f9   :  { %7266 = vst [vmem:[#allocation67_spill] sm:$0xff] %v4364_v13  ;;  %v572_v43 = vmul.f32 %v3899_v33, %v536_v44  ;;  %v520_v42 = vsel %vm514_vm3, %v7262_v47, %v7265_v18  ;;  %v537_v34 = vsel %vm514_vm3, %v7256_v15, %v7269_v0  ;;  %1729 = vperm.xlu2 %2637, %v7270_v59   ;;  %v7272_v24 = vld [vmem:[#allocation65_spill] sm:$0xff]  ;;  %v7274_v47 = vld [vmem:[#allocation192_spill] sm:$0xff]  ;;  %v4404_v59 = vpop.permute.xlu2 %1587 }
 0x2fa   :  { %7267 = vst [vmem:[#allocation70_spill] sm:$0xff] %v4366_v55  ;;  %v630_v29 = vmul.f32 %v7212_v4, %v566_v38  ;;  %v4391_v26 = vsel %vm743_vm9, %v7272_v24, %v7271_v32  ;;  %v571_v56 = vmul.f32 %v3863_v53, %v544_v62  ;;  %1832 = vrot.lane.b32.xlu0 %v7273_v30, %s2717_s30  ;;  %v7275_v44 = vld [vmem:[#allocation24_spill] sm:$0xff]  ;;  %v7276_v4 = vld [vmem:[#allocation82_spill] sm:$0xff] }
 0x2fb   :  { %1733 = vperm.xlu1 %2639, %v7274_v47   ;;  %v632_v18 = vmul.f32 %v7275_v44, %v568_v45  ;;  %v631_v15 = vmul.f32 %v7275_v44, %v567_v37  ;;  %v633_v63 = vmul.f32 %v7275_v44, %v569_v11  ;;  %v529_v38 = vsel %vm514_vm3, %v7269_v0, %v7276_v4  ;;  %v4417_v11 = vpop.permute.xlu1 %1500  ;;  %v7283_v13 = vld [vmem:[#allocation60_spill] sm:$0xff] }
 0x2fc   :  { %7277 = vst [vmem:[#allocation71_spill] sm:$0xff] %v4404_v59  ;;  %v4407_v62 = vadd.f32 %v629_v57, %v3875_v19  ;;  %v574_v60 = vmul.f32 %v3967_v3, %v520_v42  ;;  %v576_v47 = vmul.f32 %v3899_v33, %v537_v34  ;;  %v521_v37 = vsel %vm514_vm3, %v7276_v4, %v7257_v27  ;;  %v4415_v45 = vpop.permute.xlu0 %1595  ;;  %v7280_v57 = vld [vmem:[#allocation29_spill] sm:$0xff]  ;;  %v7281_v42 = vld [vmem:[#allocation222_spill] sm:$0xff]  ;;  %v7282_v34 = vld [vmem:[#allocation68_spill] sm:$0xff] }
 0x2fd   :  { %7278 = vst [vmem:[#allocation173_spill] sm:$0xff] %v4417_v11  ;;  %v634_v0 = vmul.f32 %v7275_v44, %v570_v48  ;;  %v637_v53 = vmul.f32 %v7279_v50, %v573_v14  ;;  %v636_v19 = vmul.f32 %v7279_v50, %v572_v43  ;;  %v639_v30 = vmul.f32 %v7280_v57, %v575_v51  ;;  %v7285_v14 = vld [vmem:[#allocation224_spill] sm:$0xff]  ;;  %v7286_v43 = vld [vmem:[#allocation227_spill] sm:$0xff]  ;;  %v7287_v59 = vld [vmem:[#allocation214_spill] sm:$0xff] }
 0x2fe   :  { %v4424_v55 = vadd.f32 %v630_v29, %v7281_v42  ;;  %v764_v27 = vsel %vm743_vm9, %v7283_v13, %v7282_v34  ;;  %v635_v4 = vmul.f32 %v7279_v50, %v571_v56  ;;  %v577_v11 = vmul.f32 %v3936_v6, %v529_v38  ;;  %v7288_v38 = vld [vmem:[#allocation206_spill] sm:$0xff]  ;;  %v7295_v6 = vld [vmem:[#allocation63_spill] sm:$0xff] }
 0x2ff   :  { %v4433_v48 = vadd.f32 %v632_v18, %v7284_v36  ;;  %v4436_v44 = vadd.f32 %v631_v15, %v7285_v14  ;;  %v4439_v51 = vadd.f32 %v633_v63, %v7286_v43  ;;  %v578_v29 = vmul.f32 %v3967_v3, %v521_v37  ;;  %v7289_v18 = vld [vmem:[#allocation228_spill] sm:$0xff]  ;;  %v7291_v63 = vld [vmem:[#allocation235_spill] sm:$0xff]  ;;  %v7294_v43 = vld [vmem:[#allocation177_spill] sm:$0xff] }
 0x300   :  { %v638_v42 = vmul.f32 %v7279_v50, %v574_v60  ;;  %v640_v52 = vmul.f32 %v7280_v57, %v576_v47  ;;  %v1429_v56 = vsel %vm1422_vm13, %v7287_v59, %v4265_v49  ;;  %v1453_v36 = vsel %vm1422_vm13, %v4265_v49, %v7288_v38  ;;  %v7292_v37 = vld [vmem:[#allocation232_spill] sm:$0xff]  ;;  %v7297_v49 = vld [vmem:[#allocation229_spill] sm:$0xff]  ;;  %v7314_v33 = vld [vmem:[#allocation83_spill] sm:$0xff] }
 0x301   :  { %v4453_v15 = vadd.f32 %v634_v0, %v7289_v18  ;;  %v4456_v14 = vadd.f32 %v637_v53, %v7291_v63  ;;  %v4459_v60 = vadd.f32 %v636_v19, %v7292_v37  ;;  %v7293_v50 = vld [vmem:[#allocation236_spill] sm:$0xff]  ;;  %1737 = vperm.xlu2 %2637, %v7294_v43   ;;  %v4470_v38 = vadd.f32 %v635_v4, %v7297_v49  ;;  %v7298_v53 = vld [vmem:[#allocation30_spill] sm:$0xff]  ;;  %v7299_v19 = vld [vmem:[#allocation197_spill] sm:$0xff]  ;;  %v4483_v4 = vpop.permute.xlu2 %1593 }
 0x302   :  { %v4462_v47 = vadd.f32 %v639_v30, %v7293_v50  ;;  %v7296_v59 = vld [vmem:[#allocation76_spill] sm:$0xff]  ;;  %v641_v0 = vmul.f32 %v7280_v57, %v577_v11  ;;  %1838 = vrot.lane.b32.xlu0 %v7298_v53, %s2717_s30  ;;  %v642_v30 = vmul.f32 %v7280_v57, %v578_v29  ;;  %v7300_v18 = vld [vmem:[#allocation81_spill] sm:$0xff]  ;;  %v1481_v37 = vmul.f32 %v3999_v7, %v1429_v56  ;;  %v7302_v43 = vld [vmem:[#allocation238_spill] sm:$0xff] }
 0x303   :  { %7290 = vst [vmem:[#allocation187_spill] sm:$0xff] %v4453_v15  ;;  %v765_v3 = vsel %vm743_vm9, %v7296_v59, %v7295_v6  ;;  %1745 = vperm.xlu1 %2639, %v7299_v19   ;;  %v755_v63 = vsel %vm743_vm9, %v7271_v32, %v7300_v18  ;;  %v1482_v50 = vmul.f32 %v4145_v23, %v1453_v36  ;;  %v7303_v49 = vld [vmem:[#allocation237_spill] sm:$0xff]  ;;  %v7304_v19 = vld [vmem:[#allocation84_spill] sm:$0xff]  ;;  %v7305_v15 = vld [vmem:[#allocation79_spill] sm:$0xff]  ;;  %v4501_v36 = vpop.permute.xlu1 %1512 }
 0x304   :  { %7301 = vst [vmem:[#allocation69_spill] sm:$0xff] %v4483_v4  ;;  %v4486_v11 = vadd.f32 %v638_v42, %v7302_v43  ;;  %v4489_v53 = vadd.f32 %v640_v52, %v7303_v49  ;;  %v758_v57 = vsel %vm743_vm9, %v7305_v15, %v7304_v19  ;;  %v7306_v29 = vld [vmem:[#allocation88_spill] sm:$0xff]  ;;  %v4499_v56 = vpop.permute.xlu0 %1601  ;;  %v7310_v42 = vld [vmem:[#allocation90_spill] sm:$0xff]  ;;  %v4512_v49 = vmul.f32 %v4501_v36, %v1481_v37 }
 0x305   :  { %v756_v32 = vsel %vm743_vm9, %v7282_v34, %v7306_v29  ;;  %7307 = vst [vmem:[#allocation72_spill] sm:$0xff] %v4499_v56  ;;  %v7309_v7 = vld [vmem:[#allocation92_spill] sm:$0xff]  ;;  %v772_v43 = vsel %vm743_vm9, %v7310_v42, %v7283_v13  ;;  %v4515_v4 = vmul.f32 %v4501_v36, %v1482_v50  ;;  %v766_v61 = vsel %vm743_vm9, %v7314_v33, %v7305_v15  ;;  %v7316_v37 = vld [vmem:[#allocation242_spill] sm:$0xff] }
 0x306   :  { %7308 = vst [vmem:[#allocation66_spill] sm:$0xff] %v4501_v36  ;;  %v757_v52 = vsel %vm743_vm9, %v7295_v6, %v7309_v7  ;;  %v7313_v34 = vld [vmem:[#allocation240_spill] sm:$0xff]  ;;  %v790_v6 = vmul.f32 %v3924_v1, %v755_v63  ;;  %v771_v13 = vsel %vm743_vm9, %v7315_v2, %v7272_v24  ;;  %v802_v50 = vmul.f32 %v3924_v1, %v758_v57 }
 0x307   :  { %7311 = vst [vmem:[#allocation73_spill] sm:$0xff] %v4512_v49  ;;  %v4518_v56 = vadd.f32 %v641_v0, %v7313_v34  ;;  %v4530_v49 = vadd.f32 %v642_v30, %v7316_v37  ;;  %v794_v0 = vmul.f32 %v3924_v1, %v756_v32  ;;  %v745_v34 = vsel %vm743_vm9, %v7210_v12, %v7224_v16  ;;  %v7317_v30 = vld [vmem:[#allocation100_spill] sm:$0xff]  ;;  %v7318_v32 = vld [vmem:[#allocation95_spill] sm:$0xff]  ;;  %v7319_v37 = vld [vmem:[#allocation37_spill] sm:$0xff] }
 0x308   :  { %7312 = vst [vmem:[#allocation74_spill] sm:$0xff] %v4515_v4  ;;  %v798_v15 = vmul.f32 %v3924_v1, %v757_v52  ;;  %v748_v63 = vsel %vm743_vm9, %v7306_v29, %v7310_v42  ;;  %v792_v24 = vmul.f32 %v3821_v25, %v772_v43  ;;  %v773_v57 = vsel %vm743_vm9, %v7317_v30, %v7296_v59  ;;  %v7320_v29 = vld [vmem:[#allocation5_spill] sm:$0xff]  ;;  %v7321_v52 = vld [vmem:[#allocation99_spill] sm:$0xff] }
 0x309   :  { %v744_v4 = vsel %vm743_vm9, %v7319_v37, %v7318_v32  ;;  %v747_v12 = vsel %vm743_vm9, %v7300_v18, %v7315_v2  ;;  %v788_v16 = vmul.f32 %v3821_v25, %v771_v13  ;;  %1812 = vrot.lane.b32.xlu2 %v7320_v29, %s2717_s30  ;;  %v857_v59 = vmul.f32 %v7321_v52, %v764_v27  ;;  %v7322_v32 = vld [vmem:[#allocation8_spill] sm:$0xff]  ;;  %v7323_v37 = vld [vmem:[#allocation13_spill] sm:$0xff]  ;;  %v7327_v29 = vld [vmem:[#allocation103_spill] sm:$0xff] }
 0x30a   :  { %v856_v42 = vmul.f32 %v7321_v52, %v792_v24  ;;  %v858_v43 = vmul.f32 %v7321_v52, %v794_v0  ;;  %1844 = vrot.lane.b32.xlu0 %v7322_v32, %s2717_s30  ;;  %v749_v2 = vsel %vm743_vm9, %v7309_v7, %v7317_v30  ;;  %v796_v18 = vmul.f32 %v3821_v25, %v773_v57  ;;  %v7324_v13 = vld [vmem:[#allocation101_spill] sm:$0xff]  ;;  %v4579_v24 = vpop.permute.xlu2 %1599  ;;  %v7326_v32 = vld [vmem:[#allocation247_spill] sm:$0xff] }
 0x30b   :  { %1816 = vrot.lane.b32.xlu1 %v7323_v37, %s2717_s30  ;;  %v774_v27 = vsel %vm743_vm9, %v7324_v13, %v7314_v33  ;;  %v4577_v0 = vmul.f32 %v7321_v52, %v748_v63  ;;  %v750_v1 = vsel %vm743_vm9, %v7304_v19, %v7324_v13  ;;  %v841_v7 = vmul.f32 %v7327_v29, %v7326_v32  ;;  %v4590_v37 = vpop.permute.xlu1 %1585  ;;  %v7329_v52 = vld [vmem:[#allocation106_spill] sm:$0xff] }
 0x30c   :  { %v843_v30 = vmul.f32 %v7327_v29, %v744_v4  ;;  %v4588_v57 = vpop.permute.xlu0 %1607  ;;  %v4596_v33 = vsel %vm1647_vm0, %v4263_v21, %v4579_v24  ;;  %v845_v63 = vmul.f32 %v7240_v10, %v4184_v39  ;;  %v847_v19 = vmul.f32 %v7240_v10, %v745_v34  ;;  %v7333_v10 = vld [vmem:[#allocation107_spill] sm:$0xff] }
 0x30d   :  { %7325 = vst [vmem:[#allocation77_spill] sm:$0xff] %v4577_v0  ;;  %v860_v13 = vmul.f32 %v7329_v52, %v796_v18  ;;  %v861_v32 = vmul.f32 %v7329_v52, %v765_v3  ;;  %v800_v4 = vmul.f32 %v3821_v25, %v774_v27  ;;  %v4605_v29 = vadd.f32 %v856_v42, %v4436_v44  ;;  %v7334_v18 = vld [vmem:[#allocation246_spill] sm:$0xff]  ;;  %v7357_v25 = vld [vmem:[#allocation123_spill] sm:$0xff] }
 0x30e   :  { %7328 = vst [vmem:[#allocation220_spill] sm:$0xff] %v4596_v33  ;;  %v862_v0 = vmul.f32 %v7329_v52, %v798_v15  ;;  %v863_v36 = vmul.f32 %v7329_v52, %v749_v2  ;;  %v4610_v33 = vadd.f32 %v857_v59, %v4433_v48  ;;  %v4613_v39 = vadd.f32 %v858_v43, %v4439_v51  ;;  %v7335_v59 = vld [vmem:[#allocation17_spill] sm:$0xff]  ;;  %v7348_v52 = vld [vmem:[#allocation115_spill] sm:$0xff] }
 0x30f   :  { %7330 = vst [vmem:[#allocation80_spill] sm:$0xff] %v4605_v29  ;;  %v852_v34 = vmul.f32 %v7333_v10, %v788_v16  ;;  %v853_v3 = vmul.f32 %v7333_v10, %v4391_v26  ;;  %v4619_v27 = vadd.f32 %v841_v7, %v7334_v18  ;;  %v4622_v44 = vadd.f32 %v843_v30, %v4158_v41 }
 0x310   :  { %7331 = vst [vmem:[#allocation188_spill] sm:$0xff] %v4610_v33  ;;  %v854_v15 = vmul.f32 %v7333_v10, %v790_v6  ;;  %v855_v42 = vmul.f32 %v7333_v10, %v747_v12  ;;  %v4627_v48 = vadd.f32 %v845_v63, %v4194_v54  ;;  %v4630_v51 = vadd.f32 %v847_v19, %v4200_v5  ;;  %v7338_v54 = vld [vmem:[#allocation110_spill] sm:$0xff]  ;;  %v7347_v19 = vld [vmem:[#allocation117_spill] sm:$0xff] }
 0x311   :  { %7332 = vst [vmem:[#allocation61_spill] sm:$0xff] %v4613_v39  ;;  %v4633_v16 = vadd.f32 %v860_v13, %v4470_v38  ;;  %v4636_v26 = vadd.f32 %v861_v32, %v4459_v60  ;;  %1818 = vrot.lane.b32.xlu2 %v7335_v59, %s2717_s30  ;;  %v4641_v41 = vadd.f32 %v862_v0, %v4456_v14  ;;  %v7339_v5 = vld [vmem:[#allocation22_spill] sm:$0xff]  ;;  %v7340_v38 = vld [vmem:[#allocation31_spill] sm:$0xff] }
 0x312   :  { %v4644_v6 = vadd.f32 %v863_v36, %v4486_v11  ;;  %v864_v12 = vmul.f32 %v7338_v54, %v800_v4  ;;  %1850 = vrot.lane.b32.xlu0 %v7339_v5, %s2717_s30  ;;  %v4652_v60 = vadd.f32 %v852_v34, %v4212_v31  ;;  %v4655_v43 = vadd.f32 %v853_v3, %v4370_v20  ;;  %v4659_v11 = vpop.permute.xlu2 %1605  ;;  %v7343_v20 = vld [vmem:[#allocation111_spill] sm:$0xff]  ;;  %v7345_v63 = vld [vmem:[#allocation114_spill] sm:$0xff]  ;;  %v7350_v34 = vld [vmem:[#allocation125_spill] sm:$0xff] }
 0x313   :  { %7336 = vst [vmem:[#allocation65_spill] sm:$0xff] %v4641_v41  ;;  %1822 = vrot.lane.b32.xlu1 %v7340_v38, %s2717_s30  ;;  %v865_v14 = vmul.f32 %v7338_v54, %v766_v61  ;;  %v866_v2 = vmul.f32 %v7338_v54, %v802_v50  ;;  %v4662_v36 = vadd.f32 %v854_v15, %v4407_v62  ;;  %v4670_v31 = vpop.permute.xlu1 %1591  ;;  %v7344_v50 = vld [vmem:[#allocation109_spill] sm:$0xff]  ;;  %v7351_v3 = vld [vmem:[#allocation108_spill] sm:$0xff]  ;;  %v7364_v59 = vld [vmem:[#allocation131_spill] sm:$0xff] }
 0x314   :  { %7337 = vst [vmem:[#allocation192_spill] sm:$0xff] %v4644_v6  ;;  %v4665_v0 = vadd.f32 %v855_v42, %v4424_v55  ;;  %v867_v7 = vmul.f32 %v7338_v54, %v750_v1  ;;  %v4668_v30 = vpop.permute.xlu0 %1613  ;;  %v4676_v61 = vsel %vm1647_vm0, %v4334_v8, %v4659_v11  ;;  %v985_v62 = vsel %vm968_vm11, %v7344_v50, %v7343_v20  ;;  %v7346_v55 = vld [vmem:[#allocation112_spill] sm:$0xff]  ;;  %v7352_v54 = vld [vmem:[#allocation133_spill] sm:$0xff] }
 0x315   :  { %7341 = vst [vmem:[#allocation24_spill] sm:$0xff] %v4670_v31  ;;  %v988_v1 = vsel %vm968_vm11, %v7346_v55, %v7345_v63  ;;  %v991_v13 = vsel %vm968_vm11, %v7348_v52, %v7347_v19  ;;  %v4694_v32 = vsel %vm1647_vm0, %v4670_v31, %v4588_v57  ;;  %v4697_v4 = vadd.f32 %v864_v12, %v4462_v47  ;;  %v7353_v20 = vld [vmem:[#allocation128_spill] sm:$0xff]  ;;  %v7425_v31 = vld [vmem:[#allocation223_spill] sm:$0xff] }
 0x316   :  { %7342 = vst [vmem:[#allocation82_spill] sm:$0xff] %v4676_v61  ;;  %v986_v10 = vsel %vm968_vm11, %v7227_v40, %v7226_v9  ;;  %v990_v18 = vsel %vm968_vm11, %v7351_v3, %v7350_v34  ;;  %v4708_v15 = vadd.f32 %v865_v14, %v4489_v53  ;;  %v4711_v42 = vadd.f32 %v866_v2, %v4518_v56  ;;  %v7354_v14 = vld [vmem:[#allocation121_spill] sm:$0xff]  ;;  %v7355_v2 = vld [vmem:[#allocation116_spill] sm:$0xff] }
 0x317   :  { %7349 = vst [vmem:[#allocation38_spill] sm:$0xff] %v4694_v32  ;;  %v969_v47 = vsel %vm968_vm11, %v7353_v20, %v7352_v54  ;;  %v2718_v12 = vmov 7   ;;  %v4718_v9 = vadd.f32 %v867_v7, %v4530_v49  ;;  %v1006_v40 = vmul.f32 %v4238_v46, %v985_v62  ;;  %v7359_v7 = vld [vmem:[#allocation35_spill] sm:$0xff]  ;;  %v7360_v62 = vld [vmem:[#allocation130_spill] sm:$0xff]  ;;  %v7365_v38 = vld [vmem:[#allocation132_spill] sm:$0xff] }
 0x318   :  { %2642 = vset.pattern.permute.xlu0 %v2718_v12  ;;  %2640 = vset.pattern.permute.xlu1 %v2718_v12  ;;  %v1018_v50 = vmul.f32 %v4238_v46, %v988_v1  ;;  %v1030_v53 = vmul.f32 %v4238_v46, %v991_v13  ;;  %v1010_v56 = vmul.f32 %v4238_v46, %v986_v10  ;;  %v7361_v10 = vld [vmem:[#allocation135_spill] sm:$0xff]  ;;  %v7426_v61 = vld [vmem:[#allocation217_spill] sm:$0xff] }
 0x319   :  { %2641 = vset.pattern.permute.xlu2 %v2718_v12  ;;  %v4728_v54 = vsel %vm968_vm11, %v7355_v2, %v7354_v14  ;;  %v1026_v20 = vmul.f32 %v4238_v46, %v990_v18  ;;  %v4735_v49 = vsel %vm968_vm11, %v7354_v14, %v7357_v25  ;;  %v982_v1 = vsel %vm968_vm11, %v7350_v34, %v7360_v62  ;;  %v7362_v12 = vld [vmem:[#allocation40_spill] sm:$0xff]  ;;  %v7363_v14 = vld [vmem:[#allocation6_spill] sm:$0xff] }
 0x31a   :  { %7356 = vst [vmem:[#allocation29_spill] sm:$0xff] %v4728_v54  ;;  %1824 = vrot.lane.b32.xlu2 %v7359_v7, %s2717_s30  ;;  %v1008_v13 = vmul.f32 %v4145_v23, %v969_v47  ;;  %v996_v18 = vsel %vm968_vm11, %v7361_v10, %v7346_v55  ;;  %1856 = vrot.lane.b32.xlu0 %v7362_v12, %s2717_s30  ;;  %v4764_v47 = vpop.permute.xlu2 %1611  ;;  %v7366_v12 = vld [vmem:[#allocation210_spill] sm:$0xff]  ;;  %v7424_v25 = vld [vmem:[#allocation164_spill] sm:$0xff] }
 0x31b   :  { %7358 = vst [vmem:[#allocation222_spill] sm:$0xff] %v4735_v49  ;;  %1828 = vrot.lane.b32.xlu1 %v7363_v14, %s2717_s30  ;;  %v980_v5 = vsel %vm968_vm11, %v7345_v63, %v7364_v59  ;;  %v974_v34 = vsel %vm968_vm11, %v7360_v62, %v7365_v38  ;;  %v998_v55 = vsel %vm968_vm11, %v7365_v38, %v7351_v3  ;;  %v7367_v32 = vand.u32 255, %v7366_v12  ;;  %v7368_v14 = vld [vmem:[#allocation134_spill] sm:$0xff]  ;;  %v4776_v29 = vpop.permute.xlu1 %1597 }
 0x31c   :  { %v983_v63 = vsel %vm968_vm11, %v7347_v19, %v7368_v14  ;;  %v1070_v39 = vmul.f32 %v3473_v17, %v1006_v40  ;;  %v1072_v33 = vmul.f32 %v3473_v17, %v1008_v13  ;;  %v4774_v62 = vpop.permute.xlu0 %1619  ;;  %7369 = vst [vmem:[#allocation68_spill] sm:$0xff] %v4776_v29  ;;  %v4782_v38 = vsel %vm1647_vm0, %v4415_v45, %v4764_v47  ;;  %v7371_v40 = vld [vmem:[#allocation248_spill] sm:$0xff]  ;;  %v7374_v54 = vld [vmem:[#allocation138_spill] sm:$0xff] }
 0x31d   :  { %vm335_vm1 = vcmp.lt.s32.totalorder %v7367_v32, 240  ;;  %v972_v32 = vsel %vm968_vm11, %v7364_v59, %v7361_v10  ;;  %v1017_v19 = vmul.f32 %v4016_v58, %v996_v18  ;;  %v970_v17 = vsel %vm968_vm11, %v7225_v28, %v7228_v22 }
 0x31e   :  { %v4797_v3 = vsel %vm1647_vm0, %v4776_v29, %v4668_v30  ;;  %v1027_v13 = vmul.f32 %v7371_v40, %v982_v1  ;;  %v1019_v12 = vmul.f32 %v7371_v40, %v980_v5  ;;  %v1025_v49 = vmul.f32 %v4016_v58, %v998_v55  ;;  %v7375_v1 = vld [vmem:[#allocation137_spill] sm:$0xff] }
 0x31f   :  { %7370 = vst [vmem:[#allocation60_spill] sm:$0xff] %v4797_v3  ;;  %v7372_v59 = vmov 0.0   ;;  %v1031_v18 = vmul.f32 %v7371_v40, %v983_v63  ;;  %v975_v28 = vsel %vm968_vm11, %v7368_v14, %v7374_v54  ;;  %v999_v22 = vsel %vm968_vm11, %v7374_v54, %v7348_v52  ;;  %v7376_v52 = vld [vmem:[#allocation10_spill] sm:$0xff] }
 0x320   :  { %v4803_v10 = vsel %vm335_vm1, 1.0, %v7372_v59  ;;  %v1081_v3 = vmul.f32 %v7375_v1, %v1017_v19  ;;  %v1028_v5 = vmul.f32 %v4145_v23, %v974_v34  ;;  %v1020_v55 = vmul.f32 %v4145_v23, %v972_v32  ;;  %v7377_v54 = vld [vmem:[#allocation226_spill] sm:$0xff] }
 0x321   :  { %7373 = vst [vmem:[#allocation225_spill] sm:$0xff] %v4803_v10  ;;  %v1012_v29 = vmul.f32 %v4145_v23, %v970_v17  ;;  %v4819_v63 = vadd.f32 %v1070_v39, %v4619_v27  ;;  %v4822_v40 = vadd.f32 %v1072_v33, %v4622_v44  ;;  %v1082_v14 = vmul.f32 %v7375_v1, %v1018_v50  ;;  %v7378_v33 = vld [vmem:[#allocation12_spill] sm:$0xff]  ;;  %v7379_v27 = vld [vmem:[#allocation18_spill] sm:$0xff]  ;;  %v7380_v50 = vld [vmem:[#allocation141_spill] sm:$0xff] }
 0x322   :  { %v1083_v6 = vmul.f32 %v7375_v1, %v1019_v12  ;;  %1830 = vrot.lane.b32.xlu2 %v7376_v52, %s2717_s30  ;;  %v4830_v34 = vmul.f32 %v7377_v54, %v4803_v10  ;;  %v1029_v32 = vmul.f32 %v4016_v58, %v999_v22  ;;  %v1032_v19 = vmul.f32 %v4145_v23, %v975_v28  ;;  %v7381_v12 = vld [vmem:[#allocation140_spill] sm:$0xff]  ;;  %v4845_v22 = vpop.permute.xlu2 %1617 }
 0x323   :  { %v1084_v39 = vmul.f32 %v7375_v1, %v1020_v55  ;;  %1862 = vrot.lane.b32.xlu0 %v7378_v33, %s2717_s30  ;;  %1834 = vrot.lane.b32.xlu1 %v7379_v27, %s2717_s30  ;;  %v4840_v44 = vadd.f32 %v1081_v3, %v4652_v60  ;;  %v1074_v17 = vmul.f32 %v7380_v50, %v1010_v56  ;;  %v7383_v1 = vld [vmem:[#allocation144_spill] sm:$0xff]  ;;  %v1604_v33 = vpop.permute.xlu1 %1603  ;;  %v7385_v3 = vld [vmem:[#allocation213_spill] sm:$0xff] }
 0x324   :  { %v1089_v52 = vmul.f32 %v7381_v12, %v1025_v49  ;;  %v1090_v10 = vmul.f32 %v7381_v12, %v1026_v20  ;;  %7382 = vst [vmem:[#allocation224_spill] sm:$0xff] %v4845_v22  ;;  %v1076_v28 = vmul.f32 %v7380_v50, %v1012_v29  ;;  %v1093_v55 = vmul.f32 %v7383_v1, %v1029_v32  ;;  %v4849_v58 = vpop.permute.xlu0 %1625  ;;  %v7384_v27 = vld [vmem:[#allocation72_spill] sm:$0xff]  ;;  %v7388_v29 = vld [vmem:[#allocation71_spill] sm:$0xff] }
 0x325   :  { %v1657_v60 = vsel %vm1647_vm0, %v7384_v27, %v4845_v22  ;;  %v7386_v56 = vand.u32 255, %v7385_v3  ;;  %v1094_v49 = vmul.f32 %v7383_v1, %v1030_v53  ;;  %v4861_v20 = vsel %vm1647_vm0, %v1604_v33, %v4774_v62 }
 0x326   :  { %7387 = vst [vmem:[#allocation227_spill] sm:$0xff] %v4861_v20  ;;  %v4866_v32 = vsel %vm1647_vm0, %v7388_v29, %v1604_v33  ;;  %v4869_v50 = vmul.f32 %v4830_v34, %v1657_v60  ;;  %v4872_v41 = vadd.f32 %v1082_v14, %v4655_v43  ;;  %v4875_v3 = vadd.f32 %v1083_v6, %v4662_v36  ;;  %v7395_v36 = vld [vmem:[#allocation152_spill] sm:$0xff]  ;;  %v7397_v14 = vld [vmem:[#allocation159_spill] sm:$0xff] }
 0x327   :  { %vm337_vm2 = vcmp.lt.s32.totalorder %v7386_v56, 240  ;;  %7389 = vst [vmem:[#allocation228_spill] sm:$0xff] %v4866_v32  ;;  %v1095_v53 = vmul.f32 %v7383_v1, %v1031_v18  ;;  %v1096_v56 = vmul.f32 %v7383_v1, %v1032_v19  ;;  %v4880_v20 = vadd.f32 %v1084_v39, %v4665_v0  ;;  %v7396_v18 = vld [vmem:[#allocation147_spill] sm:$0xff] }
 0x328   :  { %v4883_v2 = vmul.f32 %v7381_v12, %v1027_v13  ;;  %v4886_v33 = vmul.f32 %v7381_v12, %v1028_v5  ;;  %v4889_v60 = vsel %vm337_vm2, 1.0, %v7372_v59  ;;  %v4892_v43 = vadd.f32 %v1089_v52, %v4633_v16  ;;  %v7398_v13 = vld [vmem:[#allocation157_spill] sm:$0xff]  ;;  %v7406_v1 = vld [vmem:[#allocation163_spill] sm:$0xff] }
 0x329   :  { %7392 = vst [vmem:[#allocation236_spill] sm:$0xff] %v4889_v60  ;;  %v4895_v6 = vadd.f32 %v1090_v10, %v4636_v26  ;;  %v1215_v0 = vsel %vm1197_vm12, %v7396_v18, %v7395_v36  ;;  %v1219_v5 = vsel %vm1197_vm12, %v7398_v13, %v7397_v14  ;;  %v4906_v19 = vadd.f32 %v1074_v17, %v4627_v48  ;;  %v7399_v10 = vld [vmem:[#allocation23_spill] sm:$0xff]  ;;  %v7410_v18 = vld [vmem:[#allocation166_spill] sm:$0xff] }
 0x32a   :  { %7390 = vst [vmem:[#allocation235_spill] sm:$0xff] %v4883_v2  ;;  %v4909_v59 = vadd.f32 %v1076_v28, %v4630_v51  ;;  %v4912_v16 = vadd.f32 %v1093_v55, %v4697_v4  ;;  %v4915_v26 = vadd.f32 %v1094_v49, %v4708_v15  ;;  %1836 = vrot.lane.b32.xlu2 %v7399_v10, %s2717_s30  ;;  %v7400_v48 = vld [vmem:[#allocation27_spill] sm:$0xff]  ;;  %v7401_v51 = vld [vmem:[#allocation36_spill] sm:$0xff]  ;;  %v7407_v55 = vld [vmem:[#allocation146_spill] sm:$0xff] }
 0x32b   :  { %7391 = vst [vmem:[#allocation232_spill] sm:$0xff] %v4886_v33  ;;  %v4920_v52 = vadd.f32 %v1095_v53, %v4711_v42  ;;  %v4923_v39 = vadd.f32 %v1096_v56, %v4718_v9  ;;  %1868 = vrot.lane.b32.xlu0 %v7400_v48, %s2717_s30  ;;  %1840 = vrot.lane.b32.xlu1 %v7401_v51, %s2717_s30  ;;  %v7402_v4 = vld [vmem:[#allocation239_spill] sm:$0xff]  ;;  %v7404_v42 = vld [vmem:[#allocation160_spill] sm:$0xff]  ;;  %v4945_v53 = vpop.permute.xlu2 %1623  ;;  %v7409_v56 = vld [vmem:[#allocation165_spill] sm:$0xff]  ;;  %v1610_v48 = vpop.permute.xlu1 %1609 }
 0x32c   :  { %7393 = vst [vmem:[#allocation177_spill] sm:$0xff] %v4892_v43  ;;  %v4931_v17 = vmul.f32 %v7402_v4, %v4889_v60  ;;  %v1235_v15 = vmul.f32 %v7377_v54, %v1215_v0  ;;  %v4935_v12 = vmul.f32 %v7377_v54, %v1219_v5  ;;  %v7405_v28 = vld [vmem:[#allocation143_spill] sm:$0xff]  ;;  %v1217_v49 = vsel %vm1197_vm12, %v7407_v55, %v7406_v1  ;;  %v7411_v0 = vld [vmem:[#allocation149_spill] sm:$0xff]  ;;  %v7413_v60 = vld [vmem:[#allocation162_spill] sm:$0xff] }
 0x32d   :  { %7394 = vst [vmem:[#allocation63_spill] sm:$0xff] %v4895_v6  ;;  %v1214_v9 = vsel %vm1197_vm12, %v7405_v28, %v7404_v42  ;;  %v1209_v36 = vsel %vm1197_vm12, %v7406_v1, %v7409_v56  ;;  %v1220_v5 = vsel %vm1197_vm12, %v7411_v0, %v7410_v18  ;;  %v7412_v10 = vld [vmem:[#allocation167_spill] sm:$0xff]  ;;  %v1632_v28 = vpop.permute.xlu0 %1631  ;;  %v4963_v51 = vsel %vm1647_vm0, %v4588_v57, %v4945_v53  ;;  %v7416_v1 = vld [vmem:[#allocation169_spill] sm:$0xff]  ;;  %v7420_v57 = vld [vmem:[#allocation168_spill] sm:$0xff] }
 0x32e   :  { %7403 = vst [vmem:[#allocation76_spill] sm:$0xff] %v4931_v17  ;;  %v1198_v42 = vsel %vm1197_vm12, %v7413_v60, %v7412_v10  ;;  %v7415_v32 = vld [vmem:[#allocation171_spill] sm:$0xff]  ;;  %v1672_v43 = vsel %vm1647_vm0, %v1632_v28, %v4263_v21  ;;  %v4975_v60 = vsel %vm1647_vm0, %v1610_v48, %v4849_v58  ;;  %v7418_v10 = vld [vmem:[#allocation69_spill] sm:$0xff] }
 0x32f   :  { %7408 = vst [vmem:[#allocation229_spill] sm:$0xff] %v4945_v53  ;;  %v1199_v6 = vsel %vm1197_vm12, %v7416_v1, %v7415_v32  ;;  %v4980_v33 = vsel %vm1647_vm0, %v7418_v10, %v1610_v48  ;;  %v7421_v32 = vld [vmem:[#allocation170_spill] sm:$0xff]  ;;  %v4995_v2 = vmul.f32 %v4931_v17, %v1672_v43  ;;  %v1231_v48 = vmul.f32 %v7377_v54, %v1214_v9 }
 0x330   :  { %7414 = vst [vmem:[#allocation197_spill] sm:$0xff] %v4963_v51  ;;  %v1212_v51 = vsel %vm1197_vm12, %v7410_v18, %v7420_v57  ;;  %v1225_v21 = vsel %vm1197_vm12, %v7421_v32, %v7407_v55  ;;  %v7422_v1 = vld [vmem:[#allocation174_spill] sm:$0xff]  ;;  %v1211_v18 = vsel %vm1197_vm12, %v7397_v14, %v7424_v25  ;;  %v1244_v53 = vmul.f32 %v7425_v31, %v1209_v36 }
 0x331   :  { %7417 = vst [vmem:[#allocation81_spill] sm:$0xff] %v4975_v60  ;;  %v1228_v60 = vsel %vm1197_vm12, %v7422_v1, %v7411_v0  ;;  %v1204_v55 = vsel %vm1197_vm12, %v7420_v57, %v7422_v1  ;;  %v1255_v0 = vmul.f32 %v7377_v54, %v1220_v5  ;;  %v1233_v43 = vmul.f32 %v7402_v4, %v1198_v42  ;;  %v7427_v57 = vld [vmem:[#allocation41_spill] sm:$0xff]  ;;  %v7428_v5 = vld [vmem:[#allocation178_spill] sm:$0xff]  ;;  %v7430_v1 = vld [vmem:[#allocation11_spill] sm:$0xff] }
 0x332   :  { %7419 = vst [vmem:[#allocation238_spill] sm:$0xff] %v4980_v33  ;;  %v1243_v33 = vmul.f32 %v7377_v54, %v1217_v49  ;;  %v1237_v9 = vmul.f32 %v7402_v4, %v1199_v6  ;;  %v1256_v49 = vmul.f32 %v7425_v31, %v1212_v51  ;;  %v1201_v14 = vsel %vm1197_vm12, %v7409_v56, %v7421_v32  ;;  %v7429_v51 = vld [vmem:[#allocation50_spill] sm:$0xff]  ;;  %v7431_v56 = vld [vmem:[#allocation183_spill] sm:$0xff] }
 0x333   :  { %7423 = vst [vmem:[#allocation237_spill] sm:$0xff] %v4995_v2  ;;  %v1242_v22 = vmul.f32 %v7426_v61, %v1225_v21  ;;  %v1254_v2 = vmul.f32 %v7426_v61, %v1228_v60  ;;  %1842 = vrot.lane.b32.xlu2 %v7427_v57, %s2717_s30  ;;  %v1257_v36 = vmul.f32 %v7402_v4, %v1204_v55  ;;  %v7432_v21 = vld [vmem:[#allocation184_spill] sm:$0xff]  ;;  %v1616_v17 = vpop.permute.xlu1 %1615 }
 0x334   :  { %v1299_v42 = vmul.f32 %v7428_v5, %v1235_v15  ;;  %v1301_v6 = vmul.f32 %v7428_v5, %v1237_v9  ;;  %1874 = vrot.lane.b32.xlu0 %v7429_v51, %s2717_s30  ;;  %1846 = vrot.lane.b32.xlu1 %v7430_v1, %s2717_s30  ;;  %v1203_v60 = vsel %vm1197_vm12, %v7424_v25, %v7431_v56  ;;  %v5037_v9 = vpop.permute.xlu2 %1629  ;;  %v7433_v5 = vld [vmem:[#allocation186_spill] sm:$0xff] }
 0x335   :  { %v1227_v32 = vsel %vm1197_vm12, %v7431_v56, %v7398_v13  ;;  %v1318_v15 = vmul.f32 %v7432_v21, %v1254_v2  ;;  %v1319_v55 = vmul.f32 %v7432_v21, %v1255_v0  ;;  %v1295_v57 = vmul.f32 %v7433_v5, %v1231_v48  ;;  %v1638_v54 = vpop.permute.xlu0 %1637 }
 0x336   :  { %v1320_v1 = vmul.f32 %v7432_v21, %v1256_v49  ;;  %v1321_v51 = vmul.f32 %v7432_v21, %v1257_v36  ;;  %v5046_v25 = vsel %vm1647_vm0, %v4668_v30, %v5037_v9  ;;  %v1297_v2 = vmul.f32 %v7433_v5, %v1233_v43  ;;  %v7435_v36 = vld [vmem:[#allocation191_spill] sm:$0xff] }
 0x337   :  { %7434 = vst [vmem:[#allocation84_spill] sm:$0xff] %v5046_v25  ;;  %v5052_v13 = vsel %vm1647_vm0, %v1638_v54, %v4334_v8  ;;  %v5056_v48 = vsel %vm1647_vm0, %v1616_v17, %v1632_v28  ;;  %v1656_v0 = vsel %vm1647_vm0, %v4579_v24, %v1616_v17  ;;  %v5062_v49 = vmul.f32 %v7425_v31, %v1211_v18 }
 0x338   :  { %v1245_v30 = vmul.f32 %v7402_v4, %v1201_v14  ;;  %v1306_v43 = vmul.f32 %v7435_v36, %v1242_v22  ;;  %v5067_v56 = vmul.f32 %v4830_v34, %v1656_v0  ;;  %v1307_v8 = vmul.f32 %v7435_v36, %v1243_v33  ;;  %v7436_v14 = vld [vmem:[#allocation16_spill] sm:$0xff]  ;;  %v7446_v0 = vld [vmem:[#allocation195_spill] sm:$0xff] }
 0x339   :  { %v1308_v21 = vmul.f32 %v7435_v36, %v1244_v53  ;;  %v1331_v28 = vadd.f32 %v1299_v42, %v4906_v19  ;;  %v5073_v5 = vadd.f32 %v1301_v6, %v4909_v59  ;;  %v1250_v24 = vmul.f32 %v7426_v61, %v1227_v32  ;;  %v7437_v42 = vld [vmem:[#allocation208_spill] sm:$0xff]  ;;  %v7442_v6 = vld [vmem:[#allocation203_spill] sm:$0xff] }
 0x33a   :  { %v5077_v17 = vmul.f32 %v7402_v4, %v1203_v60  ;;  %v5080_v18 = vadd.f32 %v1318_v15, %v4912_v16  ;;  %v5083_v22 = vadd.f32 %v1319_v55, %v4915_v26  ;;  %v5086_v33 = vadd.f32 %v1295_v57, %v4819_v63  ;;  %v7438_v26 = vld [vmem:[#allocation209_spill] sm:$0xff]  ;;  %v7444_v60 = vld [vmem:[#allocation19_spill] sm:$0xff] }
 0x33b   :  { %v5089_v53 = vadd.f32 %v1297_v2, %v4822_v40  ;;  %v5092_v19 = vadd.f32 %v1320_v1, %v4920_v52  ;;  %v5095_v59 = vadd.f32 %v1321_v51, %v4923_v39  ;;  %1848 = vrot.lane.b32.xlu2 %v7436_v14, %s2717_s30  ;;  %v1309_v16 = vmul.f32 %v7435_v36, %v1245_v30  ;;  %v5110_v40 = vld [vmem:[%s6596_s3 + $0x10] sm:$0xff]  ;;  %v7440_v52 = vld [vmem:[#allocation26_spill] sm:$0xff]  ;;  %v7443_v1 = vld [vmem:[#allocation200_spill] sm:$0xff] }
 0x33c   :  { %v1432_v63 = vsel %vm1422_vm13, %v7438_v26, %v7437_v42  ;;  %v5105_v57 = vadd.f32 %v1306_v43, %v4840_v44  ;;  %7439 = vst [vmem:[#allocation79_spill] sm:$0xff] %v5110_v40  ;;  %1950 = vperm.xlu0 %2642, %v5110_v40   ;;  %1852 = vrot.lane.b32.xlu1 %v7440_v52, %s2717_s30  ;;  %v7441_v39 = vld [vmem:[#allocation202_spill] sm:$0xff]  ;;  %v1636_v55 = vpop.permute.xlu2 %1635  ;;  %v7445_v2 = vld [vmem:[#allocation204_spill] sm:$0xff]  ;;  %v7447_v36 = vld [vmem:[#allocation207_spill] sm:$0xff]  ;;  %v1622_v52 = vpop.permute.xlu1 %1621 }
 0x33d   :  { %v1442_v51 = vsel %vm1422_vm13, %v7442_v6, %v7441_v39  ;;  %v1447_v44 = vsel %vm1422_vm13, %v7444_v60, %v7443_v1  ;;  %v5124_v32 = vadd.f32 %v1307_v8, %v4872_v41  ;;  %v5127_v15 = vadd.f32 %v1308_v21, %v4875_v3  ;;  %v7448_v43 = vld [vmem:[#allocation199_spill] sm:$0xff]  ;;  %v1644_v26 = vpop.permute.xlu0 %1643  ;;  %v7451_v60 = vld [vmem:[#allocation205_spill] sm:$0xff] }
 0x33e   :  { %v1444_v30 = vsel %vm1422_vm13, %v7446_v0, %v7445_v2  ;;  %v1431_v42 = vsel %vm1422_vm13, %v7448_v43, %v7447_v36  ;;  %v5140_v41 = vsel %vm1647_vm0, %v4774_v62, %v1636_v55  ;;  %v5145_v3 = vsel %vm1647_vm0, %v1636_v55, %v7388_v29  ;;  %v7452_v0 = vld [vmem:[#allocation206_spill] sm:$0xff]  ;;  %v7455_v43 = vld [vmem:[#allocation196_spill] sm:$0xff] }
 0x33f   :  { %7449 = vst [vmem:[#allocation88_spill] sm:$0xff] %v5140_v41  ;;  %v1460_v8 = vmul.f32 %v4238_v46, %v1432_v63  ;;  %v5151_v21 = vsel %vm1647_vm0, %v1644_v26, %v4415_v45  ;;  %v5155_v1 = vsel %vm1647_vm0, %v1622_v52, %v1638_v54  ;;  %v5160_v62 = vsel %vm1647_vm0, %v4659_v11, %v1622_v52  ;;  %v7453_v63 = vld [vmem:[#allocation211_spill] sm:$0xff]  ;;  %v7454_v55 = vld [vmem:[#allocation214_spill] sm:$0xff] }
 0x340   :  { %7450 = vst [vmem:[#allocation92_spill] sm:$0xff] %v5145_v3  ;;  %v1445_v29 = vsel %vm1422_vm13, %v7452_v0, %v7451_v60  ;;  %v1434_v45 = vsel %vm1422_vm13, %v7441_v39, %v7453_v63  ;;  %v1437_v54 = vsel %vm1422_vm13, %v7451_v60, %v7454_v55  ;;  %v1458_v36 = vmul.f32 %v4145_v23, %v1447_v44  ;;  %v7456_v0 = vld [vmem:[#allocation136_spill] sm:$0xff]  ;;  %v7457_v39 = vld [vmem:[#allocation241_spill] sm:$0xff] }
 0x341   :  { %v5176_v11 = vmul.f32 %v7455_v43, %v1250_v24  ;;  %v5180_v52 = vmul.f32 %v7455_v43, %v4935_v12  ;;  %v1524_v40 = vmul.f32 %v7456_v0, %v1460_v8  ;;  %v5184_v14 = vadd.f32 %v1309_v16, %v4880_v20  ;;  %v7458_v20 = vld [vmem:[#allocation189_spill] sm:$0xff]  ;;  %v7459_v16 = vld [vmem:[#allocation231_spill] sm:$0xff] }
 0x342   :  { %v1467_v25 = vmul.f32 %v7457_v39, %v1442_v51  ;;  %v5188_v4 = vmul.f32 %v7457_v39, %v1444_v30  ;;  %v1456_v60 = vmul.f32 %v4238_v46, %v1431_v42  ;;  %v1665_v24 = vsel %vm1647_vm0, %v4590_v37, %v7384_v27  ;;  %v7460_v30 = vld [vmem:[#allocation32_spill] sm:$0xff]  ;;  %v7461_v42 = vld [vmem:[#allocation245_spill] sm:$0xff] }
 0x343   :  { %v1479_v12 = vmul.f32 %v7457_v39, %v1445_v29  ;;  %v1468_v44 = vmul.f32 %v4238_v46, %v1434_v45  ;;  %v1480_v8 = vmul.f32 %v4238_v46, %v1437_v54  ;;  %v1448_v51 = vsel %vm1422_vm13, %v7459_v16, %v7458_v20  ;;  %1854 = vrot.lane.b32.xlu2 %v7460_v30, %s2717_s30  ;;  %v7462_v27 = vld [vmem:[#allocation48_spill] sm:$0xff] }
 0x344   :  { %v1436_v55 = vsel %vm1422_vm13, %v7445_v2, %v7461_v42  ;;  %v1520_v3 = vmul.f32 %v7462_v27, %v1456_v60  ;;  %v1522_v29 = vmul.f32 %v7462_v27, %v1458_v36  ;;  %2049 = vrot.lane.b32.xlu0 %v7359_v7, %s2719_s1  ;;  %v7463_v45 = vld [vmem:[#allocation44_spill] sm:$0xff]  ;;  %v1556_v60 = vadd.f32 %v1524_v40, %v1331_v28  ;;  %v1642_v16 = vpop.permute.xlu2 %1641  ;;  %v7465_v42 = vld [vmem:[#allocation66_spill] sm:$0xff]  ;;  %v1628_v41 = vpop.permute.xlu1 %1627 }
 0x345   :  { %1858 = vrot.lane.b32.xlu1 %v7463_v45, %s2717_s30  ;;  %v7464_v54 = vld [vmem:[#allocation52_spill] sm:$0xff]  ;;  %v1688_v36 = vmul.f32 %v7426_v61, %v1665_v24  ;;  %v1543_v27 = vmul.f32 %v7465_v42, %v1479_v12  ;;  %v1544_v7 = vmul.f32 %v7465_v42, %v1480_v8  ;;  %v5225_v39 = vpop.permute.xlu0 %1721  ;;  %v1654_v24 = vsel %vm1647_vm0, %v1628_v41, %v1644_v26  ;;  %v7467_v42 = vld [vmem:[#allocation67_spill] sm:$0xff] }
 0x346   :  { %v1426_v20 = vsel %vm1422_vm13, %v7453_v63, %v7464_v54  ;;  %v1450_v2 = vsel %vm1422_vm13, %v7464_v54, %v7442_v6  ;;  %v5230_v63 = vsel %vm1647_vm0, %v4849_v58, %v1642_v16  ;;  %v5235_v6 = vsel %vm1647_vm0, %v1642_v16, %v7418_v10  ;;  %v7466_v54 = vld [vmem:[#allocation243_spill] sm:$0xff] }
 0x347   :  { %v1752_v28 = vmul.f32 %v5225_v39, %v1688_v36  ;;  %v1753_v40 = vmul.f32 %v5225_v39, %v4869_v50  ;;  %v1662_v12 = vsel %vm1647_vm0, %v4764_v47, %v1628_v41  ;;  %v1462_v58 = vmul.f32 %v4145_v23, %v1448_v51  ;;  %v7469_v41 = vld [vmem:[#allocation173_spill] sm:$0xff] }
 0x348   :  { %v5247_v8 = vmul.f32 %v4238_v46, %v1436_v55  ;;  %v1552_v10 = vadd.f32 %v1520_v3, %v5086_v33  ;;  %v1469_v16 = vmul.f32 %v7466_v54, %v1426_v20  ;;  %v1554_v36 = vadd.f32 %v1522_v29, %v5089_v53  ;;  %v7470_v29 = vld [vmem:[#allocation73_spill] sm:$0xff] }
 0x349   :  { %v1470_v50 = vmul.f32 %v4145_v23, %v1450_v2  ;;  %v5254_v30 = vadd.f32 %v1752_v28, %v7467_v42  ;;  %v5256_v26 = vadd.f32 %v1753_v40, %v1556_v60  ;;  %v1526_v47 = vmul.f32 %v7456_v0, %v1462_v58  ;;  %v7471_v2 = vld [vmem:[#allocation7_spill] sm:$0xff]  ;;  %v7472_v0 = vld [vmem:[#allocation74_spill] sm:$0xff] }
 0x34a   :  { %v1531_v51 = vmul.f32 %v7469_v41, %v1467_v25  ;;  %v1532_v55 = vmul.f32 %v7469_v41, %v1468_v44  ;;  %v1533_v46 = vmul.f32 %v7469_v41, %v1469_v16  ;;  %v1575_v3 = vadd.f32 %v1543_v27, %v5080_v18  ;;  %v7473_v25 = vld [vmem:[#allocation220_spill] sm:$0xff]  ;;  %v7474_v18 = vld [vmem:[#allocation15_spill] sm:$0xff] }
 0x34b   :  { %7468 = vst [vmem:[#allocation90_spill] sm:$0xff] %v5256_v26  ;;  %v1534_v33 = vmul.f32 %v7469_v41, %v1470_v50  ;;  %v1576_v53 = vadd.f32 %v1544_v7, %v5083_v22  ;;  %v1577_v20 = vadd.f32 %v7470_v29, %v5092_v19  ;;  %1860 = vrot.lane.b32.xlu2 %v7471_v2, %s2717_s30  ;;  %v7475_v19 = vld [vmem:[#allocation76_spill] sm:$0xff]  ;;  %v7476_v41 = vld [vmem:[#allocation237_spill] sm:$0xff] }
 0x34c   :  { %v1578_v60 = vadd.f32 %v7472_v0, %v5095_v59  ;;  %v1684_v44 = vmul.f32 %v7426_v61, %v7473_v25  ;;  %v1686_v28 = vmul.f32 %v7425_v31, %v5056_v48  ;;  %2083 = vrot.lane.b32.xlu0 %v7463_v45, %s2719_s1  ;;  %v1708_v22 = vmul.f32 %v7426_v61, %v4782_v38  ;;  %v1718_v40 = vpop.permute.xlu2 %1717  ;;  %v1634_v16 = vpop.permute.xlu1 %1633  ;;  %v7477_v45 = vld [vmem:[#allocation224_spill] sm:$0xff] }
 0x34d   :  { %1864 = vrot.lane.b32.xlu1 %v7474_v18, %s2717_s30  ;;  %v1711_v27 = vmul.f32 %v7475_v19, %v5151_v21  ;;  %v1709_v59 = vmul.f32 %v4830_v34, %v1662_v12  ;;  %v1710_v7 = vmul.f32 %v7425_v31, %v1654_v24  ;;  %v1742_v58 = vpop.permute.xlu0 %1741  ;;  %v1749_v50 = vmul.f32 %v1718_v40, %v5067_v56  ;;  %v7478_v12 = vld [vmem:[#allocation49_spill] sm:$0xff] }
 0x34e   :  { %v1748_v48 = vmul.f32 %v1718_v40, %v1684_v44  ;;  %v1750_v42 = vmul.f32 %v1718_v40, %v1686_v28  ;;  %v1751_v29 = vmul.f32 %v1718_v40, %v7476_v41  ;;  %v1772_v0 = vmul.f32 %v1742_v58, %v1708_v22 }
 0x34f   :  { %v1773_v25 = vmul.f32 %v1742_v58, %v1709_v59  ;;  %v1774_v54 = vmul.f32 %v1742_v58, %v1710_v7  ;;  %v1775_v38 = vmul.f32 %v1742_v58, %v1711_v27  ;;  %v1649_v21 = vsel %vm1647_vm0, %v7477_v45, %v1634_v16  ;;  %v7479_v7 = vld [vmem:[#allocation51_spill] sm:$0xff]  ;;  %v7480_v58 = vld [vmem:[#allocation82_spill] sm:$0xff] }
 0x350   :  { %v1673_v24 = vsel %vm1647_vm0, %v1634_v16, %v4590_v37  ;;  %v5294_v26 = vadd.f32 %v1748_v48, %v7478_v12  ;;  %v5296_v44 = vadd.f32 %v1749_v50, %v1552_v10  ;;  %v5298_v56 = vadd.f32 %v1772_v0, %v1575_v3  ;;  %v7486_v12 = vld [vmem:[#allocation62_spill] sm:$0xff] }
 0x351   :  { %v5300_v28 = vadd.f32 %v1773_v25, %v1576_v53  ;;  %v5302_v22 = vadd.f32 %v1774_v54, %v1577_v20  ;;  %v5304_v27 = vadd.f32 %v1775_v38, %v1578_v60  ;;  %v1690_v59 = vmul.f32 %v7425_v31, %v1649_v21  ;;  %v7481_v20 = vld [vmem:[#allocation21_spill] sm:$0xff] }
 0x352   :  { %v1691_v45 = vmul.f32 %v7475_v19, %v1673_v24  ;;  %v5309_v40 = vadd.f32 %v1750_v42, %v7479_v7  ;;  %v5311_v37 = vadd.f32 %v1751_v29, %v1554_v36  ;;  %v1558_v10 = vadd.f32 %v1526_v47, %v5073_v5  ;;  %v5327_v5 = vld [vmem:[%s6596_s3 + $0x38] sm:$0xff] }
 0x353   :  { %v1563_v3 = vadd.f32 %v1531_v51, %v5105_v57  ;;  %v1564_v53 = vadd.f32 %v1532_v55, %v5124_v32  ;;  %v1696_v54 = vmul.f32 %v7426_v61, %v7480_v58  ;;  %1866 = vrot.lane.b32.xlu2 %v7481_v20, %s2717_s30  ;;  %v1697_v60 = vmul.f32 %v4830_v34, %v5160_v62  ;;  %v7482_v57 = vld [vmem:[#allocation33_spill] sm:$0xff]  ;;  %v7483_v55 = vld [vmem:[#allocation70_spill] sm:$0xff]  ;;  %v7487_v58 = vld [vmem:[#allocation139_spill] sm:$0xff] }
 0x354   :  { %v1754_v16 = vmul.f32 %v5225_v39, %v1690_v59  ;;  %v1755_v36 = vmul.f32 %v5225_v39, %v1691_v45  ;;  %1970 = vperm.xlu0 %2642, %v5327_v5   ;;  %v1565_v32 = vadd.f32 %v1533_v46, %v5127_v15  ;;  %v1566_v47 = vadd.f32 %v1534_v33, %v5184_v14  ;;  %v1730_v51 = vpop.permute.xlu2 %1729  ;;  %v1640_v41 = vpop.permute.xlu1 %1639  ;;  %v7484_v46 = vld [vmem:[#allocation229_spill] sm:$0xff] }
 0x355   :  { %1870 = vrot.lane.b32.xlu1 %v7482_v57, %s2717_s30  ;;  %v1699_v62 = vmul.f32 %v7475_v19, %v5052_v13  ;;  %v1698_v39 = vmul.f32 %v7425_v31, %v5155_v1  ;;  %v5343_v42 = vpop.permute.xlu0 %1814  ;;  %v1760_v29 = vmul.f32 %v1730_v51, %v1696_v54  ;;  %v1761_v0 = vmul.f32 %v1730_v51, %v1697_v60  ;;  %v7485_v13 = vld [vmem:[#allocation24_spill] sm:$0xff]  ;;  %v7488_v54 = vld [vmem:[#allocation123_spill] sm:$0xff] }
 0x356   :  { %v5339_v48 = vadd.f32 %v1754_v16, %v7483_v55  ;;  %v5341_v50 = vadd.f32 %v1755_v36, %v1558_v10  ;;  %v5348_v14 = vsel %vm1647_vm0, %v7484_v46, %v1640_v41  ;;  %v5353_v15 = vsel %vm1647_vm0, %v1640_v41, %v7485_v13  ;;  %v7492_v60 = vld [vmem:[#allocation192_spill] sm:$0xff]  ;;  %v7494_v36 = vld [vmem:[#allocation177_spill] sm:$0xff]  ;;  %v7497_v55 = vld [vmem:[#allocation39_spill] sm:$0xff] }
 0x357   :  { %v1762_v1 = vmul.f32 %v1730_v51, %v1698_v39  ;;  %v1763_v33 = vmul.f32 %v1730_v51, %v1699_v62  ;;  %v1316_v25 = vmul.f32 %v7455_v43, %v5062_v49  ;;  %v1317_v38 = vmul.f32 %v7455_v43, %v5077_v17  ;;  %v7489_v17 = vld [vmem:[#allocation116_spill] sm:$0xff]  ;;  %v7496_v39 = vld [vmem:[#allocation238_spill] sm:$0xff]  ;;  %v7498_v41 = vld [vmem:[#allocation81_spill] sm:$0xff] }
 0x358   :  { %v5359_v21 = vadd.f32 %v1760_v29, %v1563_v3  ;;  %v5361_v24 = vadd.f32 %v1761_v0, %v1564_v53  ;;  %v1539_v59 = vmul.f32 %v7486_v12, %v5188_v4  ;;  %v1540_v45 = vmul.f32 %v7486_v12, %v5247_v8  ;;  %v7490_v3 = vld [vmem:[#allocation65_spill] sm:$0xff]  ;;  %v7491_v53 = vld [vmem:[#allocation235_spill] sm:$0xff]  ;;  %v7493_v16 = vld [vmem:[#allocation232_spill] sm:$0xff] }
 0x359   :  { %v5367_v7 = vadd.f32 %v1762_v1, %v1565_v32  ;;  %v5369_v10 = vadd.f32 %v1763_v33, %v1566_v47  ;;  %v973_v49 = vsel %vm968_vm11, %v7488_v54, %v7487_v58  ;;  %v997_v43 = vsel %vm968_vm11, %v7487_v58, %v7489_v17  ;;  %v7495_v47 = vld [vmem:[#allocation63_spill] sm:$0xff] }
 0x35a   :  { %v1123_v4 = vadd.f32 %v7491_v53, %v7490_v3  ;;  %v1124_v8 = vadd.f32 %v7493_v16, %v7492_v60  ;;  %v1346_v32 = vadd.f32 %v5176_v11, %v7494_v36  ;;  %v1347_v62 = vadd.f32 %v5180_v52, %v7495_v47  ;;  %v7499_v11 = vld [vmem:[#allocation25_spill] sm:$0xff]  ;;  %v7501_v16 = vld [vmem:[#allocation43_spill] sm:$0xff] }
 0x35b   :  { %v1704_v51 = vmul.f32 %v7426_v61, %v7496_v39  ;;  %1872 = vrot.lane.b32.xlu2 %v7497_v55, %s2717_s30  ;;  %v1705_v29 = vmul.f32 %v4830_v34, %v7498_v41  ;;  %v1706_v0 = vmul.f32 %v7425_v31, %v5230_v63  ;;  %v1707_v46 = vmul.f32 %v7475_v19, %v5235_v6  ;;  %v5402_v52 = vld [vmem:[%s6596_s3] sm:$0xff] }
 0x35c   :  { %2045 = vrot.lane.b32.xlu0 %v7499_v11, %s2719_s1  ;;  %7500 = vst [vmem:[#allocation240_spill] sm:$0xff] %v5402_v52  ;;  %v1348_v13 = vadd.f32 %v1316_v25, %v1123_v4  ;;  %v1349_v1 = vadd.f32 %v1317_v38, %v1124_v8  ;;  %v1571_v33 = vadd.f32 %v1539_v59, %v1346_v32  ;;  %v1738_v58 = vpop.permute.xlu2 %1737  ;;  %v6916_v54 = vmov 8   ;;  %v1646_v6 = vpop.permute.xlu1 %1645  ;;  %v7502_v47 = vld [vmem:[#allocation249_spill] sm:$0xff]  ;;  %v7503_v38 = vld [vmem:[#allocation68_spill] sm:$0xff]  ;;  %v7505_v4 = vld [vmem:[#allocation219_spill] sm:$0xff] }
 0x35d   :  { %1942 = vperm.xlu1 %2640, %v5402_v52   ;;  %v1572_v12 = vadd.f32 %v1540_v45, %v1347_v62  ;;  %2645 = vset.pattern.permute.xlu0 %v6916_v54  ;;  %v5406_v63 = vpop.permute.xlu0 %1820  ;;  %v1768_v17 = vmul.f32 %v1738_v58, %v1704_v51  ;;  %v1769_v3 = vmul.f32 %v1738_v58, %v1705_v29  ;;  %v7504_v45 = vld [vmem:[#allocation29_spill] sm:$0xff]  ;;  %v7506_v32 = vld [vmem:[#allocation244_spill] sm:$0xff]  ;;  %v7509_v29 = vld [vmem:[#allocation222_spill] sm:$0xff] }
 0x35e   :  { %v1770_v53 = vmul.f32 %v1738_v58, %v1706_v0  ;;  %v1771_v60 = vmul.f32 %v1738_v58, %v1707_v46  ;;  %v1573_v36 = vadd.f32 %v7501_v16, %v1348_v13  ;;  %v1574_v39 = vadd.f32 %v7502_v47, %v1349_v1  ;;  %v7510_v0 = vld [vmem:[#allocation248_spill] sm:$0xff]  ;;  %v7511_v11 = vld [vmem:[#allocation150_spill] sm:$0xff]  ;;  %v7516_v16 = vld [vmem:[#allocation77_spill] sm:$0xff] }
 0x35f   :  { %v5413_v25 = vsel %vm1647_vm0, %v5037_v9, %v1646_v6  ;;  %v5418_v59 = vsel %vm1647_vm0, %v1646_v6, %v7503_v38  ;;  %v1022_v8 = vmul.f32 %v7505_v4, %v7504_v45  ;;  %v1021_v62 = vmul.f32 %v7506_v32, %v997_v43  ;;  %v7512_v9 = vld [vmem:[#allocation175_spill] sm:$0xff]  ;;  %v7530_v4 = vld [vmem:[#allocation181_spill] sm:$0xff] }
 0x360   :  { %v5423_v51 = vadd.f32 %v1768_v17, %v1571_v33  ;;  %v5425_v41 = vadd.f32 %v1769_v3, %v1572_v12  ;;  %v1023_v46 = vmul.f32 %v7510_v0, %v7509_v29  ;;  %v1226_v13 = vsel %vm1197_vm12, %v7512_v9, %v7511_v11  ;;  %v7515_v6 = vld [vmem:[#allocation187_spill] sm:$0xff]  ;;  %v7517_v33 = vld [vmem:[#allocation148_spill] sm:$0xff]  ;;  %v7522_v29 = vld [vmem:[#allocation194_spill] sm:$0xff] }
 0x361   :  { %v5433_v1 = vadd.f32 %v1770_v53, %v1573_v36  ;;  %v5435_v58 = vadd.f32 %v1771_v60, %v1574_v39  ;;  %v891_v47 = vadd.f32 %v7516_v16, %v7515_v6  ;;  %v1024_v43 = vmul.f32 %v4145_v23, %v973_v49  ;;  %v7518_v38 = vld [vmem:[#allocation155_spill] sm:$0xff]  ;;  %v7519_v53 = vld [vmem:[#allocation172_spill] sm:$0xff]  ;;  %v5458_v36 = vld [vmem:[%s6596_s3 + $0x8] sm:$0xff] }
 0x362   :  { %7507 = vst [vmem:[#allocation83_spill] sm:$0xff] %v5423_v51  ;;  %v1085_v12 = vmul.f32 %v7517_v33, %v1021_v62  ;;  %v1086_v17 = vmul.f32 %v7517_v33, %v1022_v8  ;;  %v1087_v3 = vmul.f32 %v7517_v33, %v1023_v46  ;;  %v1218_v45 = vsel %vm1197_vm12, %v7511_v11, %v7518_v38  ;;  %v7521_v62 = vld [vmem:[#allocation212_spill] sm:$0xff]  ;;  %v7529_v0 = vld [vmem:[#allocation239_spill] sm:$0xff] }
 0x363   :  { %7508 = vst [vmem:[#allocation98_spill] sm:$0xff] %v5425_v41  ;;  %v1210_v60 = vsel %vm1197_vm12, %v7518_v38, %v7519_v53  ;;  %v1202_v49 = vsel %vm1197_vm12, %v7519_v53, %v7512_v9  ;;  %1946 = vperm.xlu2 %2641, %v5458_v36   ;;  %v1088_v39 = vmul.f32 %v7517_v33, %v1024_v43  ;;  %v7523_v11 = vld [vmem:[#allocation32_spill] sm:$0xff]  ;;  %v7525_v43 = vld [vmem:[#allocation227_spill] sm:$0xff] }
 0x364   :  { %7513 = vst [vmem:[#allocation242_spill] sm:$0xff] %v5433_v1  ;;  %v1246_v8 = vmul.f32 %v7426_v61, %v1226_v13  ;;  %v1443_v46 = vsel %vm1422_vm13, %v7522_v29, %v7521_v62  ;;  %2079 = vrot.lane.b32.xlu0 %v7523_v11, %s2719_s1  ;;  %v5472_v9 = vld [vmem:[%s6596_s3 + $0x18] sm:$0xff]  ;;  %v1693_v13 = vmul.f32 %v4830_v34, %v7525_v43  ;;  %v5483_v29 = vpop.permute.xlu2 %1812  ;;  %v7528_v11 = vld [vmem:[#allocation226_spill] sm:$0xff]  ;;  %v1726_v52 = vpop.permute.xlu1 %1725 }
 0x365   :  { %7514 = vst [vmem:[#allocation100_spill] sm:$0xff] %v5435_v58  ;;  %1954 = vperm.xlu1 %2640, %v5472_v9   ;;  %v7524_v6 = vld [vmem:[#allocation228_spill] sm:$0xff]  ;;  %v1247_v54 = vmul.f32 %v7528_v11, %v1218_v45  ;;  %v1248_v32 = vmul.f32 %v7425_v31, %v1210_v60  ;;  %v1249_v23 = vmul.f32 %v7529_v0, %v1202_v49  ;;  %v7535_v49 = vld [vmem:[#allocation241_spill] sm:$0xff] }
 0x366   :  { %7520 = vst [vmem:[#allocation95_spill] sm:$0xff] %v5458_v36  ;;  %v1692_v16 = vmul.f32 %v7426_v61, %v7524_v6  ;;  %v7526_v33 = vld [vmem:[#allocation88_spill] sm:$0xff]  ;;  %v1310_v36 = vmul.f32 %v7530_v4, %v1246_v8  ;;  %v5489_v6 = vpop.permute.xlu0 %1826  ;;  %v5493_v58 = vmul.f32 %v1726_v52, %v1693_v13  ;;  %v1471_v0 = vmul.f32 %v7535_v49, %v1443_v46  ;;  %v2272_v49 = vld [vmem:[%s6597_s4 + $0x30] sm:$0xff] }
 0x367   :  { %v1694_v38 = vmul.f32 %v7425_v31, %v7526_v33  ;;  %v7527_v53 = vld [vmem:[#allocation92_spill] sm:$0xff]  ;;  %v1311_v1 = vmul.f32 %v7530_v4, %v1247_v54  ;;  %v1312_v45 = vmul.f32 %v7530_v4, %v1248_v32  ;;  %v1313_v60 = vmul.f32 %v7530_v4, %v1249_v23 }
 0x368   :  { %v1695_v62 = vmul.f32 %v7475_v19, %v7527_v53  ;;  %v5491_v43 = vmul.f32 %v1726_v52, %v1692_v16  ;;  %7532 = vst [vmem:[#allocation99_spill] sm:$0xff] %v5493_v58  ;;  %v7536_v8 = vld [vmem:[#allocation80_spill] sm:$0xff]  ;;  %v7538_v16 = vld [vmem:[#allocation61_spill] sm:$0xff]  ;;  %v1120_v13 = vadd.f32 %v1088_v39, %v891_v47  ;;  %v7539_v58 = vld [vmem:[#allocation218_spill] sm:$0xff] }
 0x369   :  { %v5495_v33 = vmul.f32 %v1726_v52, %v1694_v38  ;;  %v1117_v11 = vadd.f32 %v1085_v12, %v7536_v8  ;;  %v7537_v41 = vld [vmem:[#allocation188_spill] sm:$0xff]  ;;  %v1535_v38 = vmul.f32 %v7539_v58, %v1471_v0  ;;  %v7541_v0 = vld [vmem:[#allocation38_spill] sm:$0xff]  ;;  %v7542_v47 = vld [vmem:[#allocation197_spill] sm:$0xff] }
 0x36a   :  { %7531 = vst [vmem:[#allocation37_spill] sm:$0xff] %v5491_v43  ;;  %v5497_v53 = vmul.f32 %v1726_v52, %v1695_v62  ;;  %v1118_v51 = vadd.f32 %v1086_v17, %v7537_v41  ;;  %v1119_v43 = vadd.f32 %v1087_v3, %v7538_v16  ;;  %v5510_v52 = vld [vmem:[%s6596_s3 + $0x20] sm:$0xff]  ;;  %v1345_v4 = vadd.f32 %v1313_v60, %v1120_v13  ;;  %v7540_v32 = vld [vmem:[#allocation36_spill] sm:$0xff]  ;;  %v2667_v41 = vld [vmem:[%s6596_s3 + $0x28] sm:$0xff] }
 0x36b   :  { %7533 = vst [vmem:[#allocation101_spill] sm:$0xff] %v5495_v33  ;;  %v1342_v33 = vadd.f32 %v1310_v36, %v1117_v11  ;;  %1958 = vperm.xlu2 %2641, %v5510_v52   ;;  %v1700_v58 = vmul.f32 %v7426_v61, %v7541_v0  ;;  %v1701_v12 = vmul.f32 %v4830_v34, %v7542_v47  ;;  %v7543_v36 = vld [vmem:[#allocation87_spill] sm:$0xff]  ;;  %v7544_v46 = vld [vmem:[#allocation120_spill] sm:$0xff]  ;;  %v7545_v11 = vld [vmem:[#allocation118_spill] sm:$0xff] }
 0x36c   :  { %7534 = vst [vmem:[#allocation247_spill] sm:$0xff] %v5497_v53  ;;  %v1343_v23 = vadd.f32 %v1311_v1, %v1118_v51  ;;  %v1344_v54 = vadd.f32 %v1312_v45, %v1119_v43  ;;  %2065 = vrot.lane.b32.xlu0 %v7540_v32, %s2719_s1  ;;  %v1702_v17 = vmul.f32 %v7425_v31, %v5348_v14  ;;  %v5526_v1 = vpop.permute.xlu2 %1818  ;;  %v7563_v53 = vld [vmem:[#allocation27_spill] sm:$0xff] }
 0x36d   :  { %1962 = vperm.xlu1 %2640, %v2667_v41   ;;  %v1703_v51 = vmul.f32 %v7475_v19, %v5353_v15  ;;  %v1567_v3 = vadd.f32 %v1535_v38, %v1342_v33  ;;  %v1570_v43 = vadd.f32 %v7545_v11, %v1345_v4  ;;  %v1734_v60 = vpop.permute.xlu1 %1733  ;;  %v2668_v33 = vld [vmem:[%s6596_s3 + $0x30] sm:$0xff]  ;;  %v7546_v38 = vld [vmem:[#allocation42_spill] sm:$0xff]  ;;  %v7548_v4 = vld [vmem:[#allocation84_spill] sm:$0xff] }
 0x36e   :  { %v1568_v39 = vadd.f32 %v7543_v36, %v1343_v23  ;;  %v1569_v62 = vadd.f32 %v7544_v46, %v1344_v54  ;;  %v1833_v45 = vpop.permute.xlu0 %1832  ;;  %v1764_v8 = vmul.f32 %v1734_v60, %v1700_v58  ;;  %v1765_v16 = vmul.f32 %v1734_v60, %v1701_v12  ;;  %v7547_v23 = vld [vmem:[#allocation60_spill] sm:$0xff] }
 0x36f   :  { %v1766_v13 = vmul.f32 %v1734_v60, %v1702_v17  ;;  %v1767_v32 = vmul.f32 %v1734_v60, %v1703_v51  ;;  %v1712_v54 = vmul.f32 %v7426_v61, %v7547_v23  ;;  %v1713_v58 = vmul.f32 %v4830_v34, %v7548_v4  ;;  %v7560_v4 = vld [vmem:[#allocation31_spill] sm:$0xff] }
 0x370   :  { %v5531_v0 = vadd.f32 %v1764_v8, %v1567_v3  ;;  %v5533_v14 = vadd.f32 %v1765_v16, %v1568_v39  ;;  %v1714_v12 = vmul.f32 %v7425_v31, %v5413_v25  ;;  %v1715_v17 = vmul.f32 %v7475_v19, %v5418_v59  ;;  %v7555_v25 = vld [vmem:[#allocation40_spill] sm:$0xff]  ;;  %v7557_v16 = vld [vmem:[#allocation50_spill] sm:$0xff] }
 0x371   :  { %v5535_v15 = vadd.f32 %v1766_v13, %v1569_v62  ;;  %v5537_v47 = vadd.f32 %v1767_v32, %v1570_v43  ;;  %v7549_v3 = vmov 8   ;;  %v7556_v19 = vld [vmem:[#allocation16_spill] sm:$0xff] }
 0x373   :  { %1966 = vperm.xlu2 %2641, %v2668_v33  }
 0x374   :  { %2191 = vperm.xlu0 %2645, %v2667_v41   ;;  %v5552_v51 = vpop.permute.xlu2 %1824 }
 0x375   :  { %2051 = vrot.lane.b32.xlu1 %v7546_v38, %s2719_s1  ;;  %v1746_v36 = vpop.permute.xlu1 %1745 }
 0x376   :  { %2643 = vset.pattern.permute.xlu1 %v7549_v3  ;;  %v5555_v41 = vpop.permute.xlu0 %1838  ;;  %v5557_v39 = vmul.f32 %v1746_v36, %v1712_v54  ;;  %v5559_v46 = vmul.f32 %v1746_v36, %v1713_v58  ;;  %v5561_v62 = vmul.f32 %v1746_v36, %v1714_v12  ;;  %v5563_v34 = vmul.f32 %v1746_v36, %v1715_v17  ;;  %v7559_v54 = vld [vmem:[#allocation79_spill] sm:$0xff] }
 0x377   :  { %7550 = vst [vmem:[#allocation103_spill] sm:$0xff] %v5555_v41 }
 0x378   :  { %7551 = vst [vmem:[#allocation106_spill] sm:$0xff] %v5557_v39 }
 0x379   :  { %7552 = vst [vmem:[#allocation107_spill] sm:$0xff] %v5559_v46 }
 0x37a   :  { %7553 = vst [vmem:[#allocation246_spill] sm:$0xff] %v5561_v62 }
 0x37b   :  { %7554 = vst [vmem:[#allocation110_spill] sm:$0xff] %v5563_v34  ;;  %2081 = vrot.lane.b32.xlu2 %v7555_v25, %s2719_s1 }
 0x37c   :  { %2073 = vrot.lane.b32.xlu0 %v7556_v19, %s2719_s1  ;;  %v1831_v59 = vpop.permute.xlu2 %1830  ;;  %2644 = vset.pattern.permute.xlu2 %v7549_v3 }
 0x37d   :  { %2097 = vrot.lane.b32.xlu1 %v7497_v55, %s2719_s1  ;;  %v5573_v43 = vpop.permute.xlu1 %1816  ;;  %v5578_v60 = vsel %vm1876_vm4, %v5343_v42, %v1831_v59 }
 0x37e   :  { %v1845_v11 = vpop.permute.xlu0 %1844  ;;  %v5583_v8 = vsel %vm1876_vm4, %v5573_v43, %v1833_v45 }
 0x383   :  { %2099 = vrot.lane.b32.xlu2 %v7557_v16, %s2719_s1  ;;  %v2271_v16 = vld [vmem:[%s6597_s4 + $0x28] sm:$0xff] }
 0x384   :  { %2091 = vrot.lane.b32.xlu0 %v7481_v20, %s2719_s1  ;;  %v5589_v55 = vpop.permute.xlu2 %1836 }
 0x385   :  { %2195 = vperm.xlu1 %2643, %v2668_v33   ;;  %v5591_v32 = vpop.permute.xlu1 %1822  ;;  %v5597_v23 = vsel %vm1876_vm4, %v5406_v63, %v5589_v55  ;;  %v7561_v33 = vmov 0  }
 0x386   :  { %v1851_v13 = vpop.permute.xlu0 %1850  ;;  %7558 = vst [vmem:[#allocation111_spill] sm:$0xff] %v5591_v32 }
 0x38b   :  { %2199 = vperm.xlu2 %2644, %v5327_v5  }
 0x38c   :  { %2179 = vperm.xlu0 %2645, %v7559_v54  }
 0x38d   :  { %2047 = vrot.lane.b32.xlu1 %v7560_v4, %s2719_s1  ;;  %v5603_v20 = vpop.permute.xlu2 %1842  ;;  %v1829_v12 = vpop.permute.xlu1 %1828  ;;  %v7562_v4 = vld [vmem:[#allocation26_spill] sm:$0xff] }
 0x38e   :  { %2646 = vset.pattern.permute.xlu1 %v7561_v33  ;;  %v1857_v58 = vpop.permute.xlu0 %1856  ;;  %v5610_v17 = vsel %vm1876_vm4, %v5489_v6, %v5603_v20  ;;  %v5614_v36 = vsel %vm1876_vm4, %v1829_v12, %v1845_v11  ;;  %v5619_v25 = vsel %vm1876_vm4, %v5483_v29, %v1829_v12 }
 0x393   :  { %2077 = vrot.lane.b32.xlu2 %v7562_v4, %s2719_s1 }
 0x394   :  { %2648 = vset.pattern.permute.xlu0 %v7561_v33 }
 0x395   :  { %2093 = vrot.lane.b32.xlu1 %v7563_v53, %s2719_s1  ;;  %592 = vperm.xlu0 %2648, %v7559_v54   ;;  %v5627_v34 = vpop.permute.xlu2 %1848  ;;  %v1835_v46 = vpop.permute.xlu1 %1834  ;;  %v7564_v54 = vld [vmem:[#allocation41_spill] sm:$0xff] }
 0x396   :  { %v1863_v62 = vpop.permute.xlu0 %1862  ;;  %v1887_v39 = vsel %vm1876_vm4, %v1833_v45, %v5627_v34  ;;  %v5637_v4 = vsel %vm1876_vm4, %v1835_v46, %v1851_v13  ;;  %v5642_v53 = vsel %vm1876_vm4, %v5526_v1, %v1835_v46 }
 0x397   :  { %v1902_v12 = vsel %vm1876_vm4, %v1863_v62, %v5343_v42 }
 0x39b   :  { %2095 = vrot.lane.b32.xlu2 %v7482_v57, %s2719_s1 }
 0x39d   :  { %2067 = vrot.lane.b32.xlu1 %v7564_v54, %s2719_s1  ;;  %612 = vperm.xlu0 %2648, %v5327_v5   ;;  %v5649_v45 = vpop.permute.xlu2 %1854  ;;  %v1841_v61 = vpop.permute.xlu1 %1840 }
 0x39e   :  { %v1869_v42 = vpop.permute.xlu0 %1868  ;;  %v5655_v31 = vsel %vm1876_vm4, %v5555_v41, %v5649_v45  ;;  %v5664_v57 = vsel %vm1876_vm4, %v1841_v61, %v1857_v58  ;;  %v5669_v5 = vsel %vm1876_vm4, %v5552_v51, %v1841_v61 }
 0x39f   :  { %7565 = vst [vmem:[#allocation109_spill] sm:$0xff] %v5655_v31  ;;  %v5660_v46 = vsel %vm1876_vm4, %v1869_v42, %v5406_v63  ;;  %v7571_v31 = vld [vmem:[#allocation17_spill] sm:$0xff] }
 0x3a3   :  { %2187 = vperm.xlu2 %2644, %v5510_v52  }
 0x3a5   :  { %2306 = vperm.xlu1 %2646, %v2272_v49   ;;  %2301 = vperm.xlu0 %2648, %v2271_v16   ;;  %v1861_v63 = vpop.permute.xlu2 %1860  ;;  %v7566_v16 = vld [vmem:[#allocation13_spill] sm:$0xff] }
 0x3a6   :  { %v1875_v54 = vpop.permute.xlu0 %1874  ;;  %v1847_v38 = vpop.permute.xlu1 %1846  ;;  %v5680_v19 = vsel %vm1876_vm4, %v1845_v11, %v1861_v63  ;;  %v5685_v61 = vsel %vm1876_vm4, %v1861_v63, %v5483_v29  ;;  %v2273_v11 = vld [vmem:[%s6597_s4 + $0x38] sm:$0xff]  ;;  %v7567_v29 = vld [vmem:[#allocation225_spill] sm:$0xff] }
 0x3a7   :  { %v1908_v41 = vsel %vm1876_vm4, %v1875_v54, %v5489_v6  ;;  %v1878_v49 = vsel %vm1876_vm4, %v1847_v38, %v1863_v62  ;;  %v1886_v52 = vsel %vm1876_vm4, %v1831_v59, %v1847_v38  ;;  %v1918_v63 = vmul.f32 %v7567_v29, %v1887_v39 }
 0x3ab   :  { %2647 = vset.pattern.permute.xlu2 %v7561_v33 }
 0x3ac   :  { %2311 = vperm.xlu2 %2647, %v2273_v11  }
 0x3ad   :  { %2041 = vrot.lane.b32.xlu1 %v7566_v16, %s2719_s1  ;;  %2085 = vrot.lane.b32.xlu0 %v7471_v2, %s2719_s1  ;;  %v1867_v6 = vpop.permute.xlu2 %1866 }
 0x3ae   :  { %2649 = vset.pattern.permute.xlu1 %v7549_v3  ;;  %v1951_v62 = vpop.permute.xlu0 %1950  ;;  %v1853_v38 = vpop.permute.xlu1 %1852  ;;  %v5706_v59 = vsel %vm1876_vm4, %v1851_v13, %v1867_v6  ;;  %v5711_v33 = vsel %vm1876_vm4, %v1867_v6, %v5526_v1  ;;  %v7570_v13 = vld [vmem:[#allocation22_spill] sm:$0xff] }
 0x3af   :  { %v5714_v11 = vmul.f32 %v1951_v62, %v5583_v8  ;;  %v5716_v39 = vmul.f32 %v1951_v62, %v1918_v63  ;;  %v1881_v2 = vsel %vm1876_vm4, %v1853_v38, %v1869_v42  ;;  %v1889_v16 = vsel %vm1876_vm4, %v5589_v55, %v1853_v38  ;;  %v7572_v1 = vld [vmem:[#allocation18_spill] sm:$0xff] }
 0x3b1   :  { %7568 = vst [vmem:[#allocation114_spill] sm:$0xff] %v5714_v11  ;;  %v7575_v11 = vld [vmem:[#allocation23_spill] sm:$0xff] }
 0x3b2   :  { %7569 = vst [vmem:[#allocation112_spill] sm:$0xff] %v5716_v39 }
 0x3b4   :  { %2043 = vrot.lane.b32.xlu2 %v7571_v31, %s2719_s1 }
 0x3b5   :  { %2075 = vrot.lane.b32.xlu1 %v7570_v13, %s2719_s1  ;;  %2059 = vrot.lane.b32.xlu0 %v7572_v1, %s2719_s1  ;;  %v1873_v8 = vpop.permute.xlu2 %1872  ;;  %v2268_v13 = vld [vmem:[%s6597_s4 + $0x10] sm:$0xff]  ;;  %v7574_v1 = vld [vmem:[#allocation236_spill] sm:$0xff] }
 0x3b6   :  { %v5729_v6 = vpop.permute.xlu0 %2049  ;;  %v5733_v42 = vsel %vm1876_vm4, %v1857_v58, %v1873_v8  ;;  %v1907_v55 = vsel %vm1876_vm4, %v1873_v8, %v5552_v51  ;;  %v1916_v39 = vmul.f32 %v7574_v1, %v1902_v12  ;;  %v1914_v58 = vmul.f32 %v7567_v29, %v1886_v52 }
 0x3b7   :  { %7573 = vst [vmem:[#allocation117_spill] sm:$0xff] %v5729_v6  ;;  %v1859_v63 = vpop.permute.xlu1 %1858 }
 0x3b8   :  { %v1884_v38 = vsel %vm1876_vm4, %v1859_v63, %v1875_v54  ;;  %v1892_v31 = vsel %vm1876_vm4, %v5603_v20, %v1859_v63 }
 0x3bc   :  { %2089 = vrot.lane.b32.xlu2 %v7474_v18, %s2719_s1  ;;  %v7579_v18 = vld [vmem:[#allocation90_spill] sm:$0xff] }
 0x3bd   :  { %2061 = vrot.lane.b32.xlu1 %v7575_v11, %s2719_s1  ;;  %2286 = vperm.xlu0 %2648, %v2268_v13   ;;  %v1947_v51 = vpop.permute.xlu2 %1946 }
 0x3be   :  { %v5752_v54 = vpop.permute.xlu0 %2083  ;;  %v1977_v20 = vmul.f32 %v1947_v51, %v5578_v60  ;;  %v1978_v63 = vmul.f32 %v1947_v51, %v1914_v58  ;;  %v1979_v6 = vmul.f32 %v1947_v51, %v1878_v49  ;;  %v1980_v32 = vmul.f32 %v1947_v51, %v1916_v39 }
 0x3bf   :  { %7576 = vst [vmem:[#allocation115_spill] sm:$0xff] %v5752_v54  ;;  %v1865_v8 = vpop.permute.xlu1 %1864  ;;  %v1926_v58 = vmul.f32 %v7567_v29, %v1889_v16 }
 0x3c0   :  { %v1879_v12 = vsel %vm1876_vm4, %v5627_v34, %v1865_v8  ;;  %v1903_v52 = vsel %vm1876_vm4, %v1865_v8, %v5573_v43  ;;  %v5765_v54 = vadd.f32 %v1977_v20, %v5254_v30  ;;  %v5768_v60 = vadd.f32 %v1978_v63, %v7579_v18  ;;  %v7584_v30 = vld [vmem:[#allocation30_spill] sm:$0xff] }
 0x3c1   :  { %v1920_v11 = vmul.f32 %v7574_v1, %v1903_v52  ;;  %v5762_v13 = vmul.f32 %v1951_v62, %v1879_v12  ;;  %v5771_v49 = vadd.f32 %v1979_v6, %v5339_v48  ;;  %v5774_v39 = vadd.f32 %v1980_v32, %v5341_v50  ;;  %v7585_v6 = vld [vmem:[#allocation10_spill] sm:$0xff]  ;;  %v7594_v52 = vld [vmem:[#allocation5_spill] sm:$0xff] }
 0x3c2   :  { %7578 = vst [vmem:[#allocation108_spill] sm:$0xff] %v5765_v54  ;;  %v1928_v43 = vmul.f32 %v7574_v1, %v5660_v46  ;;  %v1940_v18 = vmul.f32 %v7574_v1, %v1908_v41  ;;  %v1938_v48 = vmul.f32 %v7567_v29, %v1892_v31 }
 0x3c3   :  { %7577 = vst [vmem:[#allocation125_spill] sm:$0xff] %v5762_v13  ;;  %v5776_v34 = vmul.f32 %v1951_v62, %v1920_v11 }
 0x3c4   :  { %7580 = vst [vmem:[#allocation133_spill] sm:$0xff] %v5768_v60  ;;  %2063 = vrot.lane.b32.xlu2 %v7584_v30, %s2719_s1  ;;  %v7643_v60 = vld [vmem:[#allocation89_spill] sm:$0xff] }
 0x3c5   :  { %7581 = vst [vmem:[#allocation128_spill] sm:$0xff] %v5771_v49  ;;  %2183 = vperm.xlu1 %2649, %v5472_v9   ;;  %2055 = vrot.lane.b32.xlu0 %v7585_v6, %s2719_s1  ;;  %v1959_v50 = vpop.permute.xlu2 %1958 }
 0x3c6   :  { %7582 = vst [vmem:[#allocation121_spill] sm:$0xff] %v5774_v39  ;;  %v1971_v32 = vpop.permute.xlu0 %1970  ;;  %v1989_v51 = vmul.f32 %v1959_v50, %v5597_v23  ;;  %v1990_v46 = vmul.f32 %v1959_v50, %v1926_v58  ;;  %v1991_v8 = vmul.f32 %v1959_v50, %v1881_v2  ;;  %v1992_v16 = vmul.f32 %v1959_v50, %v1928_v43 }
 0x3c7   :  { %7583 = vst [vmem:[#allocation35_spill] sm:$0xff] %v5776_v34  ;;  %v1871_v62 = vpop.permute.xlu1 %1870  ;;  %v5790_v9 = vmul.f32 %v1971_v32, %v5610_v17  ;;  %v5792_v20 = vmul.f32 %v1971_v32, %v1938_v48  ;;  %v5794_v63 = vmul.f32 %v1971_v32, %v1884_v38  ;;  %v5796_v41 = vmul.f32 %v1971_v32, %v1940_v18  ;;  %v2270_v38 = vld [vmem:[%s6597_s4 + $0x20] sm:$0xff]  ;;  %v7651_v34 = vld [vmem:[#allocation94_spill] sm:$0xff] }
 0x3c8   :  { %v1882_v31 = vsel %vm1876_vm4, %v5649_v45, %v1871_v62  ;;  %v5802_v12 = vadd.f32 %v1989_v51, %v5531_v0  ;;  %v5805_v23 = vadd.f32 %v1990_v46, %v5533_v14  ;;  %v5808_v2 = vadd.f32 %v1991_v8, %v5535_v15  ;;  %v2428_v45 = vld [vmem:[%s6599_s6] sm:$0xff] }
 0x3c9   :  { %7586 = vst [vmem:[#allocation130_spill] sm:$0xff] %v5790_v9  ;;  %v5811_v17 = vadd.f32 %v1992_v16, %v5537_v47  ;;  %v1934_v0 = vmul.f32 %v7567_v29, %v5664_v57  ;;  %v1936_v14 = vmul.f32 %v7574_v1, %v1907_v55  ;;  %v1910_v15 = vmul.f32 %v7567_v29, %v5614_v36 }
 0x3ca   :  { %7587 = vst [vmem:[#allocation135_spill] sm:$0xff] %v5792_v20  ;;  %v1912_v47 = vmul.f32 %v7574_v1, %v5685_v61  ;;  %v7659_v20 = vld [vmem:[#allocation96_spill] sm:$0xff] }
 0x3cb   :  { %7588 = vst [vmem:[#allocation131_spill] sm:$0xff] %v5794_v63 }
 0x3cc   :  { %7589 = vst [vmem:[#allocation132_spill] sm:$0xff] %v5796_v41  ;;  %2296 = vperm.xlu2 %2647, %v2270_v38   ;;  %v7764_v35 = vld [vmem:[#allocation128_spill] sm:$0xff] }
 0x3cd   :  { %7590 = vst [vmem:[#allocation210_spill] sm:$0xff] %v5802_v12  ;;  %2037 = vrot.lane.b32.xlu1 %v7594_v52, %s2719_s1  ;;  %2432 = vperm.xlu0 %2648, %v2428_v45   ;;  %v1967_v11 = vpop.permute.xlu2 %1966  ;;  %v7650_v12 = vld [vmem:[#allocation78_spill] sm:$0xff] }
 0x3ce   :  { %7591 = vst [vmem:[#allocation134_spill] sm:$0xff] %v5805_v23  ;;  %v5828_v43 = vpop.permute.xlu0 %2045  ;;  %v1997_v30 = vmul.f32 %v1967_v11, %v5669_v5  ;;  %v1998_v57 = vmul.f32 %v1967_v11, %v1934_v0  ;;  %v1999_v55 = vmul.f32 %v1967_v11, %v5733_v42  ;;  %v2000_v18 = vmul.f32 %v1967_v11, %v1936_v14  ;;  %v7606_v0 = vld [vmem:[#allocation111_spill] sm:$0xff]  ;;  %v7607_v14 = vld [vmem:[#allocation12_spill] sm:$0xff]  ;;  %v7649_v23 = vld [vmem:[#allocation86_spill] sm:$0xff] }
 0x3cf   :  { %7592 = vst [vmem:[#allocation138_spill] sm:$0xff] %v5808_v2  ;;  %v1943_v58 = vpop.permute.xlu1 %1942 }
 0x3d0   :  { %7593 = vst [vmem:[#allocation137_spill] sm:$0xff] %v5811_v17  ;;  %v1973_v48 = vmul.f32 %v1943_v58, %v5619_v25  ;;  %v1974_v6 = vmul.f32 %v1943_v58, %v1910_v15  ;;  %v1975_v50 = vmul.f32 %v1943_v58, %v5680_v19  ;;  %v1976_v36 = vmul.f32 %v1943_v58, %v1912_v47  ;;  %v7653_v17 = vld [vmem:[#allocation219_spill] sm:$0xff] }
 0x3d1   :  { %v5835_v32 = vadd.f32 %v1997_v30, %v5298_v56  ;;  %v5838_v61 = vadd.f32 %v1998_v57, %v5300_v28  ;;  %v5841_v51 = vadd.f32 %v1999_v55, %v5302_v22  ;;  %v5844_v5 = vadd.f32 %v2000_v18, %v5304_v27  ;;  %v7599_v28 = vld [vmem:[#allocation8_spill] sm:$0xff]  ;;  %v7600_v22 = vld [vmem:[#allocation9_spill] sm:$0xff]  ;;  %v7611_v55 = vld [vmem:[#allocation83_spill] sm:$0xff] }
 0x3d2   :  { %v5847_v42 = vadd.f32 %v1973_v48, %v5294_v26  ;;  %v5850_v25 = vadd.f32 %v1974_v6, %v5296_v44  ;;  %v5853_v19 = vadd.f32 %v1975_v50, %v5309_v40  ;;  %v5856_v56 = vadd.f32 %v1976_v36, %v5311_v37  ;;  %v7613_v48 = vld [vmem:[#allocation98_spill] sm:$0xff] }
 0x3d3   :  { %v1922_v27 = vmul.f32 %v7567_v29, %v5637_v4  ;;  %v1924_v26 = vmul.f32 %v7574_v1, %v5711_v33  ;;  %v7615_v50 = vld [vmem:[#allocation242_spill] sm:$0xff]  ;;  %v6037_v2 = vmul.f32 %v7653_v17, %v7567_v29 }
 0x3d4   :  { %7595 = vst [vmem:[#allocation141_spill] sm:$0xff] %v5847_v42  ;;  %2039 = vrot.lane.b32.xlu2 %v7600_v22, %s2719_s1 }
 0x3d5   :  { %7596 = vst [vmem:[#allocation140_spill] sm:$0xff] %v5850_v25  ;;  %2069 = vrot.lane.b32.xlu1 %v7599_v28, %s2719_s1  ;;  %v5866_v44 = vpop.permute.xlu2 %2081  ;;  %2650 = vset.pattern.permute.xlu2 %v7549_v3  ;;  %v7616_v28 = vld [vmem:[#allocation100_spill] sm:$0xff]  ;;  %v7639_v25 = vld [vmem:[#allocation50_spill] sm:$0xff] }
 0x3d6   :  { %7597 = vst [vmem:[#allocation144_spill] sm:$0xff] %v5853_v19  ;;  %v5869_v40 = vpop.permute.xlu0 %2079 }
 0x3d7   :  { %7598 = vst [vmem:[#allocation72_spill] sm:$0xff] %v5856_v56  ;;  %v1955_v37 = vpop.permute.xlu1 %1954 }
 0x3d8   :  { %7601 = vst [vmem:[#allocation213_spill] sm:$0xff] %v5869_v40  ;;  %v1985_v46 = vmul.f32 %v1955_v37, %v5642_v53  ;;  %v1986_v8 = vmul.f32 %v1955_v37, %v1922_v27  ;;  %v1987_v16 = vmul.f32 %v1955_v37, %v5706_v59  ;;  %v1988_v38 = vmul.f32 %v1955_v37, %v1924_v26  ;;  %v7608_v59 = vld [vmem:[#allocation11_spill] sm:$0xff]  ;;  %v7618_v27 = vld [vmem:[#allocation240_spill] sm:$0xff]  ;;  %v7619_v26 = vld [vmem:[#allocation14_spill] sm:$0xff] }
 0x3d9   :  { %v1906_v53 = vsel %vm1876_vm4, %v1871_v62, %v7606_v0  ;;  %7654 = vst [vmem:[#allocation165_spill] sm:$0xff] %v6037_v2 }
 0x3da   :  { %v5874_v45 = vadd.f32 %v1985_v46, %v5359_v21  ;;  %v5877_v4 = vadd.f32 %v1986_v8, %v5361_v24  ;;  %v5880_v33 = vadd.f32 %v1987_v16, %v5367_v7  ;;  %v5883_v3 = vadd.f32 %v1988_v38, %v5369_v10  ;;  %v7609_v21 = vld [vmem:[#allocation109_spill] sm:$0xff]  ;;  %v7610_v7 = vld [vmem:[#allocation103_spill] sm:$0xff]  ;;  %v7621_v16 = vld [vmem:[#allocation20_spill] sm:$0xff] }
 0x3db   :  { %v1930_v24 = vmul.f32 %v7567_v29, %v7609_v21  ;;  %v1898_v10 = vsel %vm1876_vm4, %v7606_v0, %v7610_v7  ;;  %v1932_v15 = vmul.f32 %v7574_v1, %v1906_v53  ;;  %v7620_v8 = vld [vmem:[#allocation13_spill] sm:$0xff]  ;;  %v5928_v0 = vmul.f32 %v7621_v16, %v7619_v26  ;;  %v7622_v53 = vld [vmem:[#allocation16_spill] sm:$0xff] }
 0x3dc   :  { %7602 = vst [vmem:[#allocation71_spill] sm:$0xff] %v5874_v45  ;;  %2071 = vrot.lane.b32.xlu2 %v7608_v59, %s2719_s1  ;;  %v5924_v38 = vmul.f32 %v7621_v16, %v7620_v8  ;;  %v7623_v59 = vld [vmem:[#allocation55_spill] sm:$0xff]  ;;  %v7624_v21 = vld [vmem:[#allocation53_spill] sm:$0xff]  ;;  %v2269_v7 = vld [vmem:[%s6597_s4 + $0x18] sm:$0xff] }
 0x3dd   :  { %7603 = vst [vmem:[#allocation152_spill] sm:$0xff] %v5877_v4  ;;  %2087 = vrot.lane.b32.xlu1 %v7607_v14, %s2719_s1  ;;  %v5894_v52 = vpop.permute.xlu2 %2099  ;;  %v5932_v14 = vmul.f32 %v7621_v16, %v7622_v53  ;;  %v7632_v8 = vld [vmem:[#allocation45_spill] sm:$0xff]  ;;  %v7633_v53 = vmov 0   ;;  %v7645_v4 = vld [vmem:[#allocation239_spill] sm:$0xff] }
 0x3de   :  { %7604 = vst [vmem:[#allocation147_spill] sm:$0xff] %v5880_v33  ;;  %v2066_v47 = vpop.permute.xlu0 %2065  ;;  %v7648_v33 = vld [vmem:[#allocation91_spill] sm:$0xff]  ;;  %v2266_v29 = vld [vmem:[%s6597_s4] sm:$0xff] }
 0x3df   :  { %7605 = vst [vmem:[#allocation159_spill] sm:$0xff] %v5883_v3  ;;  %v1963_v62 = vpop.permute.xlu1 %1962 }
 0x3e0   :  { %v1993_v11 = vmul.f32 %v1963_v62, %v1898_v10  ;;  %v1994_v58 = vmul.f32 %v1963_v62, %v1930_v24  ;;  %v1995_v30 = vmul.f32 %v1963_v62, %v1882_v31  ;;  %v1996_v57 = vmul.f32 %v1963_v62, %v1932_v15  ;;  %v7625_v10 = vld [vmem:[#allocation15_spill] sm:$0xff]  ;;  %v7626_v62 = vld [vmem:[#allocation42_spill] sm:$0xff] }
 0x3e1   :  { %v533_v24 = vsel %vm514_vm3, %v7624_v21, %v7623_v59  ;;  %v5943_v15 = vmul.f32 %v7621_v16, %v7625_v10  ;;  %v7635_v10 = vld [vmem:[#allocation226_spill] sm:$0xff] }
 0x3e2   :  { %v5902_v18 = vadd.f32 %v1993_v11, %v7611_v55  ;;  %v5905_v6 = vadd.f32 %v1994_v58, %v7613_v48  ;;  %v5908_v36 = vadd.f32 %v1995_v30, %v7615_v50  ;;  %v5911_v22 = vadd.f32 %v1996_v57, %v7616_v28  ;;  %v7627_v11 = vld [vmem:[#allocation28_spill] sm:$0xff]  ;;  %v7628_v30 = vld [vmem:[#allocation47_spill] sm:$0xff]  ;;  %v7630_v50 = vld [vmem:[#allocation41_spill] sm:$0xff] }
 0x3e3   :  { %v5947_v58 = vmul.f32 %v7627_v11, %v7626_v62  ;;  %v525_v57 = vsel %vm514_vm3, %v7623_v59, %v7628_v30  ;;  %v7629_v55 = vld [vmem:[#allocation56_spill] sm:$0xff]  ;;  %v5959_v28 = vmul.f32 %v7627_v11, %v7630_v50  ;;  %v7634_v59 = vld [vmem:[#allocation95_spill] sm:$0xff]  ;;  %v7637_v50 = vld [vmem:[#allocation85_spill] sm:$0xff]  ;;  %v5986_v42 = vmul.f32 %v7627_v11, %v7639_v25 }
 0x3e4   :  { %7612 = vst [vmem:[#allocation157_spill] sm:$0xff] %v5902_v18  ;;  %2057 = vrot.lane.b32.xlu2 %v7619_v26, %s2719_s1  ;;  %v541_v48 = vsel %vm514_vm3, %v7629_v55, %v7624_v21  ;;  %v7631_v26 = vld [vmem:[#allocation59_spill] sm:$0xff]  ;;  %v5972_v21 = vmul.f32 %v7635_v10, %v533_v24  ;;  %v7642_v24 = vld [vmem:[#allocation221_spill] sm:$0xff]  ;;  %v7646_v25 = vld [vmem:[#allocation58_spill] sm:$0xff] }
 0x3e5   :  { %7614 = vst [vmem:[#allocation160_spill] sm:$0xff] %v5905_v6  ;;  %2171 = vperm.xlu1 %2649, %v7618_v27   ;;  %v5916_v37 = vpop.permute.xlu2 %2199  ;;  %v517_v27 = vsel %vm514_vm3, %v7628_v30, %v7629_v55  ;;  %v754_v16 = vsel %vm743_vm9, %v7632_v8, %v7631_v26  ;;  %v7636_v62 = vld [vmem:[#allocation75_spill] sm:$0xff]  ;;  %v7638_v30 = vld [vmem:[#allocation44_spill] sm:$0xff]  ;;  %v5992_v49 = vmul.f32 %v7642_v24, %v541_v48  ;;  %v7655_v6 = vld [vmem:[#allocation117_spill] sm:$0xff] }
 0x3e6   :  { %7617 = vst [vmem:[#allocation143_spill] sm:$0xff] %v5911_v22  ;;  %v5918_v31 = vpop.permute.xlu0 %2191  ;;  %v538_v56 = vsel %vm514_vm3, %v7637_v50, %v7636_v62  ;;  %v5982_v55 = vmul.f32 %v7627_v11, %v7638_v30  ;;  %v6002_v3 = vmul.f32 %v7645_v4, %v517_v27  ;;  %v762_v11 = vsel %vm743_vm9, %v7646_v25, %v7632_v8  ;;  %v7656_v18 = vld [vmem:[#allocation216_spill] sm:$0xff] }
 0x3e7   :  { %v5920_v46 = vpop.permute.xlu1 %2051  ;;  %7640 = vst [vmem:[#allocation163_spill] sm:$0xff] %v5986_v42  ;;  %v6014_v45 = vmul.f32 %v7635_v10, %v538_v56  ;;  %v767_v27 = vsel %vm743_vm9, %v7650_v12, %v7649_v23  ;;  %v522_v8 = vsel %vm514_vm3, %v7643_v60, %v7651_v34  ;;  %v7652_v56 = vld [vmem:[#allocation93_spill] sm:$0xff] }
 0x3e8   :  { %v775_v13 = vsel %vm743_vm9, %v7652_v56, %v7650_v12 }
 0x3ec   :  { %2175 = vperm.xlu2 %2650, %v7634_v59   ;;  %v7641_v59 = vld [vmem:[#allocation233_spill] sm:$0xff] }
 0x3ed   :  { %2651 = vset.pattern.permute.xlu1 %v7633_v53  ;;  %v5978_v19 = vpop.permute.xlu2 %2077  ;;  %v5989_v39 = vmul.f32 %v7641_v59, %v525_v57  ;;  %v7647_v57 = vld [vmem:[#allocation230_spill] sm:$0xff] }
 0x3ee   :  { %2291 = vperm.xlu1 %2651, %v2269_v7   ;;  %v530_v7 = vsel %vm514_vm3, %v7636_v62, %v7643_v60  ;;  %v5999_v54 = vpop.permute.xlu0 %2073  ;;  %v786_v48 = vmul.f32 %v7647_v57, %v754_v16  ;;  %v770_v62 = vsel %vm743_vm9, %v7648_v33, %v7646_v25  ;;  %v546_v16 = vsel %vm514_vm3, %v7651_v34, %v7637_v50 }
 0x3ef   :  { %7644 = vst [vmem:[#allocation146_spill] sm:$0xff] %v5999_v54  ;;  %v2098_v30 = vpop.permute.xlu1 %2097  ;;  %v6029_v25 = vmul.f32 %v7641_v59, %v530_v7  ;;  %v2124_v60 = vsel %vm2101_vm5, %v7655_v6, %v2066_v47  ;;  %v784_v41 = vmul.f32 %v7656_v18, %v770_v62  ;;  %v2116_v34 = vsel %vm2101_vm5, %v2066_v47, %v5866_v44  ;;  %v7663_v54 = vld [vmem:[#allocation122_spill] sm:$0xff] }
 0x3f0   :  { %v2108_v50 = vsel %vm2101_vm5, %v5866_v44, %v2098_v30  ;;  %v2132_v12 = vsel %vm2101_vm5, %v2098_v30, %v7655_v6  ;;  %v746_v59 = vsel %vm743_vm9, %v7631_v26, %v7648_v33  ;;  %v6060_v7 = vmul.f32 %v7642_v24, %v546_v16  ;;  %v7657_v44 = vld [vmem:[#allocation193_spill] sm:$0xff]  ;;  %v7661_v24 = vld [vmem:[#allocation6_spill] sm:$0xff]  ;;  %v7662_v16 = vld [vmem:[#allocation243_spill] sm:$0xff] }
 0x3f1   :  { %v6063_v47 = vmul.f32 %v7645_v4, %v522_v8  ;;  %v6067_v62 = vmul.f32 %v7657_v44, %v7574_v1  ;;  %v804_v6 = vmul.f32 %v7656_v18, %v775_v13  ;;  %v7658_v30 = vld [vmem:[#allocation97_spill] sm:$0xff]  ;;  %v6075_v9 = vmul.f32 %v7659_v20, %v784_v41 }
 0x3f2   :  { %v759_v63 = vsel %vm743_vm9, %v7649_v23, %v7658_v30  ;;  %v7660_v33 = vld [vmem:[#allocation241_spill] sm:$0xff]  ;;  %v2163_v8 = vmul.f32 %v6037_v2, %v2116_v34  ;;  %v2164_v1 = vmul.f32 %v7662_v16, %v2108_v50  ;;  %v751_v41 = vsel %vm743_vm9, %v7658_v30, %v7652_v56  ;;  %v7665_v30 = vld [vmem:[#allocation127_spill] sm:$0xff] }
 0x3f3   :  { %v2162_v26 = vmul.f32 %v7660_v33, %v2124_v60  ;;  %v2165_v22 = vmul.f32 %v6067_v62, %v2132_v12  ;;  %v6091_v23 = vmul.f32 %v7659_v20, %v762_v11  ;;  %v6094_v18 = vmul.f32 %v7659_v20, %v786_v48  ;;  %v7664_v56 = vld [vmem:[#allocation105_spill] sm:$0xff] }
 0x3f4   :  { %2053 = vrot.lane.b32.xlu2 %v7661_v24, %s2719_s1  ;;  %v6097_v60 = vmul.f32 %v7659_v20, %v746_v59  ;;  %v806_v2 = vmul.f32 %v7647_v57, %v759_v63  ;;  %v987_v11 = vsel %vm968_vm11, %v7664_v56, %v7663_v54  ;;  %v979_v20 = vsel %vm968_vm11, %v7663_v54, %v7665_v30  ;;  %v7666_v48 = vld [vmem:[#allocation129_spill] sm:$0xff] }
 0x3f5   :  { %v6083_v13 = vpop.permute.xlu2 %2095  ;;  %2652 = vset.pattern.permute.xlu2 %v7633_v53  ;;  %v995_v59 = vsel %vm968_vm11, %v7666_v48, %v7664_v56  ;;  %v7673_v56 = vld [vmem:[#allocation126_spill] sm:$0xff]  ;;  %vm2445_vm3 = vcmask 523264  }
 0x3f6   :  { %2276 = vperm.xlu1 %2651, %v2266_v29   ;;  %v6099_v34 = vpop.permute.xlu0 %2091 }
 0x3f7   :  { %v2196_v50 = vpop.permute.xlu1 %2195 }
 0x3f8   :  { %v2226_v12 = vmul.f32 %v2196_v50, %v2162_v26  ;;  %v2227_v29 = vmul.f32 %v2196_v50, %v2163_v8  ;;  %v2228_v53 = vmul.f32 %v2196_v50, %v2164_v1  ;;  %v2229_v24 = vmul.f32 %v2196_v50, %v2165_v22  ;;  %v2267_v22 = vld [vmem:[%s6597_s4 + $0x8] sm:$0xff]  ;;  %v7671_v8 = vld [vmem:[#allocation124_spill] sm:$0xff]  ;;  %v7672_v1 = vld [vmem:[#allocation119_spill] sm:$0xff] }
 0x3f9   :  { %v992_v50 = vsel %vm968_vm11, %v7672_v1, %v7671_v8 }
 0x3fa   :  { %v6118_v63 = vadd.f32 %v2226_v12, %v5835_v32  ;;  %v6121_v57 = vadd.f32 %v2227_v29, %v5838_v61  ;;  %v6124_v26 = vadd.f32 %v2228_v53, %v5841_v51  ;;  %v6127_v54 = vadd.f32 %v2229_v24, %v5844_v5  ;;  %v7674_v51 = vld [vmem:[#allocation142_spill] sm:$0xff] }
 0x3fb   :  { %v984_v32 = vsel %vm968_vm11, %v7671_v8, %v7673_v56  ;;  %v971_v61 = vsel %vm968_vm11, %v7665_v30, %v7666_v48  ;;  %v1000_v5 = vsel %vm968_vm11, %v7674_v51, %v7672_v1  ;;  %v2429_v12 = vld [vmem:[%s6599_s6 + $0x8] sm:$0xff]  ;;  %v976_v30 = vsel %vm968_vm11, %v7673_v56, %v7674_v51  ;;  %v7683_v51 = vld [vmem:[#allocation145_spill] sm:$0xff] }
 0x3fc   :  { %7667 = vst [vmem:[#allocation166_spill] sm:$0xff] %v6118_v63  ;;  %v7675_v29 = vld [vmem:[#allocation102_spill] sm:$0xff]  ;;  %v1014_v1 = vmul.f32 %v7653_v17, %v987_v11  ;;  %2281 = vperm.xlu2 %2652, %v2267_v22   ;;  %v1016_v63 = vmul.f32 %v7657_v44, %v971_v61 }
 0x3fd   :  { %7668 = vst [vmem:[#allocation149_spill] sm:$0xff] %v6121_v57  ;;  %v6149_v53 = vmul.f32 %v7675_v29, %v804_v6  ;;  %v6152_v24 = vmul.f32 %v7675_v29, %v767_v27  ;;  %v6155_v8 = vmul.f32 %v7675_v29, %v806_v2  ;;  %v6162_v48 = vmul.f32 %v7675_v29, %v751_v41  ;;  %v7681_v6 = vld [vmem:[#allocation244_spill] sm:$0xff]  ;;  %v6171_v56 = vpop.permute.xlu2 %2187  ;;  %v7686_v61 = vld [vmem:[#allocation154_spill] sm:$0xff]  ;;  %v7689_v29 = vld [vmem:[#allocation161_spill] sm:$0xff] }
 0x3fe   :  { %7669 = vst [vmem:[#allocation167_spill] sm:$0xff] %v6124_v26  ;;  %v1013_v57 = vmul.f32 %v7681_v6, %v995_v59  ;;  %v1034_v27 = vmul.f32 %v7653_v17, %v992_v50  ;;  %2437 = vperm.xlu1 %2651, %v2429_v12   ;;  %v1036_v41 = vmul.f32 %v7657_v44, %v976_v30  ;;  %v7690_v30 = vld [vmem:[#allocation176_spill] sm:$0xff] }
 0x3ff   :  { %7670 = vst [vmem:[#allocation162_spill] sm:$0xff] %v6127_v54  ;;  %v7680_v54 = vld [vmem:[#allocation248_spill] sm:$0xff]  ;;  %v6183_v22 = vpop.permute.xlu1 %2047  ;;  %v6188_v50 = vmul.f32 %v7683_v51, %v1016_v63 }
 0x400   :  { %7676 = vst [vmem:[#allocation171_spill] sm:$0xff] %v6149_v53  ;;  %v1015_v26 = vmul.f32 %v7680_v54, %v979_v20  ;;  %v1035_v2 = vmul.f32 %v7680_v54, %v984_v32  ;;  %v6175_v11 = vmul.f32 %v7683_v51, %v1013_v57  ;;  %v6178_v20 = vmul.f32 %v7683_v51, %v1014_v1  ;;  %v6185_v54 = vpop.permute.xlu0 %2179  ;;  %v7685_v32 = vld [vmem:[#allocation156_spill] sm:$0xff]  ;;  %v7687_v57 = vld [vmem:[#allocation158_spill] sm:$0xff]  ;;  %v7691_v1 = vld [vmem:[#allocation179_spill] sm:$0xff] }
 0x401   :  { %7677 = vst [vmem:[#allocation169_spill] sm:$0xff] %v6152_v24  ;;  %v1216_v44 = vsel %vm1197_vm12, %v7686_v61, %v7685_v32  ;;  %v1213_v63 = vsel %vm1197_vm12, %v7687_v57, %v7690_v30 }
 0x402   :  { %7678 = vst [vmem:[#allocation69_spill] sm:$0xff] %v6155_v8  ;;  %v1033_v8 = vmul.f32 %v7681_v6, %v1000_v5  ;;  %v6181_v59 = vmul.f32 %v7683_v51, %v1015_v26  ;;  %v7688_v5 = vld [vmem:[#allocation153_spill] sm:$0xff]  ;;  %v1208_v26 = vsel %vm1197_vm12, %v7685_v32, %v7689_v29  ;;  %v1205_v6 = vsel %vm1197_vm12, %v7690_v30, %v7691_v1 }
 0x403   :  { %7679 = vst [vmem:[#allocation168_spill] sm:$0xff] %v6162_v48  ;;  %v1221_v12 = vsel %vm1197_vm12, %v7688_v5, %v7687_v57  ;;  %v1229_v51 = vsel %vm1197_vm12, %v7691_v1, %v7688_v5  ;;  %v1239_v1 = vmul.f32 %v7635_v10, %v1216_v44  ;;  %v7702_v44 = vld [vmem:[#allocation198_spill] sm:$0xff] }
 0x404   :  { %7682 = vst [vmem:[#allocation170_spill] sm:$0xff] %v6171_v56  ;;  %v7692_v56 = vld [vmem:[#allocation180_spill] sm:$0xff] }
 0x405   :  { %7684 = vst [vmem:[#allocation174_spill] sm:$0xff] %v6185_v54  ;;  %v1224_v32 = vsel %vm1197_vm12, %v7692_v56, %v7686_v61  ;;  %v7693_v54 = vld [vmem:[#allocation151_spill] sm:$0xff]  ;;  %v1200_v30 = vsel %vm1197_vm12, %v7689_v29, %v7692_v56  ;;  %v1259_v61 = vmul.f32 %v7635_v10, %v1221_v12  ;;  %v7699_v56 = vld [vmem:[#allocation201_spill] sm:$0xff]  ;;  %v7700_v29 = vld [vmem:[#allocation190_spill] sm:$0xff]  ;;  %v2107_v12 = vsel %vm2101_vm5, %v5869_v40, %v6083_v13 }
 0x406   :  { %v6219_v48 = vmul.f32 %v7693_v54, %v1033_v8  ;;  %v6222_v57 = vmul.f32 %v7693_v54, %v1034_v27  ;;  %v6225_v24 = vmul.f32 %v7693_v54, %v1035_v2  ;;  %v6232_v5 = vmul.f32 %v7693_v54, %v1036_v41  ;;  %v7697_v8 = vld [vmem:[#allocation223_spill] sm:$0xff] }
 0x407   :  { %v1260_v27 = vmul.f32 %v7697_v8, %v1213_v63  ;;  %v1261_v2 = vmul.f32 %v7645_v4, %v1205_v6  ;;  %v1241_v42 = vmul.f32 %v7645_v4, %v1200_v30  ;;  %v1441_v41 = vsel %vm1422_vm13, %v7700_v29, %v7699_v56  ;;  %v7701_v54 = vld [vmem:[#allocation215_spill] sm:$0xff]  ;;  %v7705_v30 = vld [vmem:[#allocation185_spill] sm:$0xff] }
 0x408   :  { %7694 = vst [vmem:[#allocation164_spill] sm:$0xff] %v6219_v48  ;;  %v1240_v48 = vmul.f32 %v7697_v8, %v1208_v26  ;;  %v1446_v10 = vsel %vm1422_vm13, %v7702_v44, %v7701_v54  ;;  %v7703_v26 = vld [vmem:[#allocation182_spill] sm:$0xff]  ;;  %v6266_v29 = vmul.f32 %v7705_v30, %v1259_v61  ;;  %v1463_v44 = vmul.f32 %v7660_v33, %v1441_v41 }
 0x409   :  { %7695 = vst [vmem:[#allocation178_spill] sm:$0xff] %v6222_v57  ;;  %v7698_v57 = vld [vmem:[#allocation217_spill] sm:$0xff]  ;;  %v1303_v6 = vmul.f32 %v7703_v26, %v1239_v1  ;;  %v6269_v54 = vmul.f32 %v7705_v30, %v1260_v27  ;;  %v6271_v1 = vpop.permute.xlu2 %2311  ;;  %v2133_v61 = vsel %vm2101_vm5, %v5894_v52, %v5920_v46 }
 0x40a   :  { %7696 = vst [vmem:[#allocation183_spill] sm:$0xff] %v6225_v24  ;;  %v1258_v53 = vmul.f32 %v7698_v57, %v1229_v51  ;;  %v1238_v24 = vmul.f32 %v7698_v57, %v1224_v32  ;;  %v1304_v4 = vmul.f32 %v7703_v26, %v1240_v48  ;;  %v7704_v51 = vld [vmem:[#allocation234_spill] sm:$0xff]  ;;  %v1305_v57 = vmul.f32 %v7703_v26, %v1241_v42 }
 0x40b   :  { %v1433_v32 = vsel %vm1422_vm13, %v7699_v56, %v7704_v51  ;;  %7706 = vst [vmem:[#allocation184_spill] sm:$0xff] %v6271_v1  ;;  %v6274_v48 = vmul.f32 %v7705_v30, %v1261_v2  ;;  %v1483_v56 = vmul.f32 %v7660_v33, %v1446_v10  ;;  %v2160_v42 = vmul.f32 %v7662_v16, %v2107_v12  ;;  %v7708_v2 = vld [vmem:[#allocation115_spill] sm:$0xff] }
 0x40c   :  { %v1302_v63 = vmul.f32 %v7703_v26, %v1238_v24  ;;  %v6263_v8 = vmul.f32 %v7705_v30, %v1258_v53  ;;  %v2094_v24 = vpop.permute.xlu1 %2093  ;;  %v593_v53 = vpop.permute.xlu0 %592  ;;  %v1464_v26 = vmul.f32 %v7653_v17, %v1433_v32  ;;  %v2109_v41 = vsel %vm2101_vm5, %v7708_v2, %v5894_v52  ;;  %v7709_v32 = vld [vmem:[#allocation54_spill] sm:$0xff] }
 0x40d   :  { %7707 = vst [vmem:[#allocation186_spill] sm:$0xff] %v6274_v48  ;;  %v623_v27 = vmul.f32 %v593_v53, %v5992_v49  ;;  %v624_v51 = vmul.f32 %v593_v53, %v5972_v21  ;;  %v2131_v10 = vsel %vm2101_vm5, %v6083_v13, %v6183_v22  ;;  %v625_v17 = vmul.f32 %v593_v53, %v5989_v39 }
 0x40e   :  { %v626_v12 = vmul.f32 %v593_v53, %v6002_v3  ;;  %v1527_v30 = vmul.f32 %v7709_v32, %v1463_v44  ;;  %v1528_v49 = vmul.f32 %v7709_v32, %v1464_v26  ;;  %v2169_v40 = vmul.f32 %v6067_v62, %v2133_v61  ;;  %v7710_v26 = vld [vmem:[#allocation113_spill] sm:$0xff] }
 0x40f   :  { %v655_v21 = vadd.f32 %v623_v27, %v5924_v38  ;;  %v656_v1 = vadd.f32 %v624_v51, %v5928_v0  ;;  %v2224_v52 = vmul.f32 %v5918_v31, %v2160_v42  ;;  %v657_v48 = vadd.f32 %v625_v17, %v5932_v14 }
 0x410   :  { %v658_v13 = vadd.f32 %v626_v12, %v5943_v15  ;;  %v2168_v39 = vmul.f32 %v7662_v16, %v2109_v41  ;;  %v2161_v3 = vmul.f32 %v6067_v62, %v2131_v10  ;;  %v6309_v38 = vmul.f32 %v7710_v26, %v1483_v56  ;;  %v7717_v26 = vld [vmem:[#allocation168_spill] sm:$0xff] }
 0x411   :  { %v880_v44 = vadd.f32 %v6075_v9, %v655_v21  ;;  %v881_v53 = vadd.f32 %v6091_v23, %v656_v1  ;;  %v2106_v0 = vsel %vm2101_vm5, %v5978_v19, %v2094_v24  ;;  %v882_v42 = vadd.f32 %v6094_v18, %v657_v48  ;;  %v6324_v61 = vpop.permute.xlu2 %2043 }
 0x412   :  { %v883_v14 = vadd.f32 %v6097_v60, %v658_v13  ;;  %v6317_v15 = vmul.f32 %v5916_v37, %v2168_v39  ;;  %v2130_v9 = vsel %vm2101_vm5, %v2094_v24, %v5828_v43  ;;  %v6327_v27 = vmul.f32 %v5916_v37, %v2169_v40  ;;  %v7714_v13 = vld [vmem:[#allocation37_spill] sm:$0xff] }
 0x413   :  { %v1109_v23 = vadd.f32 %v6175_v11, %v880_v44  ;;  %v1110_v1 = vadd.f32 %v6178_v20, %v881_v53  ;;  %v1111_v18 = vadd.f32 %v6181_v59, %v882_v42  ;;  %v6332_v51 = vadd.f32 %v2224_v52, %v5908_v36  ;;  %v7713_v52 = vld [vmem:[#allocation169_spill] sm:$0xff] }
 0x414   :  { %v2068_v56 = vpop.permute.xlu1 %2067  ;;  %v1112_v60 = vadd.f32 %v6188_v50, %v883_v14  ;;  %v613_v48 = vpop.permute.xlu0 %612  ;;  %v2225_v24 = vmul.f32 %v5918_v31, %v2161_v3  ;;  %v2156_v11 = vmul.f32 %v7662_v16, %v2106_v0  ;;  %v2157_v10 = vmul.f32 %v6067_v62, %v2130_v9  ;;  %v7715_v3 = vld [vmem:[#allocation46_spill] sm:$0xff] }
 0x415   :  { %v1334_v41 = vadd.f32 %v1302_v63, %v1109_v23  ;;  %v1335_v20 = vadd.f32 %v1303_v6, %v1110_v1  ;;  %v1336_v17 = vadd.f32 %v1304_v4, %v1111_v18  ;;  %v643_v40 = vmul.f32 %v613_v48, %v6060_v7  ;;  %v7720_v1 = vld [vmem:[#allocation164_spill] sm:$0xff]  ;;  %v7721_v18 = vld [vmem:[#allocation178_spill] sm:$0xff] }
 0x416   :  { %v644_v12 = vmul.f32 %v613_v48, %v6014_v45  ;;  %v1337_v59 = vadd.f32 %v1305_v57, %v1112_v60  ;;  %v2117_v50 = vsel %vm2101_vm5, %v2068_v56, %v7708_v2  ;;  %v645_v36 = vmul.f32 %v613_v48, %v6029_v25  ;;  %v7711_v25 = vld [vmem:[#allocation163_spill] sm:$0xff] }
 0x417   :  { %v646_v32 = vmul.f32 %v613_v48, %v6063_v47  ;;  %v675_v21 = vadd.f32 %v643_v40, %v5947_v58  ;;  %v6350_v7 = vsel %vm2101_vm5, %v6099_v34, %v6324_v61  ;;  %v1559_v45 = vadd.f32 %v1527_v30, %v1334_v41  ;;  %v7712_v2 = vld [vmem:[#allocation171_spill] sm:$0xff]  ;;  %v7716_v30 = vld [vmem:[#allocation69_spill] sm:$0xff]  ;;  %v7722_v48 = vld [vmem:[#allocation146_spill] sm:$0xff] }
 0x418   :  { %v676_v63 = vadd.f32 %v644_v12, %v5959_v28  ;;  %v2125_v6 = vsel %vm2101_vm5, %v5920_v46, %v2068_v56  ;;  %v677_v4 = vadd.f32 %v645_v36, %v5982_v55  ;;  %v1560_v47 = vadd.f32 %v1528_v49, %v1335_v20  ;;  %v7718_v55 = vld [vmem:[#allocation99_spill] sm:$0xff]  ;;  %v7719_v49 = vld [vmem:[#allocation34_spill] sm:$0xff]  ;;  %v7723_v20 = vld [vmem:[#allocation165_spill] sm:$0xff] }
 0x419   :  { %v678_v57 = vadd.f32 %v646_v32, %v7711_v25  ;;  %v900_v58 = vadd.f32 %v7712_v2, %v675_v21  ;;  %v6360_v39 = vadd.f32 %v7714_v13, %v1559_v45  ;;  %v6363_v44 = vadd.f32 %v7715_v3, %v1336_v17  ;;  %v2090_v42 = vpop.permute.xlu2 %2089  ;;  %v7724_v40 = vld [vmem:[#allocation183_spill] sm:$0xff]  ;;  %v7728_v2 = vld [vmem:[#allocation174_spill] sm:$0xff]  ;;  %v7731_v3 = vld [vmem:[#allocation64_spill] sm:$0xff] }
 0x41a   :  { %v901_v28 = vadd.f32 %v7713_v52, %v676_v63  ;;  %v902_v53 = vadd.f32 %v7716_v30, %v677_v4  ;;  %v6368_v14 = vadd.f32 %v7718_v55, %v1560_v47  ;;  %v6371_v9 = vadd.f32 %v7719_v49, %v1337_v59  ;;  %v7725_v63 = vld [vmem:[#allocation166_spill] sm:$0xff] }
 0x41b   :  { %v903_v0 = vadd.f32 %v7717_v26, %v678_v57  ;;  %v2166_v23 = vmul.f32 %v7660_v33, %v2125_v6  ;;  %v1129_v56 = vadd.f32 %v7720_v1, %v900_v58  ;;  %v2104_v41 = vsel %vm2101_vm5, %v7722_v48, %v2090_v42  ;;  %v7726_v6 = vld [vmem:[#allocation143_spill] sm:$0xff]  ;;  %v7727_v57 = vld [vmem:[#allocation186_spill] sm:$0xff]  ;;  %v7729_v58 = vld [vmem:[#allocation149_spill] sm:$0xff] }
 0x41c   :  { %v2307_v46 = vpop.permute.xlu1 %2306  ;;  %v1130_v60 = vadd.f32 %v7721_v18, %v901_v28  ;;  %v2167_v17 = vmul.f32 %v7723_v20, %v2117_v50  ;;  %v1131_v12 = vadd.f32 %v7724_v40, %v902_v53  ;;  %v2148_v32 = vmul.f32 %v7662_v16, %v2104_v41  ;;  %v7732_v53 = vld [vmem:[#allocation104_spill] sm:$0xff]  ;;  %v7734_v49 = vld [vmem:[#allocation106_spill] sm:$0xff] }
 0x41d   :  { %v1132_v36 = vadd.f32 %v6232_v5, %v903_v0  ;;  %v1354_v59 = vadd.f32 %v6263_v8, %v1129_v56  ;;  %v2338_v45 = vadd.f32 %v2307_v46, %v7725_v63  ;;  %v2257_v4 = vadd.f32 %v2225_v24, %v7726_v6  ;;  %v7730_v5 = vld [vmem:[#allocation170_spill] sm:$0xff]  ;;  %v6395_v8 = vpop.permute.xlu0 %2301  ;;  %v7733_v0 = vld [vmem:[#allocation57_spill] sm:$0xff] }
 0x41e   :  { %v1355_v21 = vadd.f32 %v6266_v29, %v1130_v60  ;;  %v1356_v25 = vadd.f32 %v6269_v54, %v1131_v12  ;;  %v6390_v50 = vmul.f32 %v7728_v2, %v2148_v32  ;;  %v2339_v52 = vadd.f32 %v2307_v46, %v7729_v58  ;;  %v7737_v12 = vld [vmem:[#allocation246_spill] sm:$0xff]  ;;  %v7742_v58 = vld [vmem:[#allocation135_spill] sm:$0xff] }
 0x41f   :  { %v1357_v47 = vadd.f32 %v7727_v57, %v1132_v36  ;;  %v2220_v28 = vmul.f32 %v7730_v5, %v2156_v11  ;;  %v2221_v13 = vmul.f32 %v7730_v5, %v2157_v10  ;;  %v1579_v29 = vadd.f32 %v6309_v38, %v1354_v59  ;;  %v7735_v11 = vld [vmem:[#allocation107_spill] sm:$0xff]  ;;  %v7741_v6 = vld [vmem:[#allocation130_spill] sm:$0xff] }
 0x420   :  { %v1580_v30 = vadd.f32 %v7731_v3, %v1355_v21  ;;  %v2230_v24 = vmul.f32 %v5916_v37, %v2166_v23  ;;  %v2231_v54 = vmul.f32 %v5916_v37, %v2167_v17  ;;  %v1581_v26 = vadd.f32 %v7732_v53, %v1356_v25  ;;  %v7736_v10 = vld [vmem:[#allocation167_spill] sm:$0xff]  ;;  %v7738_v23 = vld [vmem:[#allocation110_spill] sm:$0xff]  ;;  %v7740_v21 = vld [vmem:[#allocation213_spill] sm:$0xff] }
 0x421   :  { %v1582_v55 = vadd.f32 %v7733_v0, %v1357_v47  ;;  %v1808_v1 = vadd.f32 %v7734_v49, %v1579_v29  ;;  %v2370_v56 = vmax.f32 %v2338_v45, 0.0  ;;  %v2340_v60 = vadd.f32 %v2307_v46, %v7736_v10  ;;  %v2064_v38 = vpop.permute.xlu2 %2063  ;;  %v7739_v37 = vld [vmem:[#allocation162_spill] sm:$0xff]  ;;  %v7744_v53 = vld [vmem:[#allocation132_spill] sm:$0xff] }
 0x422   :  { %v1809_v18 = vadd.f32 %v7735_v11, %v1580_v30  ;;  %v2371_v40 = vmax.f32 %v2339_v52, 0.0  ;;  %v1810_v36 = vadd.f32 %v7737_v12, %v1581_v26  ;;  %v2341_v17 = vadd.f32 %v2307_v46, %v7739_v37  ;;  %v7746_v12 = vld [vmem:[#allocation157_spill] sm:$0xff] }
 0x423   :  { %v1811_v32 = vadd.f32 %v7738_v23, %v1582_v55  ;;  %v2115_v63 = vsel %vm2101_vm5, %v2064_v38, %v7740_v21  ;;  %v2123_v45 = vsel %vm2101_vm5, %v6183_v22, %v2064_v38  ;;  %v2033_v25 = vadd.f32 %v7741_v6, %v1808_v1  ;;  %v7745_v1 = vld [vmem:[#allocation184_spill] sm:$0xff] }
 0x424   :  { %v6406_v41 = vpop.permute.xlu1 %2041  ;;  %v2158_v47 = vmul.f32 %v7660_v33, %v2123_v45  ;;  %v2159_v46 = vmul.f32 %v7723_v20, %v2115_v63  ;;  %v2034_v52 = vadd.f32 %v7742_v58, %v1809_v18  ;;  %v2372_v30 = vmax.f32 %v2340_v60, 0.0  ;;  %v7747_v23 = vld [vmem:[#allocation160_spill] sm:$0xff]  ;;  %v7748_v63 = vld [vmem:[#allocation138_spill] sm:$0xff]  ;;  %v7749_v45 = vld [vmem:[#allocation137_spill] sm:$0xff] }
 0x425   :  { %v2128_v59 = vsel %vm2101_vm5, %v2090_v42, %v6406_v41  ;;  %v2262_v29 = vadd.f32 %v2230_v24, %v2033_v25  ;;  %v7743_v42 = vld [vmem:[#allocation131_spill] sm:$0xff]  ;;  %v2036_v26 = vadd.f32 %v7744_v53, %v1811_v32  ;;  %v2336_v24 = vadd.f32 %v6395_v8, %v6332_v51  ;;  %v6440_v37 = vpop.permute.xlu0 %2085 }
 0x426   :  { %v2149_v57 = vmul.f32 %v6067_v62, %v2128_v59  ;;  %v2035_v3 = vadd.f32 %v7743_v42, %v1810_v36  ;;  %v2222_v22 = vmul.f32 %v5918_v31, %v2158_v47  ;;  %v2223_v55 = vmul.f32 %v5918_v31, %v2159_v46 }
 0x427   :  { %v2263_v49 = vadd.f32 %v2231_v54, %v2034_v52  ;;  %v2342_v11 = vadd.f32 %v7745_v1, %v2262_v29  ;;  %v2265_v18 = vadd.f32 %v6327_v27, %v2036_v26  ;;  %v2373_v38 = vmax.f32 %v2341_v17, 0.0 }
 0x428   :  { %v6428_v0 = vmul.f32 %v7728_v2, %v2149_v57  ;;  %v2264_v10 = vadd.f32 %v6317_v15, %v2035_v3  ;;  %v2254_v36 = vadd.f32 %v2222_v22, %v7746_v12  ;;  %v2255_v32 = vadd.f32 %v2223_v55, %v7747_v23  ;;  %v7753_v12 = vld [vmem:[#allocation247_spill] sm:$0xff] }
 0x429   :  { %v2343_v60 = vadd.f32 %v7745_v1, %v2263_v49  ;;  %v2374_v31 = vmax.f32 %v2342_v11, 0.0  ;;  %v2345_v59 = vadd.f32 %v7745_v1, %v2265_v18  ;;  %v2337_v15 = vadd.f32 %v6395_v8, %v2257_v4  ;;  %v6447_v21 = vpop.permute.xlu2 %2296 }
 0x42a   :  { %v2344_v54 = vadd.f32 %v7745_v1, %v2264_v10  ;;  %v2252_v17 = vadd.f32 %v2220_v28, %v7748_v63  ;;  %v2253_v6 = vadd.f32 %v2221_v13, %v7749_v45  ;;  %v2402_v25 = vmin.f32 %v2370_v56, 6.0  ;;  %v7750_v56 = vld [vmem:[#allocation114_spill] sm:$0xff]  ;;  %v7751_v10 = vld [vmem:[#allocation112_spill] sm:$0xff]  ;;  %v7755_v45 = vld [vmem:[#allocation35_spill] sm:$0xff] }
 0x42b   :  { %v2375_v51 = vmax.f32 %v2343_v60, 0.0  ;;  %v2406_v57 = vmin.f32 %v2374_v31, 6.0  ;;  %v2377_v46 = vmax.f32 %v2345_v59, 0.0  ;;  %v2403_v58 = vmin.f32 %v2371_v40, 6.0  ;;  %v7752_v60 = vld [vmem:[#allocation101_spill] sm:$0xff] }
 0x42c   :  { %v6445_v27 = vpop.permute.xlu1 %2075  ;;  %v2376_v47 = vmax.f32 %v2344_v54, 0.0  ;;  %v2404_v29 = vmin.f32 %v2372_v30, 6.0  ;;  %v2405_v42 = vmin.f32 %v2373_v38, 6.0  ;;  %v2368_v4 = vmax.f32 %v2336_v24, 0.0 }
 0x42d   :  { %v2407_v52 = vmin.f32 %v2375_v51, 6.0  ;;  %v2424_v3 = vpack.c.bf16 %v2406_v57, %v2402_v25  ;;  %v2369_v26 = vmax.f32 %v2337_v15, 0.0  ;;  %v2409_v55 = vmin.f32 %v2377_v46, 6.0  ;;  %v2060_v63 = vpop.permute.xlu0 %2059 }
 0x42e   :  { %v2408_v53 = vmin.f32 %v2376_v47, 6.0  ;;  %v2332_v49 = vadd.f32 %v6447_v21, %v2252_v17  ;;  %v2333_v28 = vadd.f32 %v6447_v21, %v2253_v6  ;;  %v6455_v1 = vadd.f32 %v7750_v56, %v6360_v39  ;;  %v7754_v17 = vld [vmem:[#allocation125_spill] sm:$0xff] }
 0x42f   :  { %v2425_v22 = vpack.c.bf16 %v2407_v52, %v2403_v58  ;;  %2453 = vmatpush.bf16.msrb.mxu0 %v2424_v3  ;;  %v2427_v40 = vpack.c.bf16 %v2409_v55, %v2405_v42  ;;  %v6459_v18 = vadd.f32 %v7751_v10, %v6368_v14  ;;  %v2400_v24 = vmin.f32 %v2368_v4, 6.0  ;;  %v7756_v3 = vld [vmem:[#allocation210_spill] sm:$0xff] }
 0x430   :  { %v2426_v13 = vpack.c.bf16 %v2408_v53, %v2404_v29  ;;  %v2364_v30 = vmax.f32 %v2332_v49, 0.0  ;;  %v2365_v11 = vmax.f32 %v2333_v28, 0.0  ;;  %v1790_v38 = vadd.f32 %v7752_v60, %v6363_v44  ;;  %v7757_v4 = vld [vmem:[#allocation134_spill] sm:$0xff] }
 0x431   :  { %2467 = vmatpush.bf16.msrb.mxu1 %v2425_v22  ;;  %v1791_v23 = vadd.f32 %v7753_v12, %v6371_v9  ;;  %2495 = vmatpush.bf16.msrb.mxu3 %v2427_v40  ;;  %v6465_v39 = vpop.permute.xlu2 %2039  ;;  %v2401_v15 = vmin.f32 %v2369_v26, 6.0  ;;  %v2334_v51 = vadd.f32 %v6395_v8, %v2254_v36  ;;  %v2105_v36 = vsel %vm2101_vm5, %v6445_v27, %v6099_v34 }
 0x432   :  { %2481 = vmatpush.bf16.msrb.mxu2 %v2426_v13  ;;  %v2396_v54 = vmin.f32 %v2364_v30, 6.0  ;;  %v2397_v59 = vmin.f32 %v2365_v11, 6.0  ;;  %v2015_v9 = vadd.f32 %v7754_v17, %v1790_v38  ;;  %v2121_v52 = vsel %vm2101_vm5, %v6324_v61, %v2060_v63  ;;  %v7758_v11 = vld [vmem:[#allocation71_spill] sm:$0xff] }
 0x433   :  { %v2016_v6 = vadd.f32 %v7755_v45, %v1791_v23  ;;  %v7759_v38 = vld [vmem:[#allocation147_spill] sm:$0xff] }
 0x434   :  { %v2062_v31 = vpop.permute.xlu1 %2061  ;;  %v2422_v47 = vpack.c.bf16 %v2400_v24, %v2396_v54  ;;  %v2423_v46 = vpack.c.bf16 %v2401_v15, %v2397_v59  ;;  %v2244_v58 = vadd.f32 %v6390_v50, %v2015_v9  ;;  %v2152_v50 = vmul.f32 %v7662_v16, %v2105_v36  ;;  %v7760_v23 = vld [vmem:[#allocation159_spill] sm:$0xff] }
 0x435   :  { %v2114_v14 = vsel %vm2101_vm5, %v2062_v31, %v5978_v19  ;;  %v2122_v44 = vsel %vm2101_vm5, %v5828_v43, %v2062_v31  ;;  %v2335_v19 = vadd.f32 %v6395_v8, %v2255_v32  ;;  %v2245_v43 = vadd.f32 %v6428_v0, %v2016_v6 }
 0x436   :  { %v2154_v25 = vmul.f32 %v7660_v33, %v2122_v44  ;;  %v2155_v57 = vmul.f32 %v7723_v20, %v2114_v14  ;;  %2482 = vmatpush.bf16.msrb.mxu2 %v2422_v47  ;;  %2496 = vmatpush.bf16.msrb.mxu3 %v2423_v46  ;;  %v2153_v8 = vmul.f32 %v6067_v62, %v6350_v7  ;;  %v2366_v32 = vmax.f32 %v2334_v51, 0.0  ;;  %v2287_v47 = vpop.permute.xlu0 %2286 }
 0x437   :  { %v2150_v0 = vmul.f32 %v7660_v33, %v2121_v52  ;;  %v2367_v55 = vmax.f32 %v2335_v19, 0.0  ;;  %v2325_v52 = vadd.f32 %v2287_v47, %v2245_v43 }
 0x438   :  { %v2218_v29 = vmul.f32 %v7730_v5, %v2154_v25  ;;  %v2219_v42 = vmul.f32 %v7730_v5, %v2155_v57  ;;  %v2398_v30 = vmin.f32 %v2366_v32, 6.0 }
 0x439   :  { %v2072_v61 = vpop.permute.xlu2 %2071  ;;  %v2399_v60 = vmin.f32 %v2367_v55, 6.0 }
 0x43a   :  { %v2250_v53 = vadd.f32 %v2218_v29, %v7756_v3  ;;  %v2251_v34 = vadd.f32 %v2219_v42, %v7757_v4 }
 0x43c   :  { %v2184_v26 = vpop.permute.xlu1 %2183  ;;  %v2330_v22 = vadd.f32 %v6447_v21, %v2250_v53  ;;  %v2331_v5 = vadd.f32 %v6447_v21, %v2251_v34 }
 0x43d   :  { %v2214_v49 = vmul.f32 %v2184_v26, %v2150_v0  ;;  %v2216_v28 = vmul.f32 %v2184_v26, %v2152_v50  ;;  %v2217_v13 = vmul.f32 %v2184_v26, %v2153_v8  ;;  %v2357_v0 = vmax.f32 %v2325_v52, 0.0 }
 0x43e   :  { %v2362_v56 = vmax.f32 %v2330_v22, 0.0  ;;  %v2363_v40 = vmax.f32 %v2331_v5, 0.0  ;;  %v2056_v36 = vpop.permute.xlu0 %2055 }
 0x43f   :  { %v6499_v7 = vadd.f32 %v2214_v49, %v7758_v11  ;;  %v6502_v12 = vadd.f32 %v2216_v28, %v7759_v38  ;;  %v6505_v31 = vadd.f32 %v2217_v13, %v7760_v23  ;;  %v7761_v13 = vld [vmem:[#allocation152_spill] sm:$0xff] }
 0x440   :  { %v2394_v10 = vmin.f32 %v2362_v56, 6.0  ;;  %v2395_v24 = vmin.f32 %v2363_v40, 6.0 }
 0x441   :  { %v2058_v15 = vpop.permute.xlu2 %2057 }
 0x442   :  { %v2420_v21 = vpack.c.bf16 %v2398_v30, %v2394_v10  ;;  %v2421_v54 = vpack.c.bf16 %v2399_v60, %v2395_v24  ;;  %v2112_v51 = vsel %vm2101_vm5, %v2058_v15, %v7722_v48  ;;  %v2120_v14 = vsel %vm2101_vm5, %v6406_v41, %v2058_v15  ;;  %v7762_v60 = vld [vmem:[#allocation108_spill] sm:$0xff] }
 0x443   :  { %v2146_v44 = vmul.f32 %v7660_v33, %v2120_v14  ;;  %v2147_v17 = vmul.f32 %v7723_v20, %v2112_v51  ;;  %v2113_v41 = vsel %vm2101_vm5, %v2060_v63, %v6445_v27  ;;  %v2389_v10 = vmin.f32 %v2357_v0, 6.0  ;;  %v7769_v0 = vld [vmem:[#allocation72_spill] sm:$0xff] }
 0x444   :  { %v2038_v59 = vpop.permute.xlu1 %2037  ;;  %2454 = vmatpush.bf16.msrb.mxu0 %v2420_v21  ;;  %2468 = vmatpush.bf16.msrb.mxu1 %v2421_v54  ;;  %v2151_v29 = vmul.f32 %v7723_v20, %v2113_v41 }
 0x445   :  { %v2210_v9 = vmul.f32 %v7728_v2, %v2146_v44  ;;  %v2211_v45 = vmul.f32 %v7728_v2, %v2147_v17  ;;  %v2119_v2 = vsel %vm2101_vm5, %v6465_v39, %v2056_v36  ;;  %v2126_v32 = vsel %vm2101_vm5, %v6440_v37, %v2038_v59 }
 0x446   :  { %v2215_v34 = vmul.f32 %v2184_v26, %v2151_v29  ;;  %v2142_v8 = vmul.f32 %v7660_v33, %v2119_v2  ;;  %v2141_v40 = vmul.f32 %v6067_v62, %v2126_v32  ;;  %v7766_v29 = vld [vmem:[#allocation141_spill] sm:$0xff] }
 0x447   :  { %v2242_v6 = vadd.f32 %v2210_v9, %v6455_v1  ;;  %v2243_v25 = vadd.f32 %v2211_v45, %v6459_v18  ;;  %v2111_v1 = vsel %vm2101_vm5, %v2056_v36, %v2072_v61  ;;  %v2324_v18 = vadd.f32 %v2287_v47, %v2244_v58 }
 0x448   :  { %v2143_v50 = vmul.f32 %v7723_v20, %v2111_v1  ;;  %v2247_v56 = vadd.f32 %v2215_v34, %v7761_v13 }
 0x449   :  { %v2176_v46 = vpop.permute.xlu2 %2175  ;;  %v2322_v63 = vadd.f32 %v2287_v47, %v2242_v6  ;;  %v2323_v4 = vadd.f32 %v2287_v47, %v2243_v25  ;;  %v2356_v43 = vmax.f32 %v2324_v18, 0.0 }
 0x44b   :  { %v2354_v22 = vmax.f32 %v2322_v63, 0.0  ;;  %v2355_v55 = vmax.f32 %v2323_v4, 0.0  ;;  %v2388_v11 = vmin.f32 %v2356_v43, 6.0  ;;  %v7768_v63 = vld [vmem:[#allocation144_spill] sm:$0xff] }
 0x44c   :  { %v2070_v57 = vpop.permute.xlu1 %2069 }
 0x44d   :  { %v2102_v5 = vsel %vm2101_vm5, %v2070_v57, %v6440_v37  ;;  %v7763_v37 = vld [vmem:[#allocation133_spill] sm:$0xff]  ;;  %v2386_v21 = vmin.f32 %v2354_v22, 6.0  ;;  %v2387_v14 = vmin.f32 %v2355_v55, 6.0 }
 0x44e   :  { %v2140_v24 = vmul.f32 %v7662_v16, %v2102_v5 }
 0x451   :  { %v2054_v3 = vpop.permute.xlu2 %2053 }
 0x452   :  { %v2110_v49 = vsel %vm2101_vm5, %v2054_v3, %v2070_v57  ;;  %v2118_v28 = vsel %vm2101_vm5, %v2038_v59, %v2054_v3  ;;  %v7765_v57 = vld [vmem:[#allocation121_spill] sm:$0xff] }
 0x453   :  { %v2138_v54 = vmul.f32 %v7660_v33, %v2118_v28  ;;  %v2139_v15 = vmul.f32 %v7723_v20, %v2110_v49 }
 0x454   :  { %v2088_v48 = vpop.permute.xlu1 %2087 }
 0x455   :  { %v2103_v19 = vsel %vm2101_vm5, %v2072_v61, %v2088_v48  ;;  %v2127_v42 = vsel %vm2101_vm5, %v2088_v48, %v6465_v39  ;;  %v2206_v39 = vmul.f32 %v2176_v46, %v2142_v8  ;;  %v2207_v61 = vmul.f32 %v2176_v46, %v2143_v50 }
 0x456   :  { %v2144_v53 = vmul.f32 %v7662_v16, %v2103_v19  ;;  %v2145_v58 = vmul.f32 %v6067_v62, %v2127_v42  ;;  %v7767_v42 = vld [vmem:[#allocation140_spill] sm:$0xff] }
 0x457   :  { %v2238_v38 = vadd.f32 %v2206_v39, %v7762_v60  ;;  %v2239_v23 = vadd.f32 %v2207_v61, %v7763_v37 }
 0x458   :  { %v2208_v26 = vmul.f32 %v2176_v46, %v2144_v53  ;;  %v2209_v30 = vmul.f32 %v2176_v46, %v2145_v58 }
 0x459   :  { %v2282_v44 = vpop.permute.xlu2 %2281 }
 0x45a   :  { %v2240_v59 = vadd.f32 %v2208_v26, %v7764_v35  ;;  %v2241_v47 = vadd.f32 %v2209_v30, %v7765_v57  ;;  %v2318_v41 = vadd.f32 %v2282_v44, %v2238_v38  ;;  %v2319_v19 = vadd.f32 %v2282_v44, %v2239_v23  ;;  %v2595_v35 = vld [vmem:[%s6598_s5] sm:$0xff] }
 0x45c   :  { %v2172_v27 = vpop.permute.xlu1 %2171  ;;  %v2320_v2 = vadd.f32 %v2282_v44, %v2240_v59  ;;  %v2351_v43 = vmax.f32 %v2319_v19, 0.0  ;;  %v2433_v59 = vpop.permute.xlu0 %2432 }
 0x45d   :  { %v2202_v45 = vmul.f32 %v2172_v27, %v2138_v54  ;;  %v2203_v6 = vmul.f32 %v2172_v27, %v2139_v15  ;;  %v2204_v25 = vmul.f32 %v2172_v27, %v2140_v24  ;;  %v2205_v36 = vmul.f32 %v2172_v27, %v2141_v40 }
 0x45e   :  { %v2350_v27 = vmax.f32 %v2318_v41, 0.0  ;;  %v2352_v5 = vmax.f32 %v2320_v2, 0.0  ;;  %v2383_v40 = vmin.f32 %v2351_v43, 6.0  ;;  %v2671_v41 = vld [vmem:[%s6593_s0 + $0x10] sm:$0xff]  ;;  %v2672_v2 = vld [vmem:[%s6593_s0 + $0x18] sm:$0xff] }
 0x45f   :  { %v2235_v3 = vadd.f32 %v2203_v6, %v7767_v42  ;;  %v2236_v53 = vadd.f32 %v2204_v25, %v7768_v63  ;;  %v2237_v32 = vadd.f32 %v2205_v36, %v7769_v0  ;;  %v2675_v63 = vld [vmem:[%s6593_s0 + $0x30] sm:$0xff] }
 0x460   :  { %v2384_v60 = vmin.f32 %v2352_v5, 6.0 }
 0x464   :  { %v2292_v51 = vpop.permute.xlu1 %2291 }
 0x465   :  { %v2326_v62 = vadd.f32 %v2292_v51, %v6499_v7  ;;  %v2327_v17 = vadd.f32 %v2292_v51, %v2247_v56  ;;  %v2328_v9 = vadd.f32 %v2292_v51, %v6502_v12  ;;  %v2329_v16 = vadd.f32 %v2292_v51, %v6505_v31 }
 0x466   :  { %v2321_v12 = vadd.f32 %v2282_v44, %v2241_v47  ;;  %v2234_v31 = vadd.f32 %v2202_v45, %v7766_v29  ;;  %v2382_v56 = vmin.f32 %v2350_v27, 6.0 }
 0x467   :  { %v2358_v33 = vmax.f32 %v2326_v62, 0.0  ;;  %v2359_v46 = vmax.f32 %v2327_v17, 0.0  ;;  %v2360_v20 = vmax.f32 %v2328_v9, 0.0  ;;  %v2361_v48 = vmax.f32 %v2329_v16, 0.0  ;;  %v2669_v17 = vld [vmem:[%s6593_s0] sm:$0xff]  ;;  %v2670_v16 = vld [vmem:[%s6593_s0 + $0x8] sm:$0xff] }
 0x468   :  { %v2353_v55 = vmax.f32 %v2321_v12, 0.0 }
 0x469   :  { %v2390_v1 = vmin.f32 %v2358_v33, 6.0  ;;  %v2391_v7 = vmin.f32 %v2359_v46, 6.0  ;;  %v2392_v18 = vmin.f32 %v2360_v20, 6.0  ;;  %v2393_v52 = vmin.f32 %v2361_v48, 6.0 }
 0x46a   :  { %v2385_v37 = vmin.f32 %v2353_v55, 6.0 }
 0x46b   :  { %v2416_v4 = vpack.c.bf16 %v2390_v1, %v2386_v21  ;;  %v2417_v34 = vpack.c.bf16 %v2391_v7, %v2387_v14  ;;  %v2418_v8 = vpack.c.bf16 %v2392_v18, %v2388_v11  ;;  %v2419_v50 = vpack.c.bf16 %v2393_v52, %v2389_v10  ;;  %v2673_v7 = vld [vmem:[%s6593_s0 + $0x20] sm:$0xff]  ;;  %v2674_v52 = vld [vmem:[%s6593_s0 + $0x28] sm:$0xff] }
 0x46c   :  { %v2277_v58 = vpop.permute.xlu1 %2276 }
 0x46d   :  { %2455 = vmatpush.bf16.msrb.mxu0 %v2416_v4  ;;  %2469 = vmatpush.bf16.msrb.mxu1 %v2417_v34  ;;  %v2314_v39 = vadd.f32 %v2277_v58, %v2234_v31  ;;  %v2315_v61 = vadd.f32 %v2277_v58, %v2235_v3  ;;  %v2316_v22 = vadd.f32 %v2277_v58, %v2236_v53  ;;  %v2676_v4 = vld [vmem:[%s6593_s0 + $0x38] sm:$0xff] }
 0x46e   :  { %2483 = vmatpush.bf16.msrb.mxu2 %v2418_v8  ;;  %2497 = vmatpush.bf16.msrb.mxu3 %v2419_v50  ;;  %v2317_v26 = vadd.f32 %v2277_v58, %v2237_v32 }
 0x46f   :  { %v2346_v49 = vmax.f32 %v2314_v39, 0.0  ;;  %v2347_v28 = vmax.f32 %v2315_v61, 0.0  ;;  %v2348_v13 = vmax.f32 %v2316_v22, 0.0 }
 0x470   :  { %v2349_v30 = vmax.f32 %v2317_v26, 0.0 }
 0x471   :  { %v2378_v11 = vmin.f32 %v2346_v49, 6.0  ;;  %v2379_v10 = vmin.f32 %v2347_v28, 6.0  ;;  %v2380_v24 = vmin.f32 %v2348_v13, 6.0 }
 0x472   :  { %v2381_v38 = vmin.f32 %v2349_v30, 6.0 }
 0x473   :  { %v2412_v23 = vpack.c.bf16 %v2382_v56, %v2378_v11  ;;  %v2413_v21 = vpack.c.bf16 %v2383_v40, %v2379_v10  ;;  %v2414_v54 = vpack.c.bf16 %v2384_v60, %v2380_v24 }
 0x474   :  { %v2415_v15 = vpack.c.bf16 %v2385_v37, %v2381_v38  ;;  %v2438_v6 = vpop.permute.xlu1 %2437 }
 0x475   :  { %2456 = vmatpush.bf16.msrb.mxu0 %v2412_v23  ;;  %2470 = vmatpush.bf16.msrb.mxu1 %v2413_v21 }
 0x476   :  { %2484 = vmatpush.bf16.msrb.mxu2 %v2414_v54  ;;  %2498 = vmatpush.bf16.msrb.mxu3 %v2415_v15 }
 0x478   :  { %2587 = vmatmul.msk.bf16.vlgmr.msrb.gmra.mxu0 %vm2445_vm3, %v2595_v35  ;;  %2588 = vmatmul.msk.bf16.vlgmr.msrb.gmra.mxu1 %vm2445_vm3, %v2595_v35 }
 0x479   :  { %2589 = vmatmul.msk.bf16.vlgmr.msrb.gmra.mxu2 %vm2445_vm3, %v2595_v35  ;;  %2590 = vmatmul.msk.bf16.vlgmr.msrb.gmra.mxu3 %vm2445_vm3, %v2595_v35 }
 0x4f5   :  { %v2458_v51 = vpop.f32.mrf.mxu0  ;;  %v2472_v14 = vpop.f32.mrf.mxu1 }
 0x4f6   :  { %v2459_v44 = vadd.f32 %v2458_v51, %v2433_v59  ;;  %v2473_v62 = vadd.f32 %v2472_v14, %v2433_v59 }
 0x4f8   :  { %v2505_v9 = vadd.f32 %v2669_v17, %v2459_v44  ;;  %v2506_v45 = vadd.f32 %v2670_v16, %v2473_v62 }
 0x4fa   :  { %2513 = vst [vmem:[#allocation2] sm:$0xff] %v2505_v9 }
 0x4fb   :  { %2514 = vst [vmem:[#allocation2 + $0x8] sm:$0xff] %v2506_v45 }
 0x4fc   :  { %v2486_v25 = vpop.f32.mrf.mxu2  ;;  %v2500_v57 = vpop.f32.mrf.mxu3 }
 0x4fd   :  { %v2487_v47 = vadd.f32 %v2486_v25, %v2433_v59  ;;  %v2501_v33 = vadd.f32 %v2500_v57, %v2433_v59  ;;  %v2460_v46 = vpop.f32.mrf.mxu0  ;;  %v2474_v20 = vpop.f32.mrf.mxu1 }
 0x4fe   :  { %v2461_v48 = vadd.f32 %v2460_v46, %v2438_v6  ;;  %v2475_v36 = vadd.f32 %v2474_v20, %v2438_v6 }
 0x4ff   :  { %v2507_v19 = vadd.f32 %v2671_v41, %v2487_v47  ;;  %v2508_v1 = vadd.f32 %v2672_v2, %v2501_v33 }
 0x500   :  { %v2509_v18 = vadd.f32 %v2673_v7, %v2461_v48  ;;  %v2510_v12 = vadd.f32 %v2674_v52, %v2475_v36 }
 0x501   :  { %2515 = vst [vmem:[#allocation2 + $0x10] sm:$0xff] %v2507_v19 }
 0x502   :  { %2516 = vst [vmem:[#allocation2 + $0x18] sm:$0xff] %v2508_v1 }
 0x503   :  { %2517 = vst [vmem:[#allocation2 + $0x20] sm:$0xff] %v2509_v18 }
 0x504   :  { %2518 = vst [vmem:[#allocation2 + $0x28] sm:$0xff] %v2510_v12  ;;  %v2488_v29 = vpop.f32.mrf.mxu2  ;;  %v2502_v31 = vpop.f32.mrf.mxu3 }
 0x505   :  { %v2489_v42 = vadd.f32 %v2488_v29, %v2438_v6  ;;  %v2503_v3 = vadd.f32 %v2502_v31, %v2438_v6 }
 0x507   :  { %v2511_v53 = vadd.f32 %v2675_v63, %v2489_v42  ;;  %v2512_v34 = vadd.f32 %v2676_v4, %v2503_v3 }
 0x509   :  { %2519 = vst [vmem:[#allocation2 + $0x30] sm:$0xff] %v2511_v53 }
 0x50a   :  { %2520 = vst [vmem:[#allocation2 + $0x38] sm:$0xff] %v2512_v34 }
 0x50b   :  { %2533 = dma.vmem_to_hbm [thread:$0]  %s2526_s28, 1024, %s2528_s8, [#allocation3], %s2722_s13, %s2722_s13, %s2723_s14  }
 0x50c   :  { %2701 = dma.done.wait [#allocation3], 1024  }
 0x50d   :  { %2702 = vsyncadd [#allocation3], 4294966272 }
 0x50e   :  { %2538 = vsyncpa [#allocation3], 1 }

</bundles_post_ra>
